<compile_context>
chip_gen: v5e
topology: v5e:2x2
jax: 0.10.0
libtpu: 0.0.40
codegen_flags: <defaults>
</compile_context>

<pallas_src>
import jax
import jax.numpy as jnp
from jax.experimental import pallas as pl
from jax.experimental.pallas import tpu as pltpu


# ----------------------------------------------------------------------------
# Kernel factory: one grid step = one Bt-batch block of the whole head
# ----------------------------------------------------------------------------
def _make_kernel(Bt, T, num_class):
    rows = Bt * T
    bf16 = jnp.bfloat16

    def kernel(
        feat_ref,                    # (1, rows, 2048) f32   (cast to bf16 post-load)
        w1_ref, b1_ref,              # (2048, 512) bf16, (1, 512) f32
        w2_ref, b2_ref,              # (512, 256)  bf16, (1, 256) f32
        cw1_ref, cb1_ref,            # (768, 256)  bf16, (1, 256) f32
        cw2_ref, cb2_ref,            # (768, 128)  bf16, (1, 128) f32
        wf_ref, bf_ref,              # (128, 128)  bf16, (1, 128) f32  (fc3 ∘ cls|reg folded)
        out_ref,                     # (1, Bt, 128) f32
    ):
        # Cast to bf16 right after the load (no extra wrapper HBM pass).
        f = feat_ref[0].astype(bf16)                                    # (rows, 2048)

        # fc1 + ReLU, fc2  (bf16 MXU, f32 accumulate)
        h1 = jnp.dot(f, w1_ref[...], preferred_element_type=jnp.float32) + b1_ref[...]
        h1 = jnp.maximum(h1, 0.0)                                       # (rows, 512) f32
        h2 = jnp.dot(h1.astype(bf16), w2_ref[...],
                     preferred_element_type=jnp.float32) + b2_ref[...]  # (rows, 256) f32

        # Per-row time index masks: t==0 rows have no t-1 neighbor, t==T-1 rows
        # have no t+1 neighbor (also kills cross-batch leakage, since batch
        # segments are contiguous with stride T inside this block).
        t_idx = jax.lax.broadcasted_iota(jnp.int32, (rows, 256), 0) % T
        first = t_idx == 0
        last = t_idx == (T - 1)

        def conv3(x, w_ref, b_ref):
            # x: (rows, 256) f32; w_ref: (3*256, Cout) bf16.
            # 3-tap Conv1d(k=3, pad=1) as three accumulated K=256 matmuls
            # (no f32 lane-axis concat copy). Shifts via XLU sublane rotates.
            xm = jnp.where(first, 0.0, pltpu.roll(x, shift=1, axis=0)).astype(bf16)          # x[t-1]
            xp = jnp.where(last, 0.0, pltpu.roll(x, shift=rows - 1, axis=0)).astype(bf16)    # x[t+1]
            acc = jnp.dot(xm, w_ref[0:256, :], preferred_element_type=jnp.float32)
            acc = acc + jnp.dot(x.astype(bf16), w_ref[256:512, :],
                                preferred_element_type=jnp.float32)
            acc = acc + jnp.dot(xp, w_ref[512:768, :],
                                preferred_element_type=jnp.float32)
            return acc + b_ref[...]

        # Conv1d(256->256) + ReLU ; Conv1d(256->128). Dropout(p=0.1) = eval identity.
        y1 = jnp.maximum(conv3(h2, cw1_ref, cb1_ref), 0.0)              # (rows, 256)
        y2 = conv3(y1, cw2_ref, cb2_ref)                                # (rows, 128)

        # Global max over time per batch element.
        pooled = jnp.max(y2.reshape(Bt, T, y2.shape[-1]), axis=1)       # (Bt, 128)

        # fc3 and the merged (cls | reg | zero-pad) head are pre-folded into one
        # lane-dense (128, 128) projection; sigmoid only on the reg column.
        head = jnp.dot(pooled.astype(bf16), wf_ref[...],
                       preferred_element_type=jnp.float32) + bf_ref[...]  # (Bt, 128)
        col = jax.lax.broadcasted_iota(jnp.int32, head.shape, 1)
        out_ref[0] = jnp.where(col == num_class, jax.nn.sigmoid(head), head)

    return kernel


# ----------------------------------------------------------------------------
# Batch-block selection
# ----------------------------------------------------------------------------
def _choose_bt(B, T, target_rows=512):
    """Largest batch block with rows <= target_rows, preferring >= 2 grid steps
    so both v7x TensorCores get work.  (3-D blocks make any divisor tile-legal.)
    target_rows ~512 suits v6e/v7x; raise to 1024-2048 on v5e if profiling shows
    exposed feature DMA."""
    divisors = [c for c in range(1, B + 1) if B % c == 0]
    fit = [c for c in divisors if c * T <= target_rows]
    multi = [c for c in fit if B // c >= 2]
    if multi:
        return max(multi)
    if fit:
        return max(fit)
    return 1


# ----------------------------------------------------------------------------
# One-time weight preparation (the head is frozen — do NOT redo this per call)
# ----------------------------------------------------------------------------
def prepare_head_params(params, num_class=4, out_w=128):
    (w1, b1, w2, b2, cw1, cb1, cw2, cb2, w3, b3, wc, bc, wr, br) = params
    bf16 = jnp.bfloat16

    # Fuse the 3-tap conv weights into single (3*Cin, Cout) matrices.
    cw1m = cw1.reshape(-1, cw1.shape[-1]).astype(bf16)      # (768, 256)
    cw2m = cw2.reshape(-1, cw2.shape[-1]).astype(bf16)      # (768, 128)

    # Merge cls + reg heads into one lane-dense (64, 128) projection ...
    wh = jnp.zeros((w3.shape[1], out_w), jnp.float32)
    wh = wh.at[:, :num_class].set(wc).at[:, num_class:num_class + 1].set(wr)
    bh = jnp.zeros((1, out_w), jnp.float32)
    bh = bh.at[:, :num_class].set(bc).at[:, num_class:num_class + 1].set(br)
    # ... and fold fc3 into it (no nonlinearity between fc3 and the heads).
    wf = w3 @ wh                                            # (128, 128)
    bf = b3 @ wh + bh                                       # (1, 128)

    return (
        w1.astype(bf16), b1,
        w2.astype(bf16), b2,
        cw1m, cb1,
        cw2m, cb2,
        wf.astype(bf16), bf,
    )


# ----------------------------------------------------------------------------
# Wrapper
# ----------------------------------------------------------------------------
def rmsnet_forward(feat, kernel_params, num_class=4, target_rows=512):
    """feat: (B, T, 2048) float32 pooled backbone features.
    kernel_params: output of prepare_head_params (frozen, prepared once).
    Returns (out_cls (B, num_class), out_reg (B, 1))."""
    B, T, C = feat.shape
    assert C == 2048
    out_w = kernel_params[-1].shape[-1]                       # 128

    Bt = _choose_bt(B, T, target_rows)
    rows = Bt * T
    n_blocks = B // Bt

    # Free row-major regrouping; NO dtype cast here (kernel casts after the load).
    feat3d = feat.reshape(n_blocks, rows, C)

    def full_spec(arr):
        # Resident operand: constant block index across the grid.
        # TODO(synk): pipeline_mode=pl.Buffered(1) would save ~3 MiB of VMEM
        #             double-buffering; left default for maximal portability.
        return pl.BlockSpec(arr.shape, lambda g, nd=arr.ndim: (0,) * nd)

    in_specs = [pl.BlockSpec((1, rows, C), lambda g: (g, 0, 0))]
    in_specs += [full_spec(p) for p in kernel_params]

    out = pl.pallas_call(
        _make_kernel(Bt, T, num_class),
        out_shape=jax.ShapeDtypeStruct((n_blocks, Bt, out_w), jnp.float32),
        grid_spec=pltpu.PrefetchScalarGridSpec(
            num_scalar_prefetch=0,
            grid=(n_blocks,),
            in_specs=in_specs,
            out_specs=pl.BlockSpec((1, Bt, out_w), lambda g: (g, 0, 0)),
        ),
        compiler_params=pltpu.CompilerParams(
            dimension_semantics=("parallel",),        # batch blocks are independent
            vmem_limit_bytes=32 * 1024 * 1024,        # ~20 MiB actually needed at rows=512
        ),
    )(feat3d, *kernel_params)

    out = out.reshape(B, out_w)
    return out[:, :num_class], out[:, num_class:num_class + 1]


# ----------------------------------------------------------------------------
# Deterministic parameter init (PyTorch-default-style uniform fan-in init)
# ----------------------------------------------------------------------------
def init_params(key, num_class=4):
    ks = jax.random.split(key, 7)

    def lin(k, fan_in, fan_out):
        bound = 1.0 / jnp.sqrt(jnp.float32(fan_in))
        kw, kb = jax.random.split(k)
        w = jax.random.uniform(kw, (fan_in, fan_out), jnp.float32, -bound, bound)
        b = jax.random.uniform(kb, (1, fan_out), jnp.float32, -bound, bound)
        return w, b

    def conv(k, cin, cout, ksize=3):
        bound = 1.0 / jnp.sqrt(jnp.float32(cin * ksize))
        kw, kb = jax.random.split(k)
        # stored as (k, cin, cout)  (torch layout is (cout, cin, k))
        w = jax.random.uniform(kw, (ksize, cin, cout), jnp.float32, -bound, bound)
        b = jax.random.uniform(kb, (1, cout), jnp.float32, -bound, bound)
        return w, b

    w1, b1 = lin(ks[0], 2048, 512)
    w2, b2 = lin(ks[1], 512, 256)
    cw1, cb1 = conv(ks[2], 256, 256)
    cw2, cb2 = conv(ks[3], 256, 128)
    w3, b3 = lin(ks[4], 128, 64)
    wc, bc = lin(ks[5], 64, num_class)
    wr, br = lin(ks[6], 64, 1)
    return (w1, b1, w2, b2, cw1, cb1, cw2, cb2, w3, b3, wc, bc, wr, br)


# ----------------------------------------------------------------------------
# Pure-JAX reference (f32, same math, no Pallas) for a sanity check
# ----------------------------------------------------------------------------
def reference_forward(feat, params):
    (w1, b1, w2, b2, cw1, cb1, cw2, cb2, w3, b3, wc, bc, wr, br) = params
    h1 = jnp.maximum(feat @ w1 + b1, 0.0)
    h2 = h1 @ w2 + b2

    def conv1d(x, w, b):  # x: (B, T, Cin), w: (3, Cin, Cout)
        xm = jnp.pad(x, ((0, 0), (1, 0), (0, 0)))[:, :-1]
        xp = jnp.pad(x, ((0, 0), (0, 1), (0, 0)))[:, 1:]
        return xm @ w[0] + x @ w[1] + xp @ w[2] + b

    y1 = jnp.maximum(conv1d(h2, cw1, cb1), 0.0)
    y2 = conv1d(y1, cw2, cb2)
    pooled = jnp.max(y2, axis=1)
    h3 = pooled @ w3 + b3
    return h3 @ wc + bc, jax.nn.sigmoid(h3 @ wr + br)


if __name__ == "__main__":
    B, T, NUM_CLASS = 2, 8, 4
    key = jax.random.PRNGKey(0)
    k_feat, k_param = jax.random.split(key)

    # Stand-in for the frozen ResNet-152 output: (B, T, 2048) pooled features.
    feat = jax.random.normal(k_feat, (B, T, 2048), dtype=jnp.float32)
    params = init_params(k_param, num_class=NUM_CLASS)

    # Frozen head: prepare kernel-ready weights exactly once.
    kparams = prepare_head_params(params, num_class=NUM_CLASS)

    out_cls, out_reg = rmsnet_forward(feat, kparams, num_class=NUM_CLASS)
    out_cls, out_reg = jax.block_until_ready((out_cls, out_reg))

    ref_cls, ref_reg = reference_forward(feat, params)
    assert out_cls.shape == (B, NUM_CLASS) and out_reg.shape == (B, 1)
    assert jnp.allclose(out_cls, ref_cls, rtol=5e-2, atol=5e-2)
    assert jnp.allclose(out_reg, ref_reg, rtol=5e-2, atol=5e-2)

    print("KERNEL_OK")
</pallas_src>

<mosaic_0001>
module attributes {stable_mosaic.version = 11 : i64} {
  func.func @kernel(%arg0: i32, %arg1: memref<1x8x2048xf32, #tpu.memory_space<vmem>>, %arg2: memref<2048x512xbf16, #tpu.memory_space<vmem>>, %arg3: memref<1x512xf32, #tpu.memory_space<vmem>>, %arg4: memref<512x256xbf16, #tpu.memory_space<vmem>>, %arg5: memref<1x256xf32, #tpu.memory_space<vmem>>, %arg6: memref<768x256xbf16, #tpu.memory_space<vmem>>, %arg7: memref<1x256xf32, #tpu.memory_space<vmem>>, %arg8: memref<768x128xbf16, #tpu.memory_space<vmem>>, %arg9: memref<1x128xf32, #tpu.memory_space<vmem>>, %arg10: memref<128x128xbf16, #tpu.memory_space<vmem>>, %arg11: memref<1x128xf32, #tpu.memory_space<vmem>>, %arg12: memref<1x1x128xf32, #tpu.memory_space<vmem>>) attributes {dimension_semantics = [#tpu.dimension_semantics<parallel>], iteration_bounds = array<i64: 2>, scalar_prefetch = 0 : i64, scratch_operands = 0 : i64, tpu.core_type = #tpu.core_type<tc>, window_params = [{transform_indices = @transform_0, window_bounds = array<i64: 1, 8, 2048>}, {pipeline_mode = #tpu.pipeline_mode<synchronous>, transform_indices = @transform_1, window_bounds = array<i64: 2048, 512>}, {pipeline_mode = #tpu.pipeline_mode<synchronous>, transform_indices = @transform_2, window_bounds = array<i64: 1, 512>}, {pipeline_mode = #tpu.pipeline_mode<synchronous>, transform_indices = @transform_3, window_bounds = array<i64: 512, 256>}, {pipeline_mode = #tpu.pipeline_mode<synchronous>, transform_indices = @transform_4, window_bounds = array<i64: 1, 256>}, {pipeline_mode = #tpu.pipeline_mode<synchronous>, transform_indices = @transform_5, window_bounds = array<i64: 768, 256>}, {pipeline_mode = #tpu.pipeline_mode<synchronous>, transform_indices = @transform_6, window_bounds = array<i64: 1, 256>}, {pipeline_mode = #tpu.pipeline_mode<synchronous>, transform_indices = @transform_7, window_bounds = array<i64: 768, 128>}, {pipeline_mode = #tpu.pipeline_mode<synchronous>, transform_indices = @transform_8, window_bounds = array<i64: 1, 128>}, {pipeline_mode = #tpu.pipeline_mode<synchronous>, transform_indices = @transform_9, window_bounds = array<i64: 128, 128>}, {pipeline_mode = #tpu.pipeline_mode<synchronous>, transform_indices = @transform_10, window_bounds = array<i64: 1, 128>}, {transform_indices = @transform_11, window_bounds = array<i64: 1, 1, 128>}]} {
    %c0 = arith.constant 0 : index
    %c0_0 = arith.constant 0 : index
    %c0_1 = arith.constant 0 : index
    %0 = vector.load %arg1[%c0, %c0_0, %c0_1] : memref<1x8x2048xf32, #tpu.memory_space<vmem>>, vector<1x8x2048xf32>
    %1 = vector.shape_cast %0 : vector<1x8x2048xf32> to vector<8x2048xf32>
    %2 = arith.truncf %1 : vector<8x2048xf32> to vector<8x2048xbf16>
    %c0_2 = arith.constant 0 : index
    %c0_3 = arith.constant 0 : index
    %3 = vector.load %arg2[%c0_2, %c0_3] : memref<2048x512xbf16, #tpu.memory_space<vmem>>, vector<2048x512xbf16>
    %cst = arith.constant dense<0.000000e+00> : vector<8x512xf32>
    %4 = tpu.matmul %2, %3, %cst {dimension_numbers = #tpu.dot_dimension_numbers<[1], [0], [0], [1], [0, 0, 1, 1], [], []>} : vector<8x2048xbf16>, vector<2048x512xbf16>, vector<8x512xf32> -> vector<8x512xf32>
    %c0_4 = arith.constant 0 : index
    %c0_5 = arith.constant 0 : index
    %5 = vector.load %arg3[%c0_4, %c0_5] : memref<1x512xf32, #tpu.memory_space<vmem>>, vector<1x512xf32>
    %6 = vector.broadcast %5 : vector<1x512xf32> to vector<8x512xf32>
    %7 = arith.addf %4, %6 : vector<8x512xf32>
    %cst_6 = arith.constant 0.000000e+00 : f32
    %8 = vector.broadcast %cst_6 : f32 to vector<8x512xf32>
    %9 = arith.maximumf %7, %8 : vector<8x512xf32>
    %10 = arith.truncf %9 : vector<8x512xf32> to vector<8x512xbf16>
    %c0_7 = arith.constant 0 : index
    %c0_8 = arith.constant 0 : index
    %11 = vector.load %arg4[%c0_7, %c0_8] : memref<512x256xbf16, #tpu.memory_space<vmem>>, vector<512x256xbf16>
    %cst_9 = arith.constant dense<0.000000e+00> : vector<8x256xf32>
    %12 = tpu.matmul %10, %11, %cst_9 {dimension_numbers = #tpu.dot_dimension_numbers<[1], [0], [0], [1], [0, 0, 1, 1], [], []>} : vector<8x512xbf16>, vector<512x256xbf16>, vector<8x256xf32> -> vector<8x256xf32>
    %c0_10 = arith.constant 0 : index
    %c0_11 = arith.constant 0 : index
    %13 = vector.load %arg5[%c0_10, %c0_11] : memref<1x256xf32, #tpu.memory_space<vmem>>, vector<1x256xf32>
    %14 = vector.broadcast %13 : vector<1x256xf32> to vector<8x256xf32>
    %15 = arith.addf %12, %14 : vector<8x256xf32>
    %16 = tpu.iota {dimensions = array<i32: 0>} : vector<8x256xi32>
    %c8_i32 = arith.constant 8 : i32
    %c0_i32 = arith.constant 0 : i32
    %17 = arith.cmpi eq, %c8_i32, %c0_i32 : i32
    %c1_i32 = arith.constant 1 : i32
    %18 = arith.select %17, %c1_i32, %c8_i32 : i32
    %19 = vector.broadcast %18 : i32 to vector<8x256xi32>
    %20 = arith.remsi %16, %19 : vector<8x256xi32>
    %c0_i32_12 = arith.constant 0 : i32
    %21 = vector.broadcast %c0_i32_12 : i32 to vector<8x256xi32>
    %22 = arith.cmpi ne, %20, %21 : vector<8x256xi32>
    %c0_i32_13 = arith.constant 0 : i32
    %23 = vector.broadcast %c0_i32_13 : i32 to vector<8x256xi32>
    %24 = arith.cmpi slt, %20, %23 : vector<8x256xi32>
    %c0_i32_14 = arith.constant 0 : i32
    %25 = arith.cmpi slt, %18, %c0_i32_14 : i32
    %26 = vector.broadcast %25 : i1 to vector<8x256xi1>
    %27 = vector.broadcast %26 : vector<8x256xi1> to vector<8x256xi1>
    %28 = arith.xori %24, %27 : vector<8x256xi1>
    %29 = arith.andi %28, %22 : vector<8x256xi1>
    %30 = vector.broadcast %18 : i32 to vector<8x256xi32>
    %31 = arith.addi %20, %30 : vector<8x256xi32>
    %32 = arith.select %29, %31, %20 : vector<8x256xi1>, vector<8x256xi32>
    %c0_i32_15 = arith.constant 0 : i32
    %33 = vector.broadcast %c0_i32_15 : i32 to vector<8x256xi32>
    %34 = arith.cmpi eq, %32, %33 : vector<8x256xi32>
    %c7_i32 = arith.constant 7 : i32
    %35 = vector.broadcast %c7_i32 : i32 to vector<8x256xi32>
    %36 = arith.cmpi eq, %32, %35 : vector<8x256xi32>
    %c1_i32_16 = arith.constant 1 : i32
    %37 = tpu.dynamic_rotate %15 by %c1_i32_16 dim 0 : vector<8x256xf32>, i32 -> vector<8x256xf32>
    %cst_17 = arith.constant 0.000000e+00 : f32
    %38 = vector.broadcast %cst_17 : f32 to vector<8x256xf32>
    %39 = arith.select %34, %38, %37 : vector<8x256xi1>, vector<8x256xf32>
    %40 = arith.truncf %39 : vector<8x256xf32> to vector<8x256xbf16>
    %c7_i32_18 = arith.constant 7 : i32
    %41 = tpu.dynamic_rotate %15 by %c7_i32_18 dim 0 : vector<8x256xf32>, i32 -> vector<8x256xf32>
    %cst_19 = arith.constant 0.000000e+00 : f32
    %42 = vector.broadcast %cst_19 : f32 to vector<8x256xf32>
    %43 = arith.select %36, %42, %41 : vector<8x256xi1>, vector<8x256xf32>
    %44 = arith.truncf %43 : vector<8x256xf32> to vector<8x256xbf16>
    %c0_20 = arith.constant 0 : index
    %c0_21 = arith.constant 0 : index
    %45 = vector.load %arg6[%c0_20, %c0_21] : memref<768x256xbf16, #tpu.memory_space<vmem>>, vector<256x256xbf16>
    %cst_22 = arith.constant dense<0.000000e+00> : vector<8x256xf32>
    %46 = tpu.matmul %40, %45, %cst_22 {dimension_numbers = #tpu.dot_dimension_numbers<[1], [0], [0], [1], [0, 0, 1, 1], [], []>} : vector<8x256xbf16>, vector<256x256xbf16>, vector<8x256xf32> -> vector<8x256xf32>
    %47 = arith.truncf %15 : vector<8x256xf32> to vector<8x256xbf16>
    %c256 = arith.constant 256 : index
    %c0_23 = arith.constant 0 : index
    %48 = vector.load %arg6[%c256, %c0_23] : memref<768x256xbf16, #tpu.memory_space<vmem>>, vector<256x256xbf16>
    %cst_24 = arith.constant dense<0.000000e+00> : vector<8x256xf32>
    %49 = tpu.matmul %47, %48, %cst_24 {dimension_numbers = #tpu.dot_dimension_numbers<[1], [0], [0], [1], [0, 0, 1, 1], [], []>} : vector<8x256xbf16>, vector<256x256xbf16>, vector<8x256xf32> -> vector<8x256xf32>
    %50 = arith.addf %46, %49 : vector<8x256xf32>
    %c512 = arith.constant 512 : index
    %c0_25 = arith.constant 0 : index
    %51 = vector.load %arg6[%c512, %c0_25] : memref<768x256xbf16, #tpu.memory_space<vmem>>, vector<256x256xbf16>
    %cst_26 = arith.constant dense<0.000000e+00> : vector<8x256xf32>
    %52 = tpu.matmul %44, %51, %cst_26 {dimension_numbers = #tpu.dot_dimension_numbers<[1], [0], [0], [1], [0, 0, 1, 1], [], []>} : vector<8x256xbf16>, vector<256x256xbf16>, vector<8x256xf32> -> vector<8x256xf32>
    %53 = arith.addf %50, %52 : vector<8x256xf32>
    %c0_27 = arith.constant 0 : index
    %c0_28 = arith.constant 0 : index
    %54 = vector.load %arg7[%c0_27, %c0_28] : memref<1x256xf32, #tpu.memory_space<vmem>>, vector<1x256xf32>
    %55 = vector.broadcast %54 : vector<1x256xf32> to vector<8x256xf32>
    %56 = arith.addf %53, %55 : vector<8x256xf32>
    %cst_29 = arith.constant 0.000000e+00 : f32
    %57 = vector.broadcast %cst_29 : f32 to vector<8x256xf32>
    %58 = arith.maximumf %56, %57 : vector<8x256xf32>
    %c1_i32_30 = arith.constant 1 : i32
    %59 = tpu.dynamic_rotate %58 by %c1_i32_30 dim 0 : vector<8x256xf32>, i32 -> vector<8x256xf32>
    %cst_31 = arith.constant 0.000000e+00 : f32
    %60 = vector.broadcast %cst_31 : f32 to vector<8x256xf32>
    %61 = arith.select %34, %60, %59 : vector<8x256xi1>, vector<8x256xf32>
    %62 = arith.truncf %61 : vector<8x256xf32> to vector<8x256xbf16>
    %c7_i32_32 = arith.constant 7 : i32
    %63 = tpu.dynamic_rotate %58 by %c7_i32_32 dim 0 : vector<8x256xf32>, i32 -> vector<8x256xf32>
    %cst_33 = arith.constant 0.000000e+00 : f32
    %64 = vector.broadcast %cst_33 : f32 to vector<8x256xf32>
    %65 = arith.select %36, %64, %63 : vector<8x256xi1>, vector<8x256xf32>
    %66 = arith.truncf %65 : vector<8x256xf32> to vector<8x256xbf16>
    %c0_34 = arith.constant 0 : index
    %c0_35 = arith.constant 0 : index
    %67 = vector.load %arg8[%c0_34, %c0_35] : memref<768x128xbf16, #tpu.memory_space<vmem>>, vector<256x128xbf16>
    %cst_36 = arith.constant dense<0.000000e+00> : vector<8x128xf32>
    %68 = tpu.matmul %62, %67, %cst_36 {dimension_numbers = #tpu.dot_dimension_numbers<[1], [0], [0], [1], [0, 0, 1, 1], [], []>} : vector<8x256xbf16>, vector<256x128xbf16>, vector<8x128xf32> -> vector<8x128xf32>
    %69 = arith.truncf %58 : vector<8x256xf32> to vector<8x256xbf16>
    %c256_37 = arith.constant 256 : index
    %c0_38 = arith.constant 0 : index
    %70 = vector.load %arg8[%c256_37, %c0_38] : memref<768x128xbf16, #tpu.memory_space<vmem>>, vector<256x128xbf16>
    %cst_39 = arith.constant dense<0.000000e+00> : vector<8x128xf32>
    %71 = tpu.matmul %69, %70, %cst_39 {dimension_numbers = #tpu.dot_dimension_numbers<[1], [0], [0], [1], [0, 0, 1, 1], [], []>} : vector<8x256xbf16>, vector<256x128xbf16>, vector<8x128xf32> -> vector<8x128xf32>
    %72 = arith.addf %68, %71 : vector<8x128xf32>
    %c512_40 = arith.constant 512 : index
    %c0_41 = arith.constant 0 : index
    %73 = vector.load %arg8[%c512_40, %c0_41] : memref<768x128xbf16, #tpu.memory_space<vmem>>, vector<256x128xbf16>
    %cst_42 = arith.constant dense<0.000000e+00> : vector<8x128xf32>
    %74 = tpu.matmul %66, %73, %cst_42 {dimension_numbers = #tpu.dot_dimension_numbers<[1], [0], [0], [1], [0, 0, 1, 1], [], []>} : vector<8x256xbf16>, vector<256x128xbf16>, vector<8x128xf32> -> vector<8x128xf32>
    %75 = arith.addf %72, %74 : vector<8x128xf32>
    %c0_43 = arith.constant 0 : index
    %c0_44 = arith.constant 0 : index
    %76 = vector.load %arg9[%c0_43, %c0_44] : memref<1x128xf32, #tpu.memory_space<vmem>>, vector<1x128xf32>
    %77 = vector.broadcast %76 : vector<1x128xf32> to vector<8x128xf32>
    %78 = arith.addf %75, %77 : vector<8x128xf32>
    %79 = vector.shape_cast %78 : vector<8x128xf32> to vector<1x8x128xf32>
    %cst_45 = arith.constant dense<0xFF800000> : vector<1x128xf32>
    %80 = vector.multi_reduction <maximumf>, %79, %cst_45 [1] : vector<1x8x128xf32> to vector<1x128xf32>
    %81 = arith.truncf %80 : vector<1x128xf32> to vector<1x128xbf16>
    %c0_46 = arith.constant 0 : index
    %c0_47 = arith.constant 0 : index
    %82 = vector.load %arg10[%c0_46, %c0_47] : memref<128x128xbf16, #tpu.memory_space<vmem>>, vector<128x128xbf16>
    %cst_48 = arith.constant dense<0.000000e+00> : vector<1x128xf32>
    %83 = tpu.matmul %81, %82, %cst_48 {dimension_numbers = #tpu.dot_dimension_numbers<[1], [0], [0], [1], [0, 0, 1, 1], [], []>} : vector<1x128xbf16>, vector<128x128xbf16>, vector<1x128xf32> -> vector<1x128xf32>
    %c0_49 = arith.constant 0 : index
    %c0_50 = arith.constant 0 : index
    %84 = vector.load %arg11[%c0_49, %c0_50] : memref<1x128xf32, #tpu.memory_space<vmem>>, vector<1x128xf32>
    %85 = arith.addf %83, %84 : vector<1x128xf32>
    %86 = tpu.iota {dimensions = array<i32: 1>} : vector<1x128xi32>
    %c4_i32 = arith.constant 4 : i32
    %87 = vector.broadcast %c4_i32 : i32 to vector<1x128xi32>
    %88 = arith.cmpi eq, %86, %87 : vector<1x128xi32>
    %89 = arith.negf %85 : vector<1x128xf32>
    %90 = math.exp %89 : vector<1x128xf32>
    %cst_51 = arith.constant 1.000000e+00 : f32
    %91 = vector.broadcast %cst_51 : f32 to vector<1x128xf32>
    %92 = arith.addf %91, %90 : vector<1x128xf32>
    %93 = arith.divf %91, %92 : vector<1x128xf32>
    %94 = arith.select %88, %93, %85 : vector<1x128xi1>, vector<1x128xf32>
    %c0_52 = arith.constant 0 : index
    %c0_53 = arith.constant 0 : index
    %c0_54 = arith.constant 0 : index
    %95 = vector.load %arg12[%c0_52, %c0_53, %c0_54] : memref<1x1x128xf32, #tpu.memory_space<vmem>>, vector<1x1x128xf32>
    %96 = vector.shape_cast %95 : vector<1x1x128xf32> to vector<1x128xf32>
    %97 = vector.shape_cast %94 : vector<1x128xf32> to vector<1x1x128xf32>
    tpu.vector_store %arg12[%c0_52, %c0_53, %c0_54], %97 {strides = array<i32>} : memref<1x1x128xf32, #tpu.memory_space<vmem>>, vector<1x1x128xf32>,
    return
  }
  func.func @transform_0(%arg0: i32) -> (i32, i32, i32) {
    %c0_i32 = arith.constant 0 : i32
    %c0_i32_0 = arith.constant 0 : i32
    %c0_i32_1 = arith.constant 0 : i32
    return %arg0, %c0_i32, %c0_i32_0 : i32, i32, i32
  }
  func.func @transform_1(%arg0: i32) -> (i32, i32) {
    %c0_i32 = arith.constant 0 : i32
    %c0_i32_0 = arith.constant 0 : i32
    %c0_i32_1 = arith.constant 0 : i32
    return %c0_i32, %c0_i32_0 : i32, i32
  }
  func.func @transform_2(%arg0: i32) -> (i32, i32) {
    %c0_i32 = arith.constant 0 : i32
    %c0_i32_0 = arith.constant 0 : i32
    %c0_i32_1 = arith.constant 0 : i32
    return %c0_i32, %c0_i32_0 : i32, i32
  }
  func.func @transform_3(%arg0: i32) -> (i32, i32) {
    %c0_i32 = arith.constant 0 : i32
    %c0_i32_0 = arith.constant 0 : i32
    %c0_i32_1 = arith.constant 0 : i32
    return %c0_i32, %c0_i32_0 : i32, i32
  }
  func.func @transform_4(%arg0: i32) -> (i32, i32) {
    %c0_i32 = arith.constant 0 : i32
    %c0_i32_0 = arith.constant 0 : i32
    %c0_i32_1 = arith.constant 0 : i32
    return %c0_i32, %c0_i32_0 : i32, i32
  }
  func.func @transform_5(%arg0: i32) -> (i32, i32) {
    %c0_i32 = arith.constant 0 : i32
    %c0_i32_0 = arith.constant 0 : i32
    %c0_i32_1 = arith.constant 0 : i32
    return %c0_i32, %c0_i32_0 : i32, i32
  }
  func.func @transform_6(%arg0: i32) -> (i32, i32) {
    %c0_i32 = arith.constant 0 : i32
    %c0_i32_0 = arith.constant 0 : i32
    %c0_i32_1 = arith.constant 0 : i32
    return %c0_i32, %c0_i32_0 : i32, i32
  }
  func.func @transform_7(%arg0: i32) -> (i32, i32) {
    %c0_i32 = arith.constant 0 : i32
    %c0_i32_0 = arith.constant 0 : i32
    %c0_i32_1 = arith.constant 0 : i32
    return %c0_i32, %c0_i32_0 : i32, i32
  }
  func.func @transform_8(%arg0: i32) -> (i32, i32) {
    %c0_i32 = arith.constant 0 : i32
    %c0_i32_0 = arith.constant 0 : i32
    %c0_i32_1 = arith.constant 0 : i32
    return %c0_i32, %c0_i32_0 : i32, i32
  }
  func.func @transform_9(%arg0: i32) -> (i32, i32) {
    %c0_i32 = arith.constant 0 : i32
    %c0_i32_0 = arith.constant 0 : i32
    %c0_i32_1 = arith.constant 0 : i32
    return %c0_i32, %c0_i32_0 : i32, i32
  }
  func.func @transform_10(%arg0: i32) -> (i32, i32) {
    %c0_i32 = arith.constant 0 : i32
    %c0_i32_0 = arith.constant 0 : i32
    %c0_i32_1 = arith.constant 0 : i32
    return %c0_i32, %c0_i32_0 : i32, i32
  }
  func.func @transform_11(%arg0: i32) -> (i32, i32, i32) {
    %c0_i32 = arith.constant 0 : i32
    %c0_i32_0 = arith.constant 0 : i32
    %c0_i32_1 = arith.constant 0 : i32
    return %arg0, %c0_i32, %c0_i32_0 : i32, i32, i32
  }
}

</mosaic_0001>

<bundles_post_ra>
// kernel: tpu_custom_call.1
= control target key start
LH: loop header
LB: loop body
LE: loop exit
PB: predicated region body
PF: predicated region fallthrough
CT: control target
= control target key end

     0   :  { %s11397_s0 = inlined_call_operand.hbm [shape: f32[2,8,2048], index: 0, kind: input, shape index: {}]   ;;  %s11398_s1 = inlined_call_operand.hbm [shape: bf16[2048,512], index: 1, kind: input, shape index: {}]   ;;  %s11399_s2 = inlined_call_operand.hbm [shape: f32[1,512], index: 2, kind: input, shape index: {}]   ;;  %s11400_s3 = inlined_call_operand.hbm [shape: bf16[512,256], index: 3, kind: input, shape index: {}]   ;;  %s11401_s4 = inlined_call_operand.hbm [shape: f32[1,256], index: 4, kind: input, shape index: {}]   ;;  %s11402_s5 = inlined_call_operand.hbm [shape: bf16[768,256], index: 5, kind: input, shape index: {}]   ;;  %s11403_s6 = inlined_call_operand.hbm [shape: f32[1,256], index: 6, kind: input, shape index: {}]   ;;  %s11404_s7 = inlined_call_operand.hbm [shape: bf16[768,128], index: 7, kind: input, shape index: {}]   ;;  %s11405_s8 = inlined_call_operand.hbm [shape: f32[1,128], index: 8, kind: input, shape index: {}]   ;;  %s11406_s9 = inlined_call_operand.hbm [shape: bf16[128,128], index: 9, kind: input, shape index: {}]   ;;  %s11407_s10 = inlined_call_operand.hbm [shape: f32[1,128], index: 10, kind: input, shape index: {}]   ;;  %s11408_s11 = inlined_call_operand.hbm [shape: f32[2,1,128], index: 11, kind: output, shape index: {}]  }
   0x1   :  { %11411 = sst [smem:[#allocation29_spill]] %s11398_s1 }
   0x2   :  { %11412 = sst [smem:[#allocation30_spill]] %s11399_s2 }
   0x3   :  { %11413 = sst [smem:[#allocation31_spill]] %s11400_s3 }
   0x4   :  { %11414 = sst [smem:[#allocation32_spill]] %s11401_s4 }
   0x5   :  { %11415 = sst [smem:[#allocation33_spill]] %s11408_s11 }
   0x6   :  { %16 = vsyncpa [#allocation3], 0 }
   0x7   :  { %18 = vsyncpa [#allocation3 + $0x1], 0 }
   0x8   :  { %19 = vsyncpa [#allocation6], 0 }
   0x9   :  { %20 = vsyncpa [#allocation9], 0 }
   0xa   :  { %21 = vsyncpa [#allocation12], 0 }
   0xb   :  { %22 = vsyncpa [#allocation15], 0 }
   0xc   :  { %23 = vsyncpa [#allocation18], 0 }
   0xd   :  { %24 = vsyncpa [#allocation4], 0 }
   0xe   :  { %26 = vsyncpa [#allocation4 + $0x1], 0  ;;  %s10935_s17 = smov 0   ;;  %s10937_s18 = smov 0  }
   0xf   :  { %s10939_s19 = smov 0   ;;  %s10941_s20 = smov 0  }
  0x10 LB: > { %s11416_s1 = sld [smem:[#allocation29_spill]]  ;;  %s10959_s24 = sadd.s32 4294967295, %s10857_s20   ;;  %s10857_s20 = sphi %s10941_s20, %s11438_s20   ;;  %s10853_s19 = sphi %s10939_s19, %s11437_s19   ;;  %s10849_s18 = sphi %s10937_s18, %s11436_s18   ;;  %s10845_s17 = sphi %s10935_s17, %s11435_s17  }
  0x11   : > { %p6547_p0 = scmp.ge.s32.totalorder %s10857_s20, 1  ;;  %p53_p1 = scmp.eq.s32.totalorder %s10959_s24, 0 }
  0x12   : > { %p299_p2 = scmp.lt.s32.totalorder %s10857_s20, 3  ;;  %s10859_s26 = smov [#allocation5]  }
  0x13   : > { %s312_s27 = sshll.u32 %s10859_s26, 4  ;;  %s11419_s3 = sld [smem:[#allocation31_spill]]  ;;  %s313_s27 = int_to_ptr.vmem [resolvable:$true] %s312_s27 }
  0x14   : > { %p10964_p3 = pnand %p6547_p0, %p299_p2  ;;  %s10860_s13 = smov [#allocation8]  }
  0x15   : > { %s338_s14 = sshll.u32 %s10860_s13, 4  ;;  %s10861_s15 = smov 256   ;;  %s339_s14 = int_to_ptr.vmem [resolvable:$true] %s338_s14 }
  0x16   : > { %s310_s23 = sshll.u32 %s11416_s1, 4  ;;  %p10324_p4 = pneg %p10964_p3  ;;  %s311_s23 = int_to_ptr.hbm [resolvable:$true] %s310_s23 }
  0x17   : > { %s11417_s25 = scalar_select %p10964_p3, 1, 0 }
  0x18   : > { %p10976_p6 = pnand %p10324_p4, %p53_p1  ;;  %s10862_s16 = smov 16  }
  0x19   : > { %11418 = sst [smem:[#allocation28_spill]] %s11417_s25  ;;  %s336_s30 = sshll.u32 %s11419_s3, 4  ;;  %s337_s30 = int_to_ptr.hbm [resolvable:$true] %s336_s30 }
  0x1a   : > { %10327 = dma.hbm_to_vmem [thread:$0]  (!%p10976_p6), %s311_s23, 65536, %s313_s27, [#allocation6], %s10861_s15, %s10861_s15, %s10862_s16  }
  0x1b   : > { %s10863_s21 = smov 128   ;;  %s10864_s22 = smov 8  }
  0x1c   : > { %10333 = dma.hbm_to_vmem [thread:$0]  (!%p10976_p6), %s337_s30, 8192, %s339_s14, [#allocation9], %s10863_s21, %s10863_s21, %s10864_s22  }
  0x1d   : > { %s362_s29 = sshll.u32 %s11402_s5, 4  ;;  %s10865_s1 = smov [#allocation11]   ;;  %s363_s29 = int_to_ptr.hbm [resolvable:$true] %s362_s29 }
  0x1e   : > { %s364_s3 = sshll.u32 %s10865_s1, 4  ;;  %s388_s25 = sshll.u32 %s11404_s7, 4  ;;  %s365_s3 = int_to_ptr.vmem [resolvable:$true] %s364_s3  ;;  %s389_s25 = int_to_ptr.hbm [resolvable:$true] %s388_s25 }
  0x1f   : > { %10339 = dma.hbm_to_vmem [thread:$0]  (!%p10976_p6), %s363_s29, 12288, %s365_s3, [#allocation12], %s10863_s21, %s10863_s21, %s10864_s22  }
  0x20   : > { %s10866_s23 = smov [#allocation14]   ;;  %s10867_s30 = smov 64  }
  0x21   : > { %s390_s27 = sshll.u32 %s10866_s23, 4  ;;  %s10868_s14 = smov 4   ;;  %s391_s27 = int_to_ptr.vmem [resolvable:$true] %s390_s27 }
  0x22   : > { %10345 = dma.hbm_to_vmem [thread:$0]  (!%p10976_p6), %s389_s25, 6144, %s391_s27, [#allocation15], %s10867_s30, %s10867_s30, %s10868_s14  }
  0x23   : > { %s414_s1 = sshll.u32 %s11406_s9, 4  ;;  %s10869_s26 = smov [#allocation17]   ;;  %s415_s1 = int_to_ptr.hbm [resolvable:$true] %s414_s1 }
  0x24   : > { %s416_s11 = sshll.u32 %s10869_s26, 4  ;;  %s11421_s2 = sld [smem:[#allocation30_spill]]  ;;  %s417_s11 = int_to_ptr.vmem [resolvable:$true] %s416_s11 }
  0x25   : > { %10351 = dma.hbm_to_vmem [thread:$0]  (!%p10976_p6), %s415_s1, 1024, %s417_s11, [#allocation18], %s10867_s30, %s10867_s30, %s10868_s14  }
  0x26   : > { %s10870_s22 = smov [#allocation7]   ;;  %s11422_s4 = sld [smem:[#allocation32_spill]] }
  0x27   : > { %s327_s29 = sshll.u32 %s10870_s22, 4  ;;  %s377_s16 = sshll.u32 %s11403_s6, 4  ;;  %s328_s29 = int_to_ptr.vmem [resolvable:$true] %s327_s29  ;;  %s378_s16 = int_to_ptr.hbm [resolvable:$true] %s377_s16 }
  0x28   : > { %s10871_s26 = smov [#allocation10]   ;;  %s10872_s30 = smov [#allocation13]  }
  0x29   : > { %s353_s28 = sshll.u32 %s10871_s26, 4  ;;  %s379_s14 = sshll.u32 %s10872_s30, 4  ;;  %s354_s28 = int_to_ptr.vmem [resolvable:$true] %s353_s28  ;;  %s380_s14 = int_to_ptr.vmem [resolvable:$true] %s379_s14 }
  0x2a   : > { %s325_s21 = sshll.u32 %s11421_s2, 4  ;;  %s403_s3 = sshll.u32 %s11405_s8, 4  ;;  %s326_s21 = int_to_ptr.hbm [resolvable:$true] %s325_s21  ;;  %s404_s3 = int_to_ptr.hbm [resolvable:$true] %s403_s3 }
  0x2b   : > { %10330 = dma.hbm_to_vmem [thread:$0]  (!%p10976_p6), %s326_s21, 64, %s328_s29, [#allocation6]  }
  0x2c   : > { %s351_s23 = sshll.u32 %s11422_s4, 4  ;;  %s429_s29 = sshll.u32 %s11407_s10, 4  ;;  %s352_s23 = int_to_ptr.hbm [resolvable:$true] %s351_s23  ;;  %s430_s29 = int_to_ptr.hbm [resolvable:$true] %s429_s29 }
  0x2d   : > { %10336 = dma.hbm_to_vmem [thread:$0]  (!%p10976_p6), %s352_s23, 32, %s354_s28, [#allocation9]  }
  0x2e   : > { %10342 = dma.hbm_to_vmem [thread:$0]  (!%p10976_p6), %s378_s16, 32, %s380_s14, [#allocation12]  }
  0x2f   : > { %s10873_s13 = smov [#allocation16]   ;;  %s10874_s23 = smov [#allocation19]  }
  0x30   : > { %s405_s25 = sshll.u32 %s10873_s13, 4  ;;  %s431_s27 = sshll.u32 %s10874_s23, 4  ;;  %s406_s25 = int_to_ptr.vmem [resolvable:$true] %s405_s25  ;;  %s432_s27 = int_to_ptr.vmem [resolvable:$true] %s431_s27 }
  0x31   : > { %10348 = dma.hbm_to_vmem [thread:$0]  (!%p10976_p6), %s404_s3, 16, %s406_s25, [#allocation15]  }
  0x32   : > { %10354 = dma.hbm_to_vmem [thread:$0]  (!%p10976_p6), %s430_s29, 16, %s432_s27, [#allocation18]  }
  0x33   : > { %s6546_s15 = sadd.s32 4294967294, %s10857_s20   ;;  %s11026_s16 = sadd.s32 1, %s10857_s20  }
  0x34   : > { %s36_s26 = ssub.s32 %s10857_s20, %s11026_s16  ;;  %s39_s28 = sadd.s32 1, %s10853_s19 }
  0x35   : > { %p37_p7 = scmp.eq.s32.totalorder %s36_s26, 0  ;;  %p46_p8 = scmp.ne.s32.totalorder %s10853_s19, %s10849_s18 }
  0x36   : > { %p47_p9 = scmp.eq.s32.totalorder %s10857_s20, 0  ;;  %p52_p10 = scmp.ne.s32.totalorder %s10849_s18, %s10845_s17 }
  0x37   : > { %s11037_s30 = scalar_select %p37_p7, %s10853_s19, %s39_s28  }
  0x38   : > { %p11039_p11 = por %p47_p9, %p46_p8  ;;  %p11045_p12 = por %p53_p1, %p52_p10 }
  0x39   : > { %p286_p13 = scmp.eq.s32.totalorder %s10959_s24, 1  ;;  %p292_p0 = scmp.eq.s32.totalorder %s6546_s15, 1 }
  0x3a   : > { %p10373_p2 = scmp.lt.s32.totalorder %s10857_s20, 2  ;;  %s442_s1 = sand.u32 1, %s10853_s19  }
  0x3b   : > { %p11052_p4 = por %p286_p13, %p46_p8  ;;  %p11056_p6 = por %p292_p0, %p52_p10 }
  0x3c   : > { %s6559_s21 = sshll.u32 %s442_s1, 7  ;;  %s9549_s22 = sshll.u32 %s10857_s20, 7 }
  0x3d   : > { %s451_s25 = scalar_lea.hbm %s11397_s0, %s9549_s22  ;;  %s446_s23 = scalar_lea.vmem [#allocation2], %s6559_s21 }
  0x3e   : > { %s455_s27 = sshll.u32 %s446_s23, 4  ;;  %s453_s26 = sshll.u32 %s451_s25, 4  ;;  %s456_s27 = int_to_ptr.vmem [resolvable:$true] %s455_s27  ;;  %s454_s26 = int_to_ptr.hbm [resolvable:$true] %s453_s26 }
  0x3f   : > { %p11066_p7 = pnand %p10373_p2, %p11039_p11  ;;  %s443_s28 = scalar_lea.sflag [#allocation3], %s442_s1 }
  0x40   : > { %s10741_s2 = sshra.s32 %s454_s26, 4  ;;  %s10748_s29 = scalar_lea.hbm %s11397_s0, 256  ;;  %s10742_s2 = int_to_ptr.hbm [resolvable:$true] %s10741_s2 }
  0x41   : > { %s10743_s4 = scalar_lea.hbm %s10742_s2, 128  ;;  %p10745_p9 = pneg %p11066_p7 }
  0x42   : > { %p10744_p8 = scmp.ne.s32.totalorder %s10742_s2, %s10743_s4  ;;  %p10749_p11 = scmp.lt.s32.totalorder %s10742_s2, %s11397_s0 }
  0x43   : > { %p10750_p0 = scmp.lt.s32.totalorder %s10748_s29, %s10743_s4 }
  0x44   : > { %p10746_p10 = pnand %p10745_p9, %p10744_p8 }
  0x45   : > { %p10751_p2 = por %p10750_p0, %p10749_p11 }
  0x46   : > { %p10747_p13 = pneg %p10746_p10 }
  0x48   : > { %p10752_p5 = pnand %p10751_p2, %p10747_p13 }
  0x4a   : > { %10755 = shalt.err (!%p10752_p5)
}
  0x4b   : > { %10358 = dma.hbm_to_vmem [thread:$0]  (!%p11066_p7), %s454_s26, 2048, %s456_s27, %s443_s28  }
  0x4c   : > { %464 = sbr.rel (%p10964_p3) target bundleno = 1407 (0x57f), region = 64  ;;  %s11083_s25 = sand.u32 (!%p10964_p3), 1, %s10849_s18  }
  0x4d   : > { %s6563_s23 = sshll.u32 (!%p10964_p3), %s11083_s25, 7  ;;  %s467_s21 = scalar_lea.sflag (!%p10964_p3), [#allocation3], %s11083_s25 }
  0x4e   : > { %s11087_s22 = scalar_lea.vmem (!%p10964_p3), [#allocation2], %s6563_s23 }
  0x51   : > { %10816 = dma.done.wait (%p11045_p12), %s467_s21, 2048  }
  0x52   : > { %10818 = vsyncadd (%p11045_p12), %s467_s21, 4294965248 }
  0x53   : > { %10820 = dma.done.wait (%p53_p1), [#allocation6], 65600  }
  0x54   : > { %10822 = vsyncadd (%p53_p1), [#allocation6], 4294901696 }
  0x55   : > { %10824 = dma.done.wait (%p53_p1), [#allocation9], 8224  }
  0x56   : > { %10826 = vsyncadd (%p53_p1), [#allocation9], 4294959072 }
  0x57   : > { %10828 = dma.done.wait (%p53_p1), [#allocation12], 12320  }
  0x58   : > { %10830 = vsyncadd (%p53_p1), [#allocation12], 4294954976 }
  0x59   : > { %10832 = dma.done.wait (%p53_p1), [#allocation15], 6160  }
  0x5a   : > { %10834 = vsyncadd (%p53_p1), [#allocation15], 4294961136 }
  0x5b   : > { %10836 = dma.done.wait (%p53_p1), [#allocation18], 1040  }
  0x5c   : > { %10838 = vsyncadd (%p53_p1), [#allocation18], 4294966256  ;;  %v6688_v0 = vld [vmem:[#allocation5 + $0xe0] sm:$0xf]  ;;  %v9580_v1 = vld [vmem:[#allocation5 + $0xec] sm:$0xf0] }
  0x5d   : > { %v6816_v2 = vld [vmem:[#allocation5 + $0x1e0] sm:$0xf]  ;;  %v6689_v3 = vor.u32 %v9580_v1, %v6688_v0  ;;  %v9612_v4 = vld [vmem:[#allocation5 + $0x1ec] sm:$0xf0]  ;;  %s11433_s12 = sld [smem:[#allocation33_spill]]  ;;  %s558_s26 = scalar_lea.vmem [#allocation20], %s11083_s25 }
  0x5e   : > { %v6944_v5 = vld [vmem:[#allocation5 + $0x2e0] sm:$0xf]  ;;  %v9644_v6 = vld [vmem:[#allocation5 + $0x2ec] sm:$0xf0]  ;;  %v6817_v7 = vor.u32 %v9612_v4, %v6816_v2  ;;  %s6383_s15 = sshll.u32 %s558_s26, 4  ;;  %s6384_s15 = int_to_ptr.vmem [resolvable:$true] %s6383_s15 }
  0x5f   : > { %v6945_v8 = vor.u32 %v9644_v6, %v6944_v5  ;;  %v7072_v9 = vld [vmem:[#allocation5 + $0x3e0] sm:$0xf]  ;;  %v9676_v10 = vld [vmem:[#allocation5 + $0x3ec] sm:$0xf0]  ;;  %3673 = vmatpush.bf16.msra.mxu0 %v6689_v3 }
  0x60   : > { %v6672_v11 = vld [vmem:[#allocation5 + $0xc0] sm:$0xf]  ;;  %v7073_v12 = vor.u32 %v9676_v10, %v7072_v9  ;;  %v9576_v13 = vld [vmem:[#allocation5 + $0xcc] sm:$0xf0]  ;;  %3686 = vmatpush.bf16.msra.mxu1 %v6817_v7 }
  0x61   : > { %v6800_v14 = vld [vmem:[#allocation5 + $0x1c0] sm:$0xf]  ;;  %v9608_v15 = vld [vmem:[#allocation5 + $0x1cc] sm:$0xf0]  ;;  %3699 = vmatpush.bf16.msra.mxu2 %v6945_v8  ;;  %v6673_v16 = vor.u32 %v9576_v13, %v6672_v11 }
  0x62   : > { %v6801_v17 = vor.u32 %v9608_v15, %v6800_v14  ;;  %v6928_v18 = vld [vmem:[#allocation5 + $0x2c0] sm:$0xf]  ;;  %v9640_v19 = vld [vmem:[#allocation5 + $0x2cc] sm:$0xf0]  ;;  %3712 = vmatpush.bf16.msra.mxu3 %v7073_v12 }
  0x63   : > { %v7056_v20 = vld [vmem:[#allocation5 + $0x3c0] sm:$0xf]  ;;  %v6929_v21 = vor.u32 %v9640_v19, %v6928_v18  ;;  %v9672_v22 = vld [vmem:[#allocation5 + $0x3cc] sm:$0xf0]  ;;  %3674 = vmatpush.bf16.msra.mxu0 %v6673_v16  ;;  %s6381_s27 = scalar_lea.hbm %s11433_s12, %s10959_s24  ;;  %s6373_s24 = scalar_lea.sflag [#allocation4], %s11083_s25 }
  0x64   : > { %v6656_v23 = vld [vmem:[#allocation5 + $0xa0] sm:$0xf]  ;;  %v9572_v24 = vld [vmem:[#allocation5 + $0xac] sm:$0xf0]  ;;  %v7057_v25 = vor.u32 %v9672_v22, %v7056_v20  ;;  %3687 = vmatpush.bf16.msra.mxu1 %v6801_v17  ;;  %s6385_s28 = sshll.u32 %s6381_s27, 4  ;;  %s10791_s23 = scalar_lea.hbm %s11433_s12, 2  ;;  %s6386_s28 = int_to_ptr.hbm [resolvable:$true] %s6385_s28 }
  0x65   : > { %v6784_v26 = vld [vmem:[#allocation5 + $0x1a0] sm:$0xf]  ;;  %v9604_v27 = vld [vmem:[#allocation5 + $0x1ac] sm:$0xf0]  ;;  %v6657_v29 = vor.u32 %v9572_v24, %v6656_v23  ;;  %3700 = vmatpush.bf16.msra.mxu2 %v6929_v21  ;;  %s10785_s29 = sshra.s32 %s6386_s28, 4  ;;  %s10786_s29 = int_to_ptr.hbm [resolvable:$true] %s10785_s29 }
  0x66   : > { %v6912_v28 = vld [vmem:[#allocation5 + $0x2a0] sm:$0xf]  ;;  %v9636_v30 = vld [vmem:[#allocation5 + $0x2ac] sm:$0xf0]  ;;  %v6785_v33 = vor.u32 %v9604_v27, %v6784_v26  ;;  %3713 = vmatpush.bf16.msra.mxu3 %v7057_v25  ;;  %s10787_s13 = scalar_lea.hbm %s10786_s29, 1  ;;  %p10792_p12 = scmp.lt.s32.totalorder %s10786_s29, %s11433_s12 }
  0x67   : > { %v7040_v31 = vld [vmem:[#allocation5 + $0x3a0] sm:$0xf]  ;;  %v9668_v32 = vld [vmem:[#allocation5 + $0x3ac] sm:$0xf0]  ;;  %v6913_v34 = vor.u32 %v9636_v30, %v6912_v28  ;;  %3675 = vmatpush.bf16.msra.mxu0 %v6657_v29  ;;  %p10788_p1 = scmp.ne.s32.totalorder %s10786_s29, %s10787_s13  ;;  %p10793_p7 = scmp.lt.s32.totalorder %s10791_s23, %s10787_s13 }
  0x68   : > { %v6640_v35 = vld [vmem:[#allocation5 + $0x80] sm:$0xf]  ;;  %v9568_v36 = vld [vmem:[#allocation5 + $0x8c] sm:$0xf0]  ;;  %v7041_v38 = vor.u32 %v9668_v32, %v7040_v31  ;;  %3688 = vmatpush.bf16.msra.mxu1 %v6785_v33 }
  0x69   : > { %v6768_v37 = vld [vmem:[#allocation5 + $0x180] sm:$0xf]  ;;  %v9600_v39 = vld [vmem:[#allocation5 + $0x18c] sm:$0xf0]  ;;  %v6641_v44 = vor.u32 %v9568_v36, %v6640_v35  ;;  %3701 = vmatpush.bf16.msra.mxu2 %v6913_v34  ;;  %p10789_p3 = pnand %p10788_p1, %p11052_p4  ;;  %p10794_p8 = por %p10793_p7, %p10792_p12 }
  0x6a   : > { %v6896_v40 = vld [vmem:[#allocation5 + $0x280] sm:$0xf]  ;;  %v9632_v41 = vld [vmem:[#allocation5 + $0x28c] sm:$0xf0]  ;;  %v6769_v45 = vor.u32 %v9600_v39, %v6768_v37  ;;  %3714 = vmatpush.bf16.msra.mxu3 %v7041_v38 }
  0x6b   : > { %v7024_v42 = vld [vmem:[#allocation5 + $0x380] sm:$0xf]  ;;  %v9664_v43 = vld [vmem:[#allocation5 + $0x38c] sm:$0xf0]  ;;  %v6897_v46 = vor.u32 %v9632_v41, %v6896_v40  ;;  %3676 = vmatpush.bf16.msra.mxu0 %v6641_v44  ;;  %p10790_p5 = pneg %p10789_p3 }
  0x6c   : > { %v6624_v47 = vld [vmem:[#allocation5 + $0x60] sm:$0xf]  ;;  %v9564_v48 = vld [vmem:[#allocation5 + $0x6c] sm:$0xf0]  ;;  %v7025_v50 = vor.u32 %v9664_v43, %v7024_v42  ;;  %3689 = vmatpush.bf16.msra.mxu1 %v6769_v45 }
  0x6d   : > { %v6752_v49 = vld [vmem:[#allocation5 + $0x160] sm:$0xf]  ;;  %v9596_v51 = vld [vmem:[#allocation5 + $0x16c] sm:$0xf0]  ;;  %v6625_v56 = vor.u32 %v9564_v48, %v6624_v47  ;;  %3702 = vmatpush.bf16.msra.mxu2 %v6897_v46  ;;  %p10795_p9 = pnand %p10794_p8, %p10790_p5 }
  0x6e   : > { %v6880_v52 = vld [vmem:[#allocation5 + $0x260] sm:$0xf]  ;;  %v9628_v53 = vld [vmem:[#allocation5 + $0x26c] sm:$0xf0]  ;;  %v6753_v57 = vor.u32 %v9596_v51, %v6752_v49  ;;  %3715 = vmatpush.bf16.msra.mxu3 %v7025_v50 }
  0x6f   : > { %v7008_v54 = vld [vmem:[#allocation5 + $0x360] sm:$0xf]  ;;  %v9660_v55 = vld [vmem:[#allocation5 + $0x36c] sm:$0xf0]  ;;  %v6881_v58 = vor.u32 %v9628_v53, %v6880_v52  ;;  %3677 = vmatpush.bf16.msra.mxu0 %v6625_v56 }
  0x70   : > { %v6608_v59 = vld [vmem:[#allocation5 + $0x40] sm:$0xf]  ;;  %v9560_v60 = vld [vmem:[#allocation5 + $0x4c] sm:$0xf0]  ;;  %v7009_v62 = vor.u32 %v9660_v55, %v7008_v54  ;;  %3690 = vmatpush.bf16.msra.mxu1 %v6753_v57 }
  0x71   : > { %v6736_v61 = vld [vmem:[#allocation5 + $0x140] sm:$0xf]  ;;  %v9592_v63 = vld [vmem:[#allocation5 + $0x14c] sm:$0xf0]  ;;  %v6609_v4 = vor.u32 %v9560_v60, %v6608_v59  ;;  %3703 = vmatpush.bf16.msra.mxu2 %v6881_v58 }
  0x72   : > { %v6864_v0 = vld [vmem:[#allocation5 + $0x240] sm:$0xf]  ;;  %v9624_v1 = vld [vmem:[#allocation5 + $0x24c] sm:$0xf0]  ;;  %v6737_v5 = vor.u32 %v9592_v63, %v6736_v61  ;;  %3716 = vmatpush.bf16.msra.mxu3 %v7009_v62 }
  0x73   : > { %v6992_v2 = vld [vmem:[#allocation5 + $0x340] sm:$0xf]  ;;  %v9656_v3 = vld [vmem:[#allocation5 + $0x34c] sm:$0xf0]  ;;  %v6865_v6 = vor.u32 %v9624_v1, %v6864_v0  ;;  %3678 = vmatpush.bf16.msra.mxu0 %v6609_v4 }
  0x74   : > { %v6592_v7 = vld [vmem:[#allocation5 + $0x20] sm:$0xf]  ;;  %v9556_v8 = vld [vmem:[#allocation5 + $0x2c] sm:$0xf0]  ;;  %v6993_v10 = vor.u32 %v9656_v3, %v6992_v2  ;;  %3691 = vmatpush.bf16.msra.mxu1 %v6737_v5 }
  0x75   : > { %v6720_v9 = vld [vmem:[#allocation5 + $0x120] sm:$0xf]  ;;  %v9588_v11 = vld [vmem:[#allocation5 + $0x12c] sm:$0xf0]  ;;  %v6593_v16 = vor.u32 %v9556_v8, %v6592_v7  ;;  %3704 = vmatpush.bf16.msra.mxu2 %v6865_v6 }
  0x76   : > { %v6848_v12 = vld [vmem:[#allocation5 + $0x220] sm:$0xf]  ;;  %v9620_v13 = vld [vmem:[#allocation5 + $0x22c] sm:$0xf0]  ;;  %v6721_v19 = vor.u32 %v9588_v11, %v6720_v9  ;;  %3717 = vmatpush.bf16.msra.mxu3 %v6993_v10  ;;  %v562_v10 = vld [vmem:[%s11087_s22 + $0x18] sm:$0xff] }
  0x77   : > { %v6976_v14 = vld [vmem:[#allocation5 + $0x320] sm:$0xf]  ;;  %v9652_v15 = vld [vmem:[#allocation5 + $0x32c] sm:$0xf0]  ;;  %v6849_v20 = vor.u32 %v9620_v13, %v6848_v12  ;;  %3679 = vmatpush.bf16.msra.mxu0 %v6593_v16 }
  0x78   : > { %v6576_v17 = vld [vmem:[#allocation5] sm:$0xf]  ;;  %v9552_v18 = vld [vmem:[#allocation5 + $0xc] sm:$0xf0]  ;;  %v6977_v24 = vor.u32 %v9652_v15, %v6976_v14  ;;  %3692 = vmatpush.bf16.msra.mxu1 %v6721_v19  ;;  %v11120_v15 = vpack.c.bf16 %v562_v10, %v562_v10  ;;  %v560_v19 = vld [vmem:[%s11087_s22 + $0x8] sm:$0xff] }
  0x79   : > { %v6704_v21 = vld [vmem:[#allocation5 + $0x100] sm:$0xf]  ;;  %v9584_v22 = vld [vmem:[#allocation5 + $0x10c] sm:$0xf0]  ;;  %v6577_v31 = vor.u32 %v9552_v18, %v6576_v17  ;;  %3705 = vmatpush.bf16.msra.mxu2 %v6849_v20 }
  0x7a   : > { %v6832_v23 = vld [vmem:[#allocation5 + $0x200] sm:$0xf]  ;;  %v9616_v25 = vld [vmem:[#allocation5 + $0x20c] sm:$0xf0]  ;;  %v6705_v35 = vor.u32 %v9584_v22, %v6704_v21  ;;  %3718 = vmatpush.bf16.msra.mxu3 %v6977_v24 }
  0x7b   : > { %v6960_v26 = vld [vmem:[#allocation5 + $0x300] sm:$0xf]  ;;  %v9648_v27 = vld [vmem:[#allocation5 + $0x30c] sm:$0xf0]  ;;  %v6833_v36 = vor.u32 %v9616_v25, %v6832_v23  ;;  %3680 = vmatpush.bf16.msra.mxu0 %v6577_v31  ;;  %v11126_v25 = vpack.c.bf16 %v560_v19, %v560_v19 }
  0x7c   : > { %v7200_v28 = vld [vmem:[#allocation5 + $0x4e0] sm:$0xf]  ;;  %v9708_v29 = vld [vmem:[#allocation5 + $0x4ec] sm:$0xf0]  ;;  %v6961_v39 = vor.u32 %v9648_v27, %v6960_v26  ;;  %3693 = vmatpush.bf16.msra.mxu1 %v6705_v35 }
  0x7d   : > { %v7328_v30 = vld [vmem:[#allocation5 + $0x5e0] sm:$0xf]  ;;  %v9740_v32 = vld [vmem:[#allocation5 + $0x5ec] sm:$0xf0]  ;;  %v7201_v40 = vor.u32 %v9708_v29, %v7200_v28  ;;  %3706 = vmatpush.bf16.msra.mxu2 %v6833_v36 }
  0x7e   : > { %v7456_v33 = vld [vmem:[#allocation5 + $0x6e0] sm:$0xf]  ;;  %v9772_v34 = vld [vmem:[#allocation5 + $0x6ec] sm:$0xf0]  ;;  %v7329_v41 = vor.u32 %v9740_v32, %v7328_v30  ;;  %3719 = vmatpush.bf16.msra.mxu3 %v6961_v39 }
  0x7f   : > { %v7584_v37 = vld [vmem:[#allocation5 + $0x7e0] sm:$0xf]  ;;  %v9804_v38 = vld [vmem:[#allocation5 + $0x7ec] sm:$0xf0]  ;;  %v7457_v42 = vor.u32 %v9772_v34, %v7456_v33  ;;  %3725 = vmatpush.bf16.msrb.mxu0 %v7201_v40  ;;  %3694 = vmatmul.bf16.vlgmr.msra.gmra.mxu1 %v11126_v25 }
  0x80   : > { %v7184_v43 = vld [vmem:[#allocation5 + $0x4c0] sm:$0xf]  ;;  %v9704_v44 = vld [vmem:[#allocation5 + $0x4cc] sm:$0xf0]  ;;  %v7585_v46 = vor.u32 %v9804_v38, %v7584_v37  ;;  %3738 = vmatpush.bf16.msrb.mxu1 %v7329_v41 }
  0x81   : > { %v7312_v45 = vld [vmem:[#allocation5 + $0x5c0] sm:$0xf]  ;;  %v9736_v47 = vld [vmem:[#allocation5 + $0x5cc] sm:$0xf0]  ;;  %v7185_v52 = vor.u32 %v9704_v44, %v7184_v43  ;;  %3751 = vmatpush.bf16.msrb.mxu2 %v7457_v42  ;;  %3720 = vmatmul.bf16.vlgmr.msra.gmra.mxu3 %v11120_v15 }
  0x82   : > { %v7440_v48 = vld [vmem:[#allocation5 + $0x6c0] sm:$0xf]  ;;  %v9768_v49 = vld [vmem:[#allocation5 + $0x6cc] sm:$0xf0]  ;;  %v7313_v54 = vor.u32 %v9736_v47, %v7312_v45  ;;  %3764 = vmatpush.bf16.msrb.mxu3 %v7585_v46 }
  0x83   : > { %v7568_v50 = vld [vmem:[#allocation5 + $0x7c0] sm:$0xf]  ;;  %v9800_v51 = vld [vmem:[#allocation5 + $0x7cc] sm:$0xf0]  ;;  %v7441_v55 = vor.u32 %v9768_v49, %v7440_v48  ;;  %3726 = vmatpush.bf16.msrb.mxu0 %v7185_v52 }
  0x84   : > { %v7168_v53 = vld [vmem:[#allocation5 + $0x4a0] sm:$0xf]  ;;  %v9700_v56 = vld [vmem:[#allocation5 + $0x4ac] sm:$0xf0]  ;;  %v7569_v59 = vor.u32 %v9800_v51, %v7568_v50  ;;  %3739 = vmatpush.bf16.msrb.mxu1 %v7313_v54 }
  0x85   : > { %v7296_v57 = vld [vmem:[#allocation5 + $0x5a0] sm:$0xf]  ;;  %v9732_v58 = vld [vmem:[#allocation5 + $0x5ac] sm:$0xf0]  ;;  %v7169_v0 = vor.u32 %v9700_v56, %v7168_v53  ;;  %3752 = vmatpush.bf16.msrb.mxu2 %v7441_v55 }
  0x86   : > { %v7424_v60 = vld [vmem:[#allocation5 + $0x6a0] sm:$0xf]  ;;  %v9764_v61 = vld [vmem:[#allocation5 + $0x6ac] sm:$0xf0]  ;;  %v7297_v1 = vor.u32 %v9732_v58, %v7296_v57  ;;  %3765 = vmatpush.bf16.msrb.mxu3 %v7569_v59 }
  0x87   : > { %v7552_v62 = vld [vmem:[#allocation5 + $0x7a0] sm:$0xf]  ;;  %v9796_v63 = vld [vmem:[#allocation5 + $0x7ac] sm:$0xf0]  ;;  %v7425_v5 = vor.u32 %v9764_v61, %v7424_v60  ;;  %3727 = vmatpush.bf16.msrb.mxu0 %v7169_v0 }
  0x88   : > { %v7152_v2 = vld [vmem:[#allocation5 + $0x480] sm:$0xf]  ;;  %v561_v3 = vld [vmem:[%s11087_s22 + $0x10] sm:$0xff]  ;;  %v7553_v11 = vor.u32 %v9796_v63, %v7552_v62  ;;  %3740 = vmatpush.bf16.msrb.mxu1 %v7297_v1 }
  0x89   : > { %v559_v4 = vld [vmem:[%s11087_s22] sm:$0xff]  ;;  %v9696_v6 = vld [vmem:[#allocation5 + $0x48c] sm:$0xf0]  ;;  %v11115_v8 = vpack.c.bf16 %v561_v3, %v561_v3  ;;  %3753 = vmatpush.bf16.msrb.mxu2 %v7425_v5 }
  0x8a   : > { %v7280_v7 = vld [vmem:[#allocation5 + $0x580] sm:$0xf]  ;;  %v11117_v9 = vpack.c.bf16 %v559_v4, %v559_v4  ;;  %v9728_v12 = vld [vmem:[#allocation5 + $0x58c] sm:$0xf0]  ;;  %v7153_v18 = vor.u32 %v9696_v6, %v7152_v2  ;;  %3766 = vmatpush.bf16.msrb.mxu3 %v7553_v11 }
  0x8b   : > { %v7408_v13 = vld [vmem:[#allocation5 + $0x680] sm:$0xf]  ;;  %v9760_v14 = vld [vmem:[#allocation5 + $0x68c] sm:$0xf0]  ;;  %3707 = vmatmul.bf16.vlgmr.msra.gmra.mxu2 %v11115_v8  ;;  %v7281_v20 = vor.u32 %v9728_v12, %v7280_v7 }
  0x8c   : > { %v7536_v16 = vld [vmem:[#allocation5 + $0x780] sm:$0xf]  ;;  %v9792_v17 = vld [vmem:[#allocation5 + $0x78c] sm:$0xf0]  ;;  %3681 = vmatmul.bf16.vlgmr.msra.gmra.mxu0 %v11117_v9  ;;  %v7409_v21 = vor.u32 %v9760_v14, %v7408_v13 }
  0x8d   : > { %v7136_v22 = vld [vmem:[#allocation5 + $0x460] sm:$0xf]  ;;  %v9692_v23 = vld [vmem:[#allocation5 + $0x46c] sm:$0xf0]  ;;  %v7537_v26 = vor.u32 %v9792_v17, %v7536_v16  ;;  %3728 = vmatpush.bf16.msrb.mxu0 %v7153_v18  ;;  %3741 = vmatpush.bf16.msrb.mxu1 %v7281_v20 }
  0x8e   : > { %v7264_v24 = vld [vmem:[#allocation5 + $0x560] sm:$0xf]  ;;  %v9724_v27 = vld [vmem:[#allocation5 + $0x56c] sm:$0xf0]  ;;  %v7137_v32 = vor.u32 %v9692_v23, %v7136_v22  ;;  %3754 = vmatpush.bf16.msrb.mxu2 %v7409_v21  ;;  %v566_v23 = vld [vmem:[%s11087_s22 + $0x38] sm:$0xff] }
  0x8f   : > { %v7392_v28 = vld [vmem:[#allocation5 + $0x660] sm:$0xf]  ;;  %v9756_v29 = vld [vmem:[#allocation5 + $0x66c] sm:$0xf0]  ;;  %v7265_v33 = vor.u32 %v9724_v27, %v7264_v24  ;;  %3767 = vmatpush.bf16.msrb.mxu3 %v7537_v26 }
  0x90   : > { %v7520_v30 = vld [vmem:[#allocation5 + $0x760] sm:$0xf]  ;;  %v9788_v31 = vld [vmem:[#allocation5 + $0x76c] sm:$0xf0]  ;;  %v7393_v34 = vor.u32 %v9756_v29, %v7392_v28  ;;  %v564_v29 = vld [vmem:[%s11087_s22 + $0x28] sm:$0xff] }
  0x91   : > { %v7120_v35 = vld [vmem:[#allocation5 + $0x440] sm:$0xf]  ;;  %v9688_v36 = vld [vmem:[#allocation5 + $0x44c] sm:$0xf0]  ;;  %v7521_v38 = vor.u32 %v9788_v31, %v7520_v30  ;;  %3729 = vmatpush.bf16.msrb.mxu0 %v7137_v32  ;;  %3742 = vmatpush.bf16.msrb.mxu1 %v7265_v33 }
  0x92   : > { %v7248_v37 = vld [vmem:[#allocation5 + $0x540] sm:$0xf]  ;;  %v9720_v39 = vld [vmem:[#allocation5 + $0x54c] sm:$0xf0]  ;;  %v7121_v44 = vor.u32 %v9688_v36, %v7120_v35  ;;  %3755 = vmatpush.bf16.msrb.mxu2 %v7393_v34 }
  0x93   : > { %v7376_v40 = vld [vmem:[#allocation5 + $0x640] sm:$0xf]  ;;  %v9752_v41 = vld [vmem:[#allocation5 + $0x64c] sm:$0xf0]  ;;  %v7249_v45 = vor.u32 %v9720_v39, %v7248_v37  ;;  %3768 = vmatpush.bf16.msrb.mxu3 %v7521_v38  ;;  %v11137_v38 = vpack.c.bf16 %v566_v23, %v566_v23 }
  0x94   : > { %v7504_v42 = vld [vmem:[#allocation5 + $0x740] sm:$0xf]  ;;  %v9784_v43 = vld [vmem:[#allocation5 + $0x74c] sm:$0xf0]  ;;  %v7377_v46 = vor.u32 %v9752_v41, %v7376_v40  ;;  %v11139_v40 = vpack.c.bf16 %v564_v29, %v564_v29 }
  0x95   : > { %v7104_v47 = vld [vmem:[#allocation5 + $0x420] sm:$0xf]  ;;  %v9684_v48 = vld [vmem:[#allocation5 + $0x42c] sm:$0xf0]  ;;  %v7505_v50 = vor.u32 %v9784_v43, %v7504_v42  ;;  %3730 = vmatpush.bf16.msrb.mxu0 %v7121_v44  ;;  %3743 = vmatpush.bf16.msrb.mxu1 %v7249_v45 }
  0x96   : > { %v7232_v49 = vld [vmem:[#allocation5 + $0x520] sm:$0xf]  ;;  %v9716_v51 = vld [vmem:[#allocation5 + $0x52c] sm:$0xf0]  ;;  %v7105_v56 = vor.u32 %v9684_v48, %v7104_v47  ;;  %3756 = vmatpush.bf16.msrb.mxu2 %v7377_v46 }
  0x97   : > { %v7360_v52 = vld [vmem:[#allocation5 + $0x620] sm:$0xf]  ;;  %v9748_v53 = vld [vmem:[#allocation5 + $0x62c] sm:$0xf0]  ;;  %v7233_v59 = vor.u32 %v9716_v51, %v7232_v49  ;;  %3769 = vmatpush.bf16.msrb.mxu3 %v7505_v50 }
  0x98   : > { %v7488_v54 = vld [vmem:[#allocation5 + $0x720] sm:$0xf]  ;;  %v9780_v55 = vld [vmem:[#allocation5 + $0x72c] sm:$0xf0]  ;;  %v7361_v60 = vor.u32 %v9748_v53, %v7360_v52 }
  0x99   : > { %v7088_v57 = vld [vmem:[#allocation5 + $0x400] sm:$0xf]  ;;  %v9680_v58 = vld [vmem:[#allocation5 + $0x40c] sm:$0xf0]  ;;  %v7489_v0 = vor.u32 %v9780_v55, %v7488_v54  ;;  %3731 = vmatpush.bf16.msrb.mxu0 %v7105_v56  ;;  %3744 = vmatpush.bf16.msrb.mxu1 %v7233_v59 }
  0x9a   : > { %v7216_v61 = vld [vmem:[#allocation5 + $0x500] sm:$0xf]  ;;  %v9712_v62 = vld [vmem:[#allocation5 + $0x50c] sm:$0xf0]  ;;  %v7089_v7 = vor.u32 %v9680_v58, %v7088_v57  ;;  %3757 = vmatpush.bf16.msrb.mxu2 %v7361_v60 }
  0x9b   : > { %v7344_v63 = vld [vmem:[#allocation5 + $0x600] sm:$0xf]  ;;  %v9744_v1 = vld [vmem:[#allocation5 + $0x60c] sm:$0xf0]  ;;  %v7217_v13 = vor.u32 %v9712_v62, %v7216_v61  ;;  %3770 = vmatpush.bf16.msrb.mxu3 %v7489_v0 }
  0x9c   : > { %v7472_v2 = vld [vmem:[#allocation5 + $0x700] sm:$0xf]  ;;  %v9776_v3 = vld [vmem:[#allocation5 + $0x70c] sm:$0xf0]  ;;  %v7345_v14 = vor.u32 %v9744_v1, %v7344_v63 }
  0x9d   : > { %v7712_v4 = vld [vmem:[#allocation5 + $0x8e0] sm:$0xf]  ;;  %v9836_v5 = vld [vmem:[#allocation5 + $0x8ec] sm:$0xf0]  ;;  %v7473_v19 = vor.u32 %v9776_v3, %v7472_v2  ;;  %3732 = vmatpush.bf16.msrb.mxu0 %v7089_v7  ;;  %3745 = vmatpush.bf16.msrb.mxu1 %v7217_v13 }
  0x9e   : > { %v7840_v6 = vld [vmem:[#allocation5 + $0x9e0] sm:$0xf]  ;;  %v9868_v10 = vld [vmem:[#allocation5 + $0x9ec] sm:$0xf0]  ;;  %v7713_v20 = vor.u32 %v9836_v5, %v7712_v4  ;;  %3758 = vmatpush.bf16.msrb.mxu2 %v7345_v14 }
  0x9f   : > { %v7968_v11 = vld [vmem:[#allocation5 + $0xae0] sm:$0xf]  ;;  %v9900_v12 = vld [vmem:[#allocation5 + $0xaec] sm:$0xf0]  ;;  %v7841_v24 = vor.u32 %v9868_v10, %v7840_v6  ;;  %3771 = vmatpush.bf16.msrb.mxu3 %v7473_v19 }
  0xa0   : > { %v8096_v16 = vld [vmem:[#allocation5 + $0xbe0] sm:$0xf]  ;;  %v9932_v17 = vld [vmem:[#allocation5 + $0xbec] sm:$0xf0]  ;;  %v7969_v26 = vor.u32 %v9900_v12, %v7968_v11  ;;  %3746 = vmatmul.bf16.vlgmr.msrb.gmra.mxu1 %v11139_v40 }
  0xa1   : > { %v565_v18 = vld [vmem:[%s11087_s22 + $0x30] sm:$0xff]  ;;  %v7696_v21 = vld [vmem:[#allocation5 + $0x8c0] sm:$0xf]  ;;  %v8097_v30 = vor.u32 %v9932_v17, %v8096_v16  ;;  %3777 = vmatpush.bf16.msra.mxu0 %v7713_v20  ;;  %3790 = vmatpush.bf16.msra.mxu1 %v7841_v24 }
  0xa2   : > { %v563_v22 = vld [vmem:[%s11087_s22 + $0x20] sm:$0xff]  ;;  %v9832_v27 = vld [vmem:[#allocation5 + $0x8cc] sm:$0xf0]  ;;  %v11133_v34 = vpack.c.bf16 %v565_v18, %v565_v18  ;;  %3803 = vmatpush.bf16.msra.mxu2 %v7969_v26  ;;  %3772 = vmatmul.bf16.vlgmr.msrb.gmra.mxu3 %v11137_v38 }
  0xa3   : > { %v7824_v28 = vld [vmem:[#allocation5 + $0x9c0] sm:$0xf]  ;;  %v9864_v31 = vld [vmem:[#allocation5 + $0x9cc] sm:$0xf0]  ;;  %v11135_v37 = vpack.c.bf16 %v563_v22, %v563_v22  ;;  %v7697_v39 = vor.u32 %v9832_v27, %v7696_v21  ;;  %3816 = vmatpush.bf16.msra.mxu3 %v8097_v30 }
  0xa4   : > { %v7952_v32 = vld [vmem:[#allocation5 + $0xac0] sm:$0xf]  ;;  %v9896_v33 = vld [vmem:[#allocation5 + $0xacc] sm:$0xf0]  ;;  %v7825_v41 = vor.u32 %v9864_v31, %v7824_v28  ;;  %3759 = vmatmul.bf16.vlgmr.msrb.gmra.mxu2 %v11133_v34 }
  0xa5   : > { %v8080_v35 = vld [vmem:[#allocation5 + $0xbc0] sm:$0xf]  ;;  %v9928_v36 = vld [vmem:[#allocation5 + $0xbcc] sm:$0xf0]  ;;  %v7953_v42 = vor.u32 %v9896_v33, %v7952_v32  ;;  %3733 = vmatmul.bf16.vlgmr.msrb.gmra.mxu0 %v11135_v37 }
  0xa6   : > { %v7680_v43 = vld [vmem:[#allocation5 + $0x8a0] sm:$0xf]  ;;  %v9828_v44 = vld [vmem:[#allocation5 + $0x8ac] sm:$0xf0]  ;;  %v8081_v46 = vor.u32 %v9928_v36, %v8080_v35  ;;  %3778 = vmatpush.bf16.msra.mxu0 %v7697_v39  ;;  %3791 = vmatpush.bf16.msra.mxu1 %v7825_v41 }
  0xa7   : > { %v7808_v45 = vld [vmem:[#allocation5 + $0x9a0] sm:$0xf]  ;;  %v9860_v47 = vld [vmem:[#allocation5 + $0x9ac] sm:$0xf0]  ;;  %v7681_v52 = vor.u32 %v9828_v44, %v7680_v43  ;;  %3804 = vmatpush.bf16.msra.mxu2 %v7953_v42 }
  0xa8   : > { %v7936_v48 = vld [vmem:[#allocation5 + $0xaa0] sm:$0xf]  ;;  %v9892_v49 = vld [vmem:[#allocation5 + $0xaac] sm:$0xf0]  ;;  %v7809_v53 = vor.u32 %v9860_v47, %v7808_v45  ;;  %3817 = vmatpush.bf16.msra.mxu3 %v8081_v46 }
  0xa9   : > { %v8064_v50 = vld [vmem:[#allocation5 + $0xba0] sm:$0xf]  ;;  %v9924_v51 = vld [vmem:[#allocation5 + $0xbac] sm:$0xf0]  ;;  %v7937_v54 = vor.u32 %v9892_v49, %v7936_v48 }
  0xaa   : > { %v7664_v55 = vld [vmem:[#allocation5 + $0x880] sm:$0xf]  ;;  %v9824_v56 = vld [vmem:[#allocation5 + $0x88c] sm:$0xf0]  ;;  %v8065_v58 = vor.u32 %v9924_v51, %v8064_v50  ;;  %3779 = vmatpush.bf16.msra.mxu0 %v7681_v52  ;;  %3792 = vmatpush.bf16.msra.mxu1 %v7809_v53 }
  0xab   : > { %v7792_v57 = vld [vmem:[#allocation5 + $0x980] sm:$0xf]  ;;  %v9856_v59 = vld [vmem:[#allocation5 + $0x98c] sm:$0xf0]  ;;  %v7665_v0 = vor.u32 %v9824_v56, %v7664_v55  ;;  %3805 = vmatpush.bf16.msra.mxu2 %v7937_v54 }
  0xac   : > { %v7920_v60 = vld [vmem:[#allocation5 + $0xa80] sm:$0xf]  ;;  %v9888_v61 = vld [vmem:[#allocation5 + $0xa8c] sm:$0xf0]  ;;  %v7793_v1 = vor.u32 %v9856_v59, %v7792_v57  ;;  %3818 = vmatpush.bf16.msra.mxu3 %v8065_v58 }
  0xad   : > { %v8048_v62 = vld [vmem:[#allocation5 + $0xb80] sm:$0xf]  ;;  %v9920_v63 = vld [vmem:[#allocation5 + $0xb8c] sm:$0xf0]  ;;  %v7921_v2 = vor.u32 %v9888_v61, %v7920_v60 }
  0xae   : > { %v7648_v3 = vld [vmem:[#allocation5 + $0x860] sm:$0xf]  ;;  %v9820_v4 = vld [vmem:[#allocation5 + $0x86c] sm:$0xf0]  ;;  %v8049_v6 = vor.u32 %v9920_v63, %v8048_v62  ;;  %3780 = vmatpush.bf16.msra.mxu0 %v7665_v0  ;;  %3793 = vmatpush.bf16.msra.mxu1 %v7793_v1 }
  0xaf   : > { %v7776_v5 = vld [vmem:[#allocation5 + $0x960] sm:$0xf]  ;;  %v9852_v7 = vld [vmem:[#allocation5 + $0x96c] sm:$0xf0]  ;;  %v7649_v14 = vor.u32 %v9820_v4, %v7648_v3  ;;  %3806 = vmatpush.bf16.msra.mxu2 %v7921_v2 }
  0xb0   : > { %v7904_v10 = vld [vmem:[#allocation5 + $0xa60] sm:$0xf]  ;;  %v9884_v11 = vld [vmem:[#allocation5 + $0xa6c] sm:$0xf0]  ;;  %v7777_v16 = vor.u32 %v9852_v7, %v7776_v5  ;;  %3819 = vmatpush.bf16.msra.mxu3 %v8049_v6  ;;  %v568_v7 = vld [vmem:[%s11087_s22 + $0x48] sm:$0xff] }
  0xb1   : > { %v8032_v12 = vld [vmem:[#allocation5 + $0xb60] sm:$0xf]  ;;  %v9916_v13 = vld [vmem:[#allocation5 + $0xb6c] sm:$0xf0]  ;;  %v7905_v17 = vor.u32 %v9884_v11, %v7904_v10  ;;  %v570_v10 = vld [vmem:[%s11087_s22 + $0x58] sm:$0xff] }
  0xb2   : > { %v7632_v18 = vld [vmem:[#allocation5 + $0x840] sm:$0xf]  ;;  %v9816_v19 = vld [vmem:[#allocation5 + $0x84c] sm:$0xf0]  ;;  %v8033_v21 = vor.u32 %v9916_v13, %v8032_v12  ;;  %3781 = vmatpush.bf16.msra.mxu0 %v7649_v14  ;;  %3794 = vmatpush.bf16.msra.mxu1 %v7777_v16 }
  0xb3   : > { %v7760_v20 = vld [vmem:[#allocation5 + $0x940] sm:$0xf]  ;;  %v9848_v22 = vld [vmem:[#allocation5 + $0x94c] sm:$0xf0]  ;;  %v7633_v28 = vor.u32 %v9816_v19, %v7632_v18  ;;  %3807 = vmatpush.bf16.msra.mxu2 %v7905_v17 }
  0xb4   : > { %v7888_v23 = vld [vmem:[#allocation5 + $0xa40] sm:$0xf]  ;;  %v9880_v24 = vld [vmem:[#allocation5 + $0xa4c] sm:$0xf0]  ;;  %v7761_v29 = vor.u32 %v9848_v22, %v7760_v20  ;;  %3820 = vmatpush.bf16.msra.mxu3 %v8033_v21 }
  0xb5   : > { %v8016_v26 = vld [vmem:[#allocation5 + $0xb40] sm:$0xf]  ;;  %v9912_v27 = vld [vmem:[#allocation5 + $0xb4c] sm:$0xf0]  ;;  %v7889_v30 = vor.u32 %v9880_v24, %v7888_v23  ;;  %v11153_v23 = vpack.c.bf16 %v568_v7, %v568_v7 }
  0xb6   : > { %v7616_v31 = vld [vmem:[#allocation5 + $0x820] sm:$0xf]  ;;  %v9812_v32 = vld [vmem:[#allocation5 + $0x82c] sm:$0xf0]  ;;  %v8017_v35 = vor.u32 %v9912_v27, %v8016_v26  ;;  %3782 = vmatpush.bf16.msra.mxu0 %v7633_v28  ;;  %3795 = vmatpush.bf16.msra.mxu1 %v7761_v29  ;;  %v11155_v27 = vpack.c.bf16 %v570_v10, %v570_v10 }
  0xb7   : > { %v7744_v33 = vld [vmem:[#allocation5 + $0x920] sm:$0xf]  ;;  %v9844_v36 = vld [vmem:[#allocation5 + $0x92c] sm:$0xf0]  ;;  %v7617_v44 = vor.u32 %v9812_v32, %v7616_v31  ;;  %3808 = vmatpush.bf16.msra.mxu2 %v7889_v30 }
  0xb8   : > { %v7872_v39 = vld [vmem:[#allocation5 + $0xa20] sm:$0xf]  ;;  %v9876_v41 = vld [vmem:[#allocation5 + $0xa2c] sm:$0xf0]  ;;  %v7745_v48 = vor.u32 %v9844_v36, %v7744_v33  ;;  %3821 = vmatpush.bf16.msra.mxu3 %v8017_v35 }
  0xb9   : > { %v8000_v42 = vld [vmem:[#allocation5 + $0xb20] sm:$0xf]  ;;  %v9908_v43 = vld [vmem:[#allocation5 + $0xb2c] sm:$0xf0]  ;;  %v7873_v49 = vor.u32 %v9876_v41, %v7872_v39 }
  0xba   : > { %v7600_v45 = vld [vmem:[#allocation5 + $0x800] sm:$0xf]  ;;  %v9808_v46 = vld [vmem:[#allocation5 + $0x80c] sm:$0xf0]  ;;  %v8001_v53 = vor.u32 %v9908_v43, %v8000_v42  ;;  %3783 = vmatpush.bf16.msra.mxu0 %v7617_v44  ;;  %3796 = vmatpush.bf16.msra.mxu1 %v7745_v48 }
  0xbb   : > { %v7728_v47 = vld [vmem:[#allocation5 + $0x900] sm:$0xf]  ;;  %v9840_v50 = vld [vmem:[#allocation5 + $0x90c] sm:$0xf0]  ;;  %v7601_v59 = vor.u32 %v9808_v46, %v7600_v45  ;;  %3809 = vmatpush.bf16.msra.mxu2 %v7873_v49 }
  0xbc   : > { %v7856_v51 = vld [vmem:[#allocation5 + $0xa00] sm:$0xf]  ;;  %v9872_v52 = vld [vmem:[#allocation5 + $0xa0c] sm:$0xf0]  ;;  %v7729_v63 = vor.u32 %v9840_v50, %v7728_v47  ;;  %3822 = vmatpush.bf16.msra.mxu3 %v8001_v53 }
  0xbd   : > { %v7984_v54 = vld [vmem:[#allocation5 + $0xb00] sm:$0xf]  ;;  %v9904_v55 = vld [vmem:[#allocation5 + $0xb0c] sm:$0xf0]  ;;  %v7857_v0 = vor.u32 %v9872_v52, %v7856_v51 }
  0xbe   : > { %v8224_v56 = vld [vmem:[#allocation5 + $0xce0] sm:$0xf]  ;;  %v9964_v57 = vld [vmem:[#allocation5 + $0xcec] sm:$0xf0]  ;;  %v7985_v4 = vor.u32 %v9904_v55, %v7984_v54  ;;  %3784 = vmatpush.bf16.msra.mxu0 %v7601_v59  ;;  %3797 = vmatpush.bf16.msra.mxu1 %v7729_v63 }
  0xbf   : > { %v8352_v58 = vld [vmem:[#allocation5 + $0xde0] sm:$0xf]  ;;  %v9996_v60 = vld [vmem:[#allocation5 + $0xdec] sm:$0xf0]  ;;  %v8225_v5 = vor.u32 %v9964_v57, %v8224_v56  ;;  %3810 = vmatpush.bf16.msra.mxu2 %v7857_v0 }
  0xc0   : > { %v8480_v61 = vld [vmem:[#allocation5 + $0xee0] sm:$0xf]  ;;  %v10028_v62 = vld [vmem:[#allocation5 + $0xeec] sm:$0xf0]  ;;  %v8353_v11 = vor.u32 %v9996_v60, %v8352_v58  ;;  %3823 = vmatpush.bf16.msra.mxu3 %v7985_v4 }
  0xc1   : > { %v8608_v1 = vld [vmem:[#allocation5 + $0xfe0] sm:$0xf]  ;;  %v10060_v2 = vld [vmem:[#allocation5 + $0xfec] sm:$0xf0]  ;;  %v8481_v12 = vor.u32 %v10028_v62, %v8480_v61  ;;  %3798 = vmatmul.bf16.vlgmr.msra.gmra.mxu1 %v11153_v23 }
  0xc2   : > { %v567_v3 = vld [vmem:[%s11087_s22 + $0x40] sm:$0xff]  ;;  %v569_v6 = vld [vmem:[%s11087_s22 + $0x50] sm:$0xff]  ;;  %v8609_v17 = vor.u32 %v10060_v2, %v8608_v1  ;;  %3829 = vmatpush.bf16.msrb.mxu0 %v8225_v5  ;;  %3842 = vmatpush.bf16.msrb.mxu1 %v8353_v11 }
  0xc3   : > { %v8208_v13 = vld [vmem:[#allocation5 + $0xcc0] sm:$0xf]  ;;  %v9960_v14 = vld [vmem:[#allocation5 + $0xccc] sm:$0xf0]  ;;  %v11149_v18 = vpack.c.bf16 %v567_v3, %v567_v3  ;;  %v11151_v22 = vpack.c.bf16 %v569_v6, %v569_v6  ;;  %3855 = vmatpush.bf16.msrb.mxu2 %v8481_v12  ;;  %3824 = vmatmul.bf16.vlgmr.msra.gmra.mxu3 %v11155_v27 }
  0xc4   : > { %v8336_v16 = vld [vmem:[#allocation5 + $0xdc0] sm:$0xf]  ;;  %v9992_v19 = vld [vmem:[#allocation5 + $0xdcc] sm:$0xf0]  ;;  %v8209_v28 = vor.u32 %v9960_v14, %v8208_v13  ;;  %3868 = vmatpush.bf16.msrb.mxu3 %v8609_v17 }
  0xc5   : > { %v8464_v20 = vld [vmem:[#allocation5 + $0xec0] sm:$0xf]  ;;  %v10024_v21 = vld [vmem:[#allocation5 + $0xecc] sm:$0xf0]  ;;  %v8337_v29 = vor.u32 %v9992_v19, %v8336_v16  ;;  %3785 = vmatmul.bf16.vlgmr.msra.gmra.mxu0 %v11149_v18  ;;  %3811 = vmatmul.bf16.vlgmr.msra.gmra.mxu2 %v11151_v22 }
  0xc6   : > { %v8592_v24 = vld [vmem:[#allocation5 + $0xfc0] sm:$0xf]  ;;  %v10056_v26 = vld [vmem:[#allocation5 + $0xfcc] sm:$0xf0]  ;;  %v8465_v30 = vor.u32 %v10024_v21, %v8464_v20  ;;  %3830 = vmatpush.bf16.msrb.mxu0 %v8209_v28 }
  0xc7   : > { %v8192_v31 = vld [vmem:[#allocation5 + $0xca0] sm:$0xf]  ;;  %v9956_v32 = vld [vmem:[#allocation5 + $0xcac] sm:$0xf0]  ;;  %v8593_v35 = vor.u32 %v10056_v26, %v8592_v24  ;;  %3843 = vmatpush.bf16.msrb.mxu1 %v8337_v29 }
  0xc8   : > { %v8320_v33 = vld [vmem:[#allocation5 + $0xda0] sm:$0xf]  ;;  %v9988_v36 = vld [vmem:[#allocation5 + $0xdac] sm:$0xf0]  ;;  %v8193_v44 = vor.u32 %v9956_v32, %v8192_v31  ;;  %3856 = vmatpush.bf16.msrb.mxu2 %v8465_v30 }
  0xc9   : > { %v8448_v39 = vld [vmem:[#allocation5 + $0xea0] sm:$0xf]  ;;  %v10020_v41 = vld [vmem:[#allocation5 + $0xeac] sm:$0xf0]  ;;  %v8321_v45 = vor.u32 %v9988_v36, %v8320_v33  ;;  %3869 = vmatpush.bf16.msrb.mxu3 %v8593_v35 }
  0xca   : > { %v8576_v42 = vld [vmem:[#allocation5 + $0xfa0] sm:$0xf]  ;;  %v10052_v43 = vld [vmem:[#allocation5 + $0xfac] sm:$0xf0]  ;;  %v8449_v46 = vor.u32 %v10020_v41, %v8448_v39  ;;  %3831 = vmatpush.bf16.msrb.mxu0 %v8193_v44 }
  0xcb   : > { %v8176_v47 = vld [vmem:[#allocation5 + $0xc80] sm:$0xf]  ;;  %v9952_v48 = vld [vmem:[#allocation5 + $0xc8c] sm:$0xf0]  ;;  %v8577_v50 = vor.u32 %v10052_v43, %v8576_v42  ;;  %3844 = vmatpush.bf16.msrb.mxu1 %v8321_v45 }
  0xcc   : > { %v8304_v49 = vld [vmem:[#allocation5 + $0xd80] sm:$0xf]  ;;  %v9984_v51 = vld [vmem:[#allocation5 + $0xd8c] sm:$0xf0]  ;;  %v8177_v56 = vor.u32 %v9952_v48, %v8176_v47  ;;  %3857 = vmatpush.bf16.msrb.mxu2 %v8449_v46 }
  0xcd   : > { %v8432_v52 = vld [vmem:[#allocation5 + $0xe80] sm:$0xf]  ;;  %v10016_v53 = vld [vmem:[#allocation5 + $0xe8c] sm:$0xf0]  ;;  %v8305_v57 = vor.u32 %v9984_v51, %v8304_v49  ;;  %3870 = vmatpush.bf16.msrb.mxu3 %v8577_v50 }
  0xce   : > { %v8560_v54 = vld [vmem:[#allocation5 + $0xf80] sm:$0xf]  ;;  %v10048_v55 = vld [vmem:[#allocation5 + $0xf8c] sm:$0xf0]  ;;  %v8433_v58 = vor.u32 %v10016_v53, %v8432_v52  ;;  %3832 = vmatpush.bf16.msrb.mxu0 %v8177_v56  ;;  %v9578_v52 = vld [vmem:[#allocation5 + $0xe4] sm:$0xf] }
  0xcf   : > { %v8160_v59 = vld [vmem:[#allocation5 + $0xc60] sm:$0xf]  ;;  %v9948_v60 = vld [vmem:[#allocation5 + $0xc6c] sm:$0xf0]  ;;  %v8561_v62 = vor.u32 %v10048_v55, %v8560_v54  ;;  %3845 = vmatpush.bf16.msrb.mxu1 %v8305_v57  ;;  %v6690_v53 = vld [vmem:[#allocation5 + $0xf0] sm:$0xf0] }
  0xd0   : > { %v8288_v61 = vld [vmem:[#allocation5 + $0xd60] sm:$0xf]  ;;  %v9980_v63 = vld [vmem:[#allocation5 + $0xd6c] sm:$0xf0]  ;;  %v8161_v4 = vor.u32 %v9948_v60, %v8160_v59  ;;  %3858 = vmatpush.bf16.msrb.mxu2 %v8433_v58  ;;  %v9610_v54 = vld [vmem:[#allocation5 + $0x1e4] sm:$0xf] }
  0xd1   : > { %v8416_v0 = vld [vmem:[#allocation5 + $0xe60] sm:$0xf]  ;;  %v10012_v1 = vld [vmem:[#allocation5 + $0xe6c] sm:$0xf0]  ;;  %v8289_v5 = vor.u32 %v9980_v63, %v8288_v61  ;;  %3871 = vmatpush.bf16.msrb.mxu3 %v8561_v62  ;;  %v6818_v56 = vld [vmem:[#allocation5 + $0x1f0] sm:$0xf0] }
  0xd2   : > { %v8544_v2 = vld [vmem:[#allocation5 + $0xf60] sm:$0xf]  ;;  %v10044_v3 = vld [vmem:[#allocation5 + $0xf6c] sm:$0xf0]  ;;  %v8417_v6 = vor.u32 %v10012_v1, %v8416_v0  ;;  %3833 = vmatpush.bf16.msrb.mxu0 %v8161_v4  ;;  %v9642_v57 = vld [vmem:[#allocation5 + $0x2e4] sm:$0xf]  ;;  %v6693_v1 = vor.u32 %v9578_v52, %v6690_v53 }
  0xd3   : > { %v8144_v7 = vld [vmem:[#allocation5 + $0xc40] sm:$0xf]  ;;  %v9944_v10 = vld [vmem:[#allocation5 + $0xc4c] sm:$0xf0]  ;;  %v8545_v12 = vor.u32 %v10044_v3, %v8544_v2  ;;  %3846 = vmatpush.bf16.msrb.mxu1 %v8289_v5  ;;  %v6946_v58 = vld [vmem:[#allocation5 + $0x2f0] sm:$0xf0]  ;;  %v6821_v5 = vor.u32 %v9610_v54, %v6818_v56 }
  0xd4   : > { %v8272_v11 = vld [vmem:[#allocation5 + $0xd40] sm:$0xf]  ;;  %v9976_v13 = vld [vmem:[#allocation5 + $0xd4c] sm:$0xf0]  ;;  %v8145_v20 = vor.u32 %v9944_v10, %v8144_v7  ;;  %3859 = vmatpush.bf16.msrb.mxu2 %v8417_v6  ;;  %v9674_v61 = vld [vmem:[#allocation5 + $0x3e4] sm:$0xf]  ;;  %v6949_v6 = vor.u32 %v9642_v57, %v6946_v58 }
  0xd5   : > { %v8400_v14 = vld [vmem:[#allocation5 + $0xe40] sm:$0xf]  ;;  %v10008_v16 = vld [vmem:[#allocation5 + $0xe4c] sm:$0xf0]  ;;  %v8273_v21 = vor.u32 %v9976_v13, %v8272_v11  ;;  %3872 = vmatpush.bf16.msrb.mxu3 %v8545_v12  ;;  %v7074_v62 = vld [vmem:[#allocation5 + $0x3f0] sm:$0xf0] }
  0xd6   : > { %v8528_v17 = vld [vmem:[#allocation5 + $0xf40] sm:$0xf]  ;;  %v10040_v19 = vld [vmem:[#allocation5 + $0xf4c] sm:$0xf0]  ;;  %v8401_v24 = vor.u32 %v10008_v16, %v8400_v14  ;;  %3834 = vmatpush.bf16.msrb.mxu0 %v8145_v20  ;;  %v572_v3 = vld [vmem:[%s11087_s22 + $0x68] sm:$0xff]  ;;  %v7077_v12 = vor.u32 %v9674_v61, %v7074_v62 }
  0xd7   : > { %v8128_v26 = vld [vmem:[#allocation5 + $0xc20] sm:$0xf]  ;;  %v9940_v28 = vld [vmem:[#allocation5 + $0xc2c] sm:$0xf0]  ;;  %v8529_v30 = vor.u32 %v10040_v19, %v8528_v17  ;;  %3847 = vmatpush.bf16.msrb.mxu1 %v8273_v21  ;;  %v574_v4 = vld [vmem:[%s11087_s22 + $0x78] sm:$0xff]  ;;  %v11169_v20 = vpack.c.bf16 %v572_v3, %v572_v3 }
  0xd8   : > { %v8256_v29 = vld [vmem:[#allocation5 + $0xd20] sm:$0xf]  ;;  %v9972_v31 = vld [vmem:[#allocation5 + $0xd2c] sm:$0xf0]  ;;  %v8129_v39 = vor.u32 %v9940_v28, %v8128_v26  ;;  %3860 = vmatpush.bf16.msrb.mxu2 %v8401_v24  ;;  %v9574_v7 = vld [vmem:[#allocation5 + $0xc4] sm:$0xf]  ;;  %v11171_v26 = vpack.c.bf16 %v574_v4, %v574_v4 }
  0xd9   : > { %v8384_v32 = vld [vmem:[#allocation5 + $0xe20] sm:$0xf]  ;;  %v10004_v33 = vld [vmem:[#allocation5 + $0xe2c] sm:$0xf0]  ;;  %v8257_v43 = vor.u32 %v9972_v31, %v8256_v29  ;;  %3873 = vmatpush.bf16.msrb.mxu3 %v8529_v30  ;;  %v6674_v10 = vld [vmem:[#allocation5 + $0xd0] sm:$0xf0] }
  0xda   : > { %v8512_v35 = vld [vmem:[#allocation5 + $0xf20] sm:$0xf]  ;;  %v10036_v36 = vld [vmem:[#allocation5 + $0xf2c] sm:$0xf0]  ;;  %v8385_v44 = vor.u32 %v10004_v33, %v8384_v32  ;;  %3835 = vmatpush.bf16.msrb.mxu0 %v8129_v39  ;;  %v9606_v11 = vld [vmem:[#allocation5 + $0x1c4] sm:$0xf]  ;;  %v6677_v28 = vor.u32 %v9574_v7, %v6674_v10 }
  0xdb   : > { %v8112_v41 = vld [vmem:[#allocation5 + $0xc00] sm:$0xf]  ;;  %v9936_v42 = vld [vmem:[#allocation5 + $0xc0c] sm:$0xf0]  ;;  %v8513_v48 = vor.u32 %v10036_v36, %v8512_v35  ;;  %3848 = vmatpush.bf16.msrb.mxu1 %v8257_v43  ;;  %v6802_v14 = vld [vmem:[#allocation5 + $0x1d0] sm:$0xf0] }
  0xdc   : > { %v8240_v45 = vld [vmem:[#allocation5 + $0xd00] sm:$0xf]  ;;  %v9968_v46 = vld [vmem:[#allocation5 + $0xd0c] sm:$0xf0]  ;;  %v8113_v55 = vor.u32 %v9936_v42, %v8112_v41  ;;  %3861 = vmatpush.bf16.msrb.mxu2 %v8385_v44  ;;  %v9638_v16 = vld [vmem:[#allocation5 + $0x2c4] sm:$0xf]  ;;  %v6805_v29 = vor.u32 %v9606_v11, %v6802_v14 }
  0xdd   : > { %v8368_v47 = vld [vmem:[#allocation5 + $0xe00] sm:$0xf]  ;;  %v10000_v49 = vld [vmem:[#allocation5 + $0xe0c] sm:$0xf0]  ;;  %v8241_v59 = vor.u32 %v9968_v46, %v8240_v45  ;;  %3874 = vmatpush.bf16.msrb.mxu3 %v8513_v48  ;;  %v6930_v17 = vld [vmem:[#allocation5 + $0x2d0] sm:$0xf0] }
  0xde   : > { %v8496_v50 = vld [vmem:[#allocation5 + $0xf00] sm:$0xf]  ;;  %v10032_v51 = vld [vmem:[#allocation5 + $0xf0c] sm:$0xf0]  ;;  %v8369_v60 = vor.u32 %v10000_v49, %v8368_v47  ;;  %3836 = vmatpush.bf16.msrb.mxu0 %v8113_v55  ;;  %v9670_v21 = vld [vmem:[#allocation5 + $0x3c4] sm:$0xf]  ;;  %v6933_v30 = vor.u32 %v9638_v16, %v6930_v17 }
  0xdf   : > { %v571_v63 = vld [vmem:[%s11087_s22 + $0x60] sm:$0xff]  ;;  %v8497_v0 = vor.u32 %v10032_v51, %v8496_v50  ;;  %v573_v2 = vld [vmem:[%s11087_s22 + $0x70] sm:$0xff]  ;;  %3849 = vmatpush.bf16.msrb.mxu1 %v8241_v59 }
  0xe0   : > { %v11165_v13 = vpack.c.bf16 %v571_v63, %v571_v63  ;;  %3862 = vmatpush.bf16.msrb.mxu2 %v8369_v60  ;;  %v11167_v19 = vpack.c.bf16 %v573_v2, %v573_v2  ;;  %v7058_v24 = vld [vmem:[#allocation5 + $0x3d0] sm:$0xf0]  ;;  %v9570_v31 = vld [vmem:[#allocation5 + $0xa4] sm:$0xf] }
  0xe1   : > { %3875 = vmatpush.bf16.msrb.mxu3 %v8497_v0  ;;  %v6658_v32 = vld [vmem:[#allocation5 + $0xb0] sm:$0xf0]  ;;  %v9602_v33 = vld [vmem:[#allocation5 + $0x1a4] sm:$0xf]  ;;  %v7061_v35 = vor.u32 %v9670_v21, %v7058_v24 }
  0xe2   : > { %3881 = vmatpush.bf16.msra.mxu0 %v6693_v1  ;;  %v6786_v36 = vld [vmem:[#allocation5 + $0x1b0] sm:$0xf0]  ;;  %v9634_v39 = vld [vmem:[#allocation5 + $0x2a4] sm:$0xf]  ;;  %3850 = vmatmul.bf16.vlgmr.msrb.gmra.mxu1 %v11169_v20  ;;  %v6661_v44 = vor.u32 %v9570_v31, %v6658_v32 }
  0xe3   : > { %3894 = vmatpush.bf16.msra.mxu1 %v6821_v5  ;;  %3837 = vmatmul.bf16.vlgmr.msrb.gmra.mxu0 %v11165_v13  ;;  %v6914_v41 = vld [vmem:[#allocation5 + $0x2b0] sm:$0xf0]  ;;  %v9666_v42 = vld [vmem:[#allocation5 + $0x3a4] sm:$0xf]  ;;  %v6789_v45 = vor.u32 %v9602_v33, %v6786_v36 }
  0xe4   : > { %3907 = vmatpush.bf16.msra.mxu2 %v6949_v6  ;;  %v7042_v43 = vld [vmem:[#allocation5 + $0x3b0] sm:$0xf0]  ;;  %3876 = vmatmul.bf16.vlgmr.msrb.gmra.mxu3 %v11171_v26  ;;  %v6917_v46 = vor.u32 %v9634_v39, %v6914_v41  ;;  %v9566_v47 = vld [vmem:[#allocation5 + $0x84] sm:$0xf] }
  0xe5   : > { %3920 = vmatpush.bf16.msra.mxu3 %v7077_v12  ;;  %3863 = vmatmul.bf16.vlgmr.msrb.gmra.mxu2 %v11167_v19  ;;  %v6642_v48 = vld [vmem:[#allocation5 + $0x90] sm:$0xf0]  ;;  %v9598_v49 = vld [vmem:[#allocation5 + $0x184] sm:$0xf]  ;;  %v7045_v50 = vor.u32 %v9666_v42, %v7042_v43 }
  0xe6   : > { %3882 = vmatpush.bf16.msra.mxu0 %v6677_v28  ;;  %v6770_v51 = vld [vmem:[#allocation5 + $0x190] sm:$0xf0]  ;;  %v9630_v52 = vld [vmem:[#allocation5 + $0x284] sm:$0xf]  ;;  %v6645_v56 = vor.u32 %v9566_v47, %v6642_v48 }
  0xe7   : > { %3895 = vmatpush.bf16.msra.mxu1 %v6805_v29  ;;  %v6898_v53 = vld [vmem:[#allocation5 + $0x290] sm:$0xf0]  ;;  %v9662_v54 = vld [vmem:[#allocation5 + $0x384] sm:$0xf]  ;;  %v6773_v57 = vor.u32 %v9598_v49, %v6770_v51 }
  0xe8   : > { %3908 = vmatpush.bf16.msra.mxu2 %v6933_v30  ;;  %v7026_v55 = vld [vmem:[#allocation5 + $0x390] sm:$0xf0]  ;;  %v6901_v58 = vor.u32 %v9630_v52, %v6898_v53  ;;  %v9562_v59 = vld [vmem:[#allocation5 + $0x64] sm:$0xf] }
  0xe9   : > { %3921 = vmatpush.bf16.msra.mxu3 %v7061_v35  ;;  %v6626_v60 = vld [vmem:[#allocation5 + $0x70] sm:$0xf0]  ;;  %v9594_v61 = vld [vmem:[#allocation5 + $0x164] sm:$0xf]  ;;  %v7029_v62 = vor.u32 %v9662_v54, %v7026_v55 }
  0xea   : > { %3883 = vmatpush.bf16.msra.mxu0 %v6661_v44  ;;  %v6754_v63 = vld [vmem:[#allocation5 + $0x170] sm:$0xf0]  ;;  %v9626_v0 = vld [vmem:[#allocation5 + $0x264] sm:$0xf]  ;;  %v6629_v4 = vor.u32 %v9562_v59, %v6626_v60 }
  0xeb   : > { %3896 = vmatpush.bf16.msra.mxu1 %v6789_v45  ;;  %v6882_v1 = vld [vmem:[#allocation5 + $0x270] sm:$0xf0]  ;;  %v9658_v2 = vld [vmem:[#allocation5 + $0x364] sm:$0xf]  ;;  %v6757_v5 = vor.u32 %v9594_v61, %v6754_v63 }
  0xec   : > { %3909 = vmatpush.bf16.msra.mxu2 %v6917_v46  ;;  %v7010_v3 = vld [vmem:[#allocation5 + $0x370] sm:$0xf0]  ;;  %v6885_v6 = vor.u32 %v9626_v0, %v6882_v1  ;;  %v9558_v7 = vld [vmem:[#allocation5 + $0x44] sm:$0xf] }
  0xed   : > { %3922 = vmatpush.bf16.msra.mxu3 %v7045_v50  ;;  %v6610_v10 = vld [vmem:[#allocation5 + $0x50] sm:$0xf0]  ;;  %v9590_v11 = vld [vmem:[#allocation5 + $0x144] sm:$0xf]  ;;  %v7013_v12 = vor.u32 %v9658_v2, %v7010_v3 }
  0xee   : > { %3884 = vmatpush.bf16.msra.mxu0 %v6645_v56  ;;  %v6738_v14 = vld [vmem:[#allocation5 + $0x150] sm:$0xf0]  ;;  %v9622_v16 = vld [vmem:[#allocation5 + $0x244] sm:$0xf]  ;;  %v6613_v28 = vor.u32 %v9558_v7, %v6610_v10 }
  0xef   : > { %3897 = vmatpush.bf16.msra.mxu1 %v6773_v57  ;;  %v6866_v17 = vld [vmem:[#allocation5 + $0x250] sm:$0xf0]  ;;  %v9654_v21 = vld [vmem:[#allocation5 + $0x344] sm:$0xf]  ;;  %v6741_v29 = vor.u32 %v9590_v11, %v6738_v14 }
  0xf0   : > { %3910 = vmatpush.bf16.msra.mxu2 %v6901_v58  ;;  %v6994_v24 = vld [vmem:[#allocation5 + $0x350] sm:$0xf0]  ;;  %v6869_v30 = vor.u32 %v9622_v16, %v6866_v17  ;;  %v9554_v31 = vld [vmem:[#allocation5 + $0x24] sm:$0xf] }
  0xf1   : > { %3923 = vmatpush.bf16.msra.mxu3 %v7029_v62  ;;  %v6594_v32 = vld [vmem:[#allocation5 + $0x30] sm:$0xf0]  ;;  %v9586_v33 = vld [vmem:[#allocation5 + $0x124] sm:$0xf]  ;;  %v6997_v35 = vor.u32 %v9654_v21, %v6994_v24 }
  0xf2   : > { %3885 = vmatpush.bf16.msra.mxu0 %v6629_v4  ;;  %v6722_v36 = vld [vmem:[#allocation5 + $0x130] sm:$0xf0]  ;;  %v9618_v39 = vld [vmem:[#allocation5 + $0x224] sm:$0xf]  ;;  %v6597_v44 = vor.u32 %v9554_v31, %v6594_v32 }
  0xf3   : > { %3898 = vmatpush.bf16.msra.mxu1 %v6757_v5  ;;  %v6850_v41 = vld [vmem:[#allocation5 + $0x230] sm:$0xf0]  ;;  %v9650_v42 = vld [vmem:[#allocation5 + $0x324] sm:$0xf]  ;;  %v6725_v47 = vor.u32 %v9586_v33, %v6722_v36 }
  0xf4   : > { %3911 = vmatpush.bf16.msra.mxu2 %v6885_v6  ;;  %v6978_v43 = vld [vmem:[#allocation5 + $0x330] sm:$0xf0]  ;;  %v9550_v45 = vld [vmem:[#allocation5 + $0x4] sm:$0xf]  ;;  %v6853_v48 = vor.u32 %v9618_v39, %v6850_v41 }
  0xf5   : > { %3924 = vmatpush.bf16.msra.mxu3 %v7013_v12  ;;  %v6578_v46 = vld [vmem:[#allocation5 + $0x10] sm:$0xf0]  ;;  %v9582_v49 = vld [vmem:[#allocation5 + $0x104] sm:$0xf]  ;;  %v6981_v52 = vor.u32 %v9650_v42, %v6978_v43 }
  0xf6   : > { %3886 = vmatpush.bf16.msra.mxu0 %v6613_v28  ;;  %v6706_v50 = vld [vmem:[#allocation5 + $0x110] sm:$0xf0]  ;;  %v9614_v51 = vld [vmem:[#allocation5 + $0x204] sm:$0xf]  ;;  %v6581_v59 = vor.u32 %v9550_v45, %v6578_v46 }
  0xf7   : > { %3899 = vmatpush.bf16.msra.mxu1 %v6741_v29  ;;  %v6834_v53 = vld [vmem:[#allocation5 + $0x210] sm:$0xf0]  ;;  %v9646_v54 = vld [vmem:[#allocation5 + $0x304] sm:$0xf]  ;;  %v6709_v63 = vor.u32 %v9582_v49, %v6706_v50 }
  0xf8   : > { %3912 = vmatpush.bf16.msra.mxu2 %v6869_v30  ;;  %v6962_v55 = vld [vmem:[#allocation5 + $0x310] sm:$0xf0]  ;;  %v9706_v56 = vld [vmem:[#allocation5 + $0x4e4] sm:$0xf]  ;;  %v6837_v0 = vor.u32 %v9614_v51, %v6834_v53 }
  0xf9   : > { %3925 = vmatpush.bf16.msra.mxu3 %v6997_v35  ;;  %v7202_v57 = vld [vmem:[#allocation5 + $0x4f0] sm:$0xf0]  ;;  %v9738_v58 = vld [vmem:[#allocation5 + $0x5e4] sm:$0xf]  ;;  %v6965_v3 = vor.u32 %v9646_v54, %v6962_v55  ;;  %v1103_v54 = vld [vmem:[#allocation7] sm:$0xf] }
  0xfa   : > { %3887 = vmatpush.bf16.msra.mxu0 %v6597_v44  ;;  %v7330_v60 = vld [vmem:[#allocation5 + $0x5f0] sm:$0xf0]  ;;  %v9770_v61 = vld [vmem:[#allocation5 + $0x6e4] sm:$0xf]  ;;  %v7205_v4 = vor.u32 %v9706_v56, %v7202_v57 }
  0xfb   : > { %v7458_v62 = vld [vmem:[#allocation5 + $0x6f0] sm:$0xf0]  ;;  %3900 = vmatpush.bf16.msra.mxu1 %v6725_v47  ;;  %v9802_v1 = vld [vmem:[#allocation5 + $0x7e4] sm:$0xf]  ;;  %v7333_v5 = vor.u32 %v9738_v58, %v7330_v60 }
  0xfc   : > { %3913 = vmatpush.bf16.msra.mxu2 %v6853_v48  ;;  %v7586_v2 = vld [vmem:[#allocation5 + $0x7f0] sm:$0xf0]  ;;  %v7461_v6 = vor.u32 %v9770_v61, %v7458_v62  ;;  %v9702_v7 = vld [vmem:[#allocation5 + $0x4c4] sm:$0xf] }
  0xfd   : > { %3926 = vmatpush.bf16.msra.mxu3 %v6981_v52  ;;  %v7186_v10 = vld [vmem:[#allocation5 + $0x4d0] sm:$0xf0]  ;;  %v9734_v11 = vld [vmem:[#allocation5 + $0x5c4] sm:$0xf]  ;;  %v7589_v12 = vor.u32 %v9802_v1, %v7586_v2 }
  0xfe   : > { %3888 = vmatpush.bf16.msra.mxu0 %v6581_v59  ;;  %v7314_v14 = vld [vmem:[#allocation5 + $0x5d0] sm:$0xf0]  ;;  %v9766_v16 = vld [vmem:[#allocation5 + $0x6c4] sm:$0xf]  ;;  %v7189_v28 = vor.u32 %v9702_v7, %v7186_v10 }
  0xff   : > { %v7442_v17 = vld [vmem:[#allocation5 + $0x6d0] sm:$0xf0]  ;;  %3901 = vmatpush.bf16.msra.mxu1 %v6709_v63  ;;  %v9798_v21 = vld [vmem:[#allocation5 + $0x7c4] sm:$0xf]  ;;  %v7317_v29 = vor.u32 %v9734_v11, %v7314_v14  ;;  %v1105_v63 = vperm.slane %v1103_v54, 0 }
 0x100   : > { %3914 = vmatpush.bf16.msra.mxu2 %v6837_v0  ;;  %v7570_v24 = vld [vmem:[#allocation5 + $0x7d0] sm:$0xf0]  ;;  %v7445_v30 = vor.u32 %v9766_v16, %v7442_v17  ;;  %v9698_v31 = vld [vmem:[#allocation5 + $0x4a4] sm:$0xf] }
 0x101   : > { %3927 = vmatpush.bf16.msra.mxu3 %v6965_v3  ;;  %v7170_v32 = vld [vmem:[#allocation5 + $0x4b0] sm:$0xf0]  ;;  %v9730_v33 = vld [vmem:[#allocation5 + $0x5a4] sm:$0xf]  ;;  %v7573_v35 = vor.u32 %v9798_v21, %v7570_v24  ;;  %3889 = vmatmul.bf16.vlgmr.msra.gmra.mxu0 %v11117_v9 }
 0x102   : > { %3933 = vmatpush.bf16.msrb.mxu0 %v7205_v4  ;;  %v7298_v36 = vld [vmem:[#allocation5 + $0x5b0] sm:$0xf0]  ;;  %v9762_v39 = vld [vmem:[#allocation5 + $0x6a4] sm:$0xf]  ;;  %v7173_v44 = vor.u32 %v9698_v31, %v7170_v32  ;;  %3902 = vmatmul.bf16.vlgmr.msra.gmra.mxu1 %v11126_v25 }
 0x103   : > { %3946 = vmatpush.bf16.msrb.mxu1 %v7333_v5  ;;  %v7426_v41 = vld [vmem:[#allocation5 + $0x6b0] sm:$0xf0]  ;;  %3915 = vmatmul.bf16.vlgmr.msra.gmra.mxu2 %v11115_v8  ;;  %v9794_v42 = vld [vmem:[#allocation5 + $0x7a4] sm:$0xf]  ;;  %v7301_v46 = vor.u32 %v9730_v33, %v7298_v36  ;;  %v3695_v33 = vpop.f32.mrf.mxu1 }
 0x104   : > { %3959 = vmatpush.bf16.msrb.mxu2 %v7461_v6  ;;  %v7554_v43 = vld [vmem:[#allocation5 + $0x7b0] sm:$0xf0]  ;;  %3928 = vmatmul.bf16.vlgmr.msra.gmra.mxu3 %v11120_v15  ;;  %v9694_v45 = vld [vmem:[#allocation5 + $0x484] sm:$0xf]  ;;  %v7429_v47 = vor.u32 %v9762_v39, %v7426_v41 }
 0x105   : > { %3972 = vmatpush.bf16.msrb.mxu3 %v7589_v12  ;;  %v7154_v48 = vld [vmem:[#allocation5 + $0x490] sm:$0xf0]  ;;  %v9726_v49 = vld [vmem:[#allocation5 + $0x584] sm:$0xf]  ;;  %v7557_v51 = vor.u32 %v9794_v42, %v7554_v43 }
 0x106   : > { %3934 = vmatpush.bf16.msrb.mxu0 %v7189_v28  ;;  %v7282_v50 = vld [vmem:[#allocation5 + $0x590] sm:$0xf0]  ;;  %v9758_v52 = vld [vmem:[#allocation5 + $0x684] sm:$0xf]  ;;  %v7157_v57 = vor.u32 %v9694_v45, %v7154_v48 }
 0x107   : > { %3947 = vmatpush.bf16.msrb.mxu1 %v7317_v29  ;;  %v7410_v53 = vld [vmem:[#allocation5 + $0x690] sm:$0xf0]  ;;  %v9790_v55 = vld [vmem:[#allocation5 + $0x784] sm:$0xf]  ;;  %v7285_v59 = vor.u32 %v9726_v49, %v7282_v50 }
 0x108   : > { %3960 = vmatpush.bf16.msrb.mxu2 %v7445_v30  ;;  %v7538_v56 = vld [vmem:[#allocation5 + $0x790] sm:$0xf0]  ;;  %v9690_v58 = vld [vmem:[#allocation5 + $0x464] sm:$0xf]  ;;  %v7413_v60 = vor.u32 %v9758_v52, %v7410_v53  ;;  %v3721_v52 = vpop.f32.mrf.mxu3 }
 0x109   : > { %3973 = vmatpush.bf16.msrb.mxu3 %v7573_v35  ;;  %v7138_v61 = vld [vmem:[#allocation5 + $0x470] sm:$0xf0]  ;;  %v9722_v62 = vld [vmem:[#allocation5 + $0x564] sm:$0xf]  ;;  %v7541_v0 = vor.u32 %v9790_v55, %v7538_v56  ;;  %v3682_v7 = vpop.f32.mrf.mxu0 }
 0x10a   : > { %3935 = vmatpush.bf16.msrb.mxu0 %v7173_v44  ;;  %v7266_v1 = vld [vmem:[#allocation5 + $0x570] sm:$0xf0]  ;;  %v9754_v2 = vld [vmem:[#allocation5 + $0x664] sm:$0xf]  ;;  %v7141_v6 = vor.u32 %v9690_v58, %v7138_v61  ;;  %v3683_v17 = vadd.f32 %v3682_v7, %v1105_v63 }
 0x10b   : > { %3948 = vmatpush.bf16.msrb.mxu1 %v7301_v46  ;;  %v7394_v3 = vld [vmem:[#allocation5 + $0x670] sm:$0xf0]  ;;  %v9786_v4 = vld [vmem:[#allocation5 + $0x764] sm:$0xf]  ;;  %v7269_v10 = vor.u32 %v9722_v62, %v7266_v1 }
 0x10c   : > { %3961 = vmatpush.bf16.msrb.mxu2 %v7429_v47  ;;  %v7522_v5 = vld [vmem:[#allocation5 + $0x770] sm:$0xf0]  ;;  %v7397_v11 = vor.u32 %v9754_v2, %v7394_v3  ;;  %v9686_v12 = vld [vmem:[#allocation5 + $0x444] sm:$0xf]  ;;  %v3696_v43 = vadd.f32 %v3695_v33, %v3683_v17 }
 0x10d   : > { %3974 = vmatpush.bf16.msrb.mxu3 %v7557_v51  ;;  %v7122_v14 = vld [vmem:[#allocation5 + $0x450] sm:$0xf0]  ;;  %v9718_v16 = vld [vmem:[#allocation5 + $0x544] sm:$0xf]  ;;  %v7525_v21 = vor.u32 %v9786_v4, %v7522_v5 }
 0x10e   : > { %3936 = vmatpush.bf16.msrb.mxu0 %v7157_v57  ;;  %v7250_v24 = vld [vmem:[#allocation5 + $0x550] sm:$0xf0]  ;;  %v9750_v28 = vld [vmem:[#allocation5 + $0x644] sm:$0xf]  ;;  %v7125_v32 = vor.u32 %v9686_v12, %v7122_v14  ;;  %v3708_v48 = vpop.f32.mrf.mxu2  ;;  %v3697_v12 = vpop.f32.mrf.mxu1 }
 0x10f   : > { %3949 = vmatpush.bf16.msrb.mxu1 %v7285_v59  ;;  %v7378_v29 = vld [vmem:[#allocation5 + $0x650] sm:$0xf0]  ;;  %v9782_v30 = vld [vmem:[#allocation5 + $0x744] sm:$0xf]  ;;  %v7253_v35 = vor.u32 %v9718_v16, %v7250_v24  ;;  %v3709_v51 = vadd.f32 %v3708_v48, %v3696_v43 }
 0x110   : > { %3962 = vmatpush.bf16.msrb.mxu2 %v7413_v60  ;;  %v7506_v31 = vld [vmem:[#allocation5 + $0x750] sm:$0xf0]  ;;  %v7381_v36 = vor.u32 %v9750_v28, %v7378_v29  ;;  %v9682_v39 = vld [vmem:[#allocation5 + $0x424] sm:$0xf] }
 0x111   : > { %3975 = vmatpush.bf16.msrb.mxu3 %v7541_v0  ;;  %v7106_v41 = vld [vmem:[#allocation5 + $0x430] sm:$0xf0]  ;;  %v9714_v42 = vld [vmem:[#allocation5 + $0x524] sm:$0xf]  ;;  %v7509_v44 = vor.u32 %v9782_v30, %v7506_v31  ;;  %v3684_v56 = vpop.f32.mrf.mxu0  ;;  %v11181_v62 = vadd.f32 %v3721_v52, %v3709_v51 }
 0x112   : > { %3937 = vmatpush.bf16.msrb.mxu0 %v7141_v6  ;;  %v7234_v45 = vld [vmem:[#allocation5 + $0x530] sm:$0xf0]  ;;  %v9746_v46 = vld [vmem:[#allocation5 + $0x624] sm:$0xf]  ;;  %v7109_v53 = vor.u32 %v9682_v39, %v7106_v41 }
 0x113   : > { %3950 = vmatpush.bf16.msrb.mxu1 %v7269_v10  ;;  %v7362_v47 = vld [vmem:[#allocation5 + $0x630] sm:$0xf0]  ;;  %v9778_v49 = vld [vmem:[#allocation5 + $0x724] sm:$0xf]  ;;  %v7237_v57 = vor.u32 %v9714_v42, %v7234_v45 }
 0x114   : > { %3963 = vmatpush.bf16.msrb.mxu2 %v7397_v11  ;;  %v7490_v50 = vld [vmem:[#allocation5 + $0x730] sm:$0xf0]  ;;  %v9678_v54 = vld [vmem:[#allocation5 + $0x404] sm:$0xf]  ;;  %v7365_v58 = vor.u32 %v9746_v46, %v7362_v47 }
 0x115   : > { %3976 = vmatpush.bf16.msrb.mxu3 %v7525_v21  ;;  %v7090_v55 = vld [vmem:[#allocation5 + $0x410] sm:$0xf0]  ;;  %v9710_v59 = vld [vmem:[#allocation5 + $0x504] sm:$0xf]  ;;  %v7493_v63 = vor.u32 %v9778_v49, %v7490_v50 }
 0x116   : > { %3938 = vmatpush.bf16.msrb.mxu0 %v7125_v32  ;;  %v7218_v60 = vld [vmem:[#allocation5 + $0x510] sm:$0xf0]  ;;  %v9742_v61 = vld [vmem:[#allocation5 + $0x604] sm:$0xf]  ;;  %v7093_v6 = vor.u32 %v9678_v54, %v7090_v55  ;;  %v3710_v29 = vpop.f32.mrf.mxu2 }
 0x117   : > { %3951 = vmatpush.bf16.msrb.mxu1 %v7253_v35  ;;  %v7346_v0 = vld [vmem:[#allocation5 + $0x610] sm:$0xf0]  ;;  %v9774_v1 = vld [vmem:[#allocation5 + $0x704] sm:$0xf]  ;;  %v7221_v14 = vor.u32 %v9710_v59, %v7218_v60 }
 0x118   : > { %3964 = vmatpush.bf16.msrb.mxu2 %v7381_v36  ;;  %v7474_v2 = vld [vmem:[#allocation5 + $0x710] sm:$0xf0]  ;;  %v9834_v3 = vld [vmem:[#allocation5 + $0x8e4] sm:$0xf]  ;;  %v7349_v16 = vor.u32 %v9742_v61, %v7346_v0  ;;  %v3723_v36 = vpop.f32.mrf.mxu3 }
 0x119   : > { %3977 = vmatpush.bf16.msrb.mxu3 %v7509_v44  ;;  %v7714_v4 = vld [vmem:[#allocation5 + $0x8f0] sm:$0xf0]  ;;  %v9866_v5 = vld [vmem:[#allocation5 + $0x9e4] sm:$0xf]  ;;  %v7477_v24 = vor.u32 %v9774_v1, %v7474_v2 }
 0x11a   : > { %3939 = vmatpush.bf16.msrb.mxu0 %v7109_v53  ;;  %v7842_v7 = vld [vmem:[#allocation5 + $0x9f0] sm:$0xf0]  ;;  %v9898_v10 = vld [vmem:[#allocation5 + $0xae4] sm:$0xf]  ;;  %v7717_v28 = vor.u32 %v9834_v3, %v7714_v4 }
 0x11b   : > { %v7970_v11 = vld [vmem:[#allocation5 + $0xaf0] sm:$0xf0]  ;;  %3952 = vmatpush.bf16.msrb.mxu1 %v7237_v57  ;;  %v9930_v17 = vld [vmem:[#allocation5 + $0xbe4] sm:$0xf]  ;;  %v7845_v30 = vor.u32 %v9866_v5, %v7842_v7 }
 0x11c   : > { %3965 = vmatpush.bf16.msrb.mxu2 %v7365_v58  ;;  %v8098_v21 = vld [vmem:[#allocation5 + $0xbf0] sm:$0xf0]  ;;  %v7973_v31 = vor.u32 %v9898_v10, %v7970_v11  ;;  %v9830_v32 = vld [vmem:[#allocation5 + $0x8c4] sm:$0xf] }
 0x11d   : > { %3978 = vmatpush.bf16.msrb.mxu3 %v7493_v63  ;;  %v7698_v33 = vld [vmem:[#allocation5 + $0x8d0] sm:$0xf0]  ;;  %v9862_v35 = vld [vmem:[#allocation5 + $0x9c4] sm:$0xf]  ;;  %v8101_v39 = vor.u32 %v9930_v17, %v8098_v21 }
 0x11e   : > { %3940 = vmatpush.bf16.msrb.mxu0 %v7093_v6  ;;  %v7826_v41 = vld [vmem:[#allocation5 + $0x9d0] sm:$0xf0]  ;;  %v9894_v42 = vld [vmem:[#allocation5 + $0xac4] sm:$0xf]  ;;  %v7701_v46 = vor.u32 %v9830_v32, %v7698_v33 }
 0x11f   : > { %v7954_v43 = vld [vmem:[#allocation5 + $0xad0] sm:$0xf0]  ;;  %3953 = vmatpush.bf16.msrb.mxu1 %v7221_v14  ;;  %v9926_v44 = vld [vmem:[#allocation5 + $0xbc4] sm:$0xf]  ;;  %v7829_v47 = vor.u32 %v9862_v35, %v7826_v41 }
 0x120   : > { %3966 = vmatpush.bf16.msrb.mxu2 %v7349_v16  ;;  %v8082_v45 = vld [vmem:[#allocation5 + $0xbd0] sm:$0xf0]  ;;  %v7957_v48 = vor.u32 %v9894_v42, %v7954_v43  ;;  %v9826_v49 = vld [vmem:[#allocation5 + $0x8a4] sm:$0xf] }
 0x121   : > { %3979 = vmatpush.bf16.msrb.mxu3 %v7477_v24  ;;  %v7682_v50 = vld [vmem:[#allocation5 + $0x8b0] sm:$0xf0]  ;;  %v9858_v51 = vld [vmem:[#allocation5 + $0x9a4] sm:$0xf]  ;;  %v8085_v52 = vor.u32 %v9926_v44, %v8082_v45  ;;  %3941 = vmatmul.bf16.vlgmr.msrb.gmra.mxu0 %v11135_v37  ;;  %v3747_v24 = vpop.f32.mrf.mxu1 }
 0x122   : > { %3985 = vmatpush.bf16.msra.mxu0 %v7717_v28  ;;  %v7810_v53 = vld [vmem:[#allocation5 + $0x9b0] sm:$0xf0]  ;;  %v9890_v54 = vld [vmem:[#allocation5 + $0xaa4] sm:$0xf]  ;;  %v7685_v58 = vor.u32 %v9826_v49, %v7682_v50  ;;  %3954 = vmatmul.bf16.vlgmr.msrb.gmra.mxu1 %v11139_v40  ;;  %v3734_v10 = vpop.f32.mrf.mxu0 }
 0x123   : > { %3998 = vmatpush.bf16.msra.mxu1 %v7845_v30  ;;  %3967 = vmatmul.bf16.vlgmr.msrb.gmra.mxu2 %v11133_v34  ;;  %v7938_v55 = vld [vmem:[#allocation5 + $0xab0] sm:$0xf0]  ;;  %v9922_v56 = vld [vmem:[#allocation5 + $0xba4] sm:$0xf]  ;;  %v7813_v59 = vor.u32 %v9858_v51, %v7810_v53  ;;  %v3735_v21 = vadd.f32 %v3734_v10, %v11181_v62 }
 0x124   : > { %4011 = vmatpush.bf16.msra.mxu2 %v7973_v31  ;;  %v8066_v57 = vld [vmem:[#allocation5 + $0xbb0] sm:$0xf0]  ;;  %3980 = vmatmul.bf16.vlgmr.msrb.gmra.mxu3 %v11137_v38  ;;  %v7941_v60 = vor.u32 %v9890_v54, %v7938_v55  ;;  %v9822_v61 = vld [vmem:[#allocation5 + $0x884] sm:$0xf] }
 0x125   : > { %4024 = vmatpush.bf16.msra.mxu3 %v8101_v39  ;;  %v7666_v63 = vld [vmem:[#allocation5 + $0x890] sm:$0xf0]  ;;  %v9854_v0 = vld [vmem:[#allocation5 + $0x984] sm:$0xf]  ;;  %v8069_v1 = vor.u32 %v9922_v56, %v8066_v57  ;;  %v3748_v35 = vadd.f32 %v3747_v24, %v3735_v21  ;;  %v3773_v50 = vpop.f32.mrf.mxu3 }
 0x126   : > { %3986 = vmatpush.bf16.msra.mxu0 %v7701_v46  ;;  %v7794_v2 = vld [vmem:[#allocation5 + $0x990] sm:$0xf0]  ;;  %v9886_v3 = vld [vmem:[#allocation5 + $0xa84] sm:$0xf]  ;;  %v7669_v7 = vor.u32 %v9822_v61, %v7666_v63 }
 0x127   : > { %3999 = vmatpush.bf16.msra.mxu1 %v7829_v47  ;;  %v7922_v4 = vld [vmem:[#allocation5 + $0xa90] sm:$0xf0]  ;;  %v9918_v5 = vld [vmem:[#allocation5 + $0xb84] sm:$0xf]  ;;  %v7797_v11 = vor.u32 %v9854_v0, %v7794_v2  ;;  %v3760_v45 = vpop.f32.mrf.mxu2 }
 0x128   : > { %4012 = vmatpush.bf16.msra.mxu2 %v7957_v48  ;;  %v8050_v6 = vld [vmem:[#allocation5 + $0xb90] sm:$0xf0]  ;;  %v7925_v12 = vor.u32 %v9886_v3, %v7922_v4  ;;  %v9818_v14 = vld [vmem:[#allocation5 + $0x864] sm:$0xf]  ;;  %v3761_v49 = vadd.f32 %v3760_v45, %v3748_v35 }
 0x129   : > { %4025 = vmatpush.bf16.msra.mxu3 %v8085_v52  ;;  %v7650_v16 = vld [vmem:[#allocation5 + $0x870] sm:$0xf0]  ;;  %v9850_v17 = vld [vmem:[#allocation5 + $0x964] sm:$0xf]  ;;  %v8053_v28 = vor.u32 %v9918_v5, %v8050_v6  ;;  %v3749_v61 = vpop.f32.mrf.mxu1 }
 0x12a   : > { %3987 = vmatpush.bf16.msra.mxu0 %v7685_v58  ;;  %v7778_v29 = vld [vmem:[#allocation5 + $0x970] sm:$0xf0]  ;;  %v9882_v30 = vld [vmem:[#allocation5 + $0xa64] sm:$0xf]  ;;  %v7653_v36 = vor.u32 %v9818_v14, %v7650_v16  ;;  %v11188_v54 = vadd.f32 %v3773_v50, %v3761_v49  ;;  %v3736_v55 = vpop.f32.mrf.mxu0 }
 0x12b   : > { %4000 = vmatpush.bf16.msra.mxu1 %v7813_v59  ;;  %v7906_v31 = vld [vmem:[#allocation5 + $0xa70] sm:$0xf0]  ;;  %v9914_v32 = vld [vmem:[#allocation5 + $0xb64] sm:$0xf]  ;;  %v7781_v39 = vor.u32 %v9850_v17, %v7778_v29 }
 0x12c   : > { %4013 = vmatpush.bf16.msra.mxu2 %v7941_v60  ;;  %v8034_v33 = vld [vmem:[#allocation5 + $0xb70] sm:$0xf0]  ;;  %v7909_v41 = vor.u32 %v9882_v30, %v7906_v31  ;;  %v9814_v42 = vld [vmem:[#allocation5 + $0x844] sm:$0xf] }
 0x12d   : > { %4026 = vmatpush.bf16.msra.mxu3 %v8069_v1  ;;  %v7634_v43 = vld [vmem:[#allocation5 + $0x850] sm:$0xf0]  ;;  %v9846_v44 = vld [vmem:[#allocation5 + $0x944] sm:$0xf]  ;;  %v8037_v62 = vor.u32 %v9914_v32, %v8034_v33  ;;  %v3775_v30 = vpop.f32.mrf.mxu3 }
 0x12e   : > { %3988 = vmatpush.bf16.msra.mxu0 %v7669_v7  ;;  %v7762_v46 = vld [vmem:[#allocation5 + $0x950] sm:$0xf0]  ;;  %v9878_v47 = vld [vmem:[#allocation5 + $0xa44] sm:$0xf]  ;;  %v7637_v53 = vor.u32 %v9814_v42, %v7634_v43 }
 0x12f   : > { %4001 = vmatpush.bf16.msra.mxu1 %v7797_v11  ;;  %v7890_v48 = vld [vmem:[#allocation5 + $0xa50] sm:$0xf0]  ;;  %v9910_v51 = vld [vmem:[#allocation5 + $0xb44] sm:$0xf]  ;;  %v7765_v56 = vor.u32 %v9846_v44, %v7762_v46  ;;  %v3762_v17 = vpop.f32.mrf.mxu2 }
 0x130   : > { %4014 = vmatpush.bf16.msra.mxu2 %v7925_v12  ;;  %v8018_v52 = vld [vmem:[#allocation5 + $0xb50] sm:$0xf0]  ;;  %v7893_v57 = vor.u32 %v9878_v47, %v7890_v48  ;;  %v9810_v58 = vld [vmem:[#allocation5 + $0x824] sm:$0xf] }
 0x131   : > { %4027 = vmatpush.bf16.msra.mxu3 %v8053_v28  ;;  %v7618_v59 = vld [vmem:[#allocation5 + $0x830] sm:$0xf0]  ;;  %v9842_v60 = vld [vmem:[#allocation5 + $0x924] sm:$0xf]  ;;  %v8021_v63 = vor.u32 %v9910_v51, %v8018_v52 }
 0x132   : > { %3989 = vmatpush.bf16.msra.mxu0 %v7653_v36  ;;  %v7746_v0 = vld [vmem:[#allocation5 + $0x930] sm:$0xf0]  ;;  %v9874_v1 = vld [vmem:[#allocation5 + $0xa24] sm:$0xf]  ;;  %v7621_v5 = vor.u32 %v9810_v58, %v7618_v59 }
 0x133   : > { %4002 = vmatpush.bf16.msra.mxu1 %v7781_v39  ;;  %v7874_v2 = vld [vmem:[#allocation5 + $0xa30] sm:$0xf0]  ;;  %v9906_v3 = vld [vmem:[#allocation5 + $0xb24] sm:$0xf]  ;;  %v7749_v10 = vor.u32 %v9842_v60, %v7746_v0 }
 0x134   : > { %4015 = vmatpush.bf16.msra.mxu2 %v7909_v41  ;;  %v8002_v4 = vld [vmem:[#allocation5 + $0xb30] sm:$0xf0]  ;;  %v9806_v6 = vld [vmem:[#allocation5 + $0x804] sm:$0xf]  ;;  %v7877_v11 = vor.u32 %v9874_v1, %v7874_v2 }
 0x135   : > { %4028 = vmatpush.bf16.msra.mxu3 %v8037_v62  ;;  %v7602_v7 = vld [vmem:[#allocation5 + $0x810] sm:$0xf0]  ;;  %v9838_v12 = vld [vmem:[#allocation5 + $0x904] sm:$0xf]  ;;  %v8005_v21 = vor.u32 %v9906_v3, %v8002_v4 }
 0x136   : > { %3990 = vmatpush.bf16.msra.mxu0 %v7637_v53  ;;  %v7730_v14 = vld [vmem:[#allocation5 + $0x910] sm:$0xf0]  ;;  %v9870_v16 = vld [vmem:[#allocation5 + $0xa04] sm:$0xf]  ;;  %v7605_v35 = vor.u32 %v9806_v6, %v7602_v7 }
 0x137   : > { %4003 = vmatpush.bf16.msra.mxu1 %v7765_v56  ;;  %v7858_v24 = vld [vmem:[#allocation5 + $0xa10] sm:$0xf0]  ;;  %v9902_v28 = vld [vmem:[#allocation5 + $0xb04] sm:$0xf]  ;;  %v7733_v42 = vor.u32 %v9838_v12, %v7730_v14 }
 0x138   : > { %4016 = vmatpush.bf16.msra.mxu2 %v7893_v57  ;;  %v7986_v29 = vld [vmem:[#allocation5 + $0xb10] sm:$0xf0]  ;;  %v9962_v31 = vld [vmem:[#allocation5 + $0xce4] sm:$0xf]  ;;  %v7861_v43 = vor.u32 %v9870_v16, %v7858_v24 }
 0x139   : > { %4029 = vmatpush.bf16.msra.mxu3 %v8021_v63  ;;  %v8226_v32 = vld [vmem:[#allocation5 + $0xcf0] sm:$0xf0]  ;;  %v9994_v33 = vld [vmem:[#allocation5 + $0xde4] sm:$0xf]  ;;  %v7989_v62 = vor.u32 %v9902_v28, %v7986_v29 }
 0x13a   : > { %3991 = vmatpush.bf16.msra.mxu0 %v7621_v5  ;;  %v8354_v36 = vld [vmem:[#allocation5 + $0xdf0] sm:$0xf0]  ;;  %v10026_v39 = vld [vmem:[#allocation5 + $0xee4] sm:$0xf]  ;;  %v8229_v46 = vor.u32 %v9962_v31, %v8226_v32 }
 0x13b   : > { %v8482_v41 = vld [vmem:[#allocation5 + $0xef0] sm:$0xf0]  ;;  %4004 = vmatpush.bf16.msra.mxu1 %v7749_v10  ;;  %v10058_v44 = vld [vmem:[#allocation5 + $0xfe4] sm:$0xf]  ;;  %v8357_v47 = vor.u32 %v9994_v33, %v8354_v36 }
 0x13c   : > { %4017 = vmatpush.bf16.msra.mxu2 %v7877_v11  ;;  %v8610_v45 = vld [vmem:[#allocation5 + $0xff0] sm:$0xf0]  ;;  %v8485_v48 = vor.u32 %v10026_v39, %v8482_v41  ;;  %v9958_v49 = vld [vmem:[#allocation5 + $0xcc4] sm:$0xf] }
 0x13d   : > { %4030 = vmatpush.bf16.msra.mxu3 %v8005_v21  ;;  %v8210_v50 = vld [vmem:[#allocation5 + $0xcd0] sm:$0xf0]  ;;  %v9990_v51 = vld [vmem:[#allocation5 + $0xdc4] sm:$0xf]  ;;  %v8613_v52 = vor.u32 %v10058_v44, %v8610_v45 }
 0x13e   : > { %3992 = vmatpush.bf16.msra.mxu0 %v7605_v35  ;;  %v8338_v53 = vld [vmem:[#allocation5 + $0xdd0] sm:$0xf0]  ;;  %v10022_v55 = vld [vmem:[#allocation5 + $0xec4] sm:$0xf]  ;;  %v8213_v59 = vor.u32 %v9958_v49, %v8210_v50  ;;  %v3799_v36 = vpop.f32.mrf.mxu1 }
 0x13f   : > { %v8466_v56 = vld [vmem:[#allocation5 + $0xed0] sm:$0xf0]  ;;  %4005 = vmatpush.bf16.msra.mxu1 %v7733_v42  ;;  %v10054_v57 = vld [vmem:[#allocation5 + $0xfc4] sm:$0xf]  ;;  %v8341_v60 = vor.u32 %v9990_v51, %v8338_v53 }
 0x140   : > { %4018 = vmatpush.bf16.msra.mxu2 %v7861_v43  ;;  %v8594_v58 = vld [vmem:[#allocation5 + $0xfd0] sm:$0xf0]  ;;  %v8469_v61 = vor.u32 %v10022_v55, %v8466_v56  ;;  %v9954_v63 = vld [vmem:[#allocation5 + $0xca4] sm:$0xf] }
 0x141   : > { %4031 = vmatpush.bf16.msra.mxu3 %v7989_v62  ;;  %v8194_v0 = vld [vmem:[#allocation5 + $0xcb0] sm:$0xf0]  ;;  %v9986_v1 = vld [vmem:[#allocation5 + $0xda4] sm:$0xf]  ;;  %3993 = vmatmul.bf16.vlgmr.msra.gmra.mxu0 %v11149_v18  ;;  %v8597_v2 = vor.u32 %v10054_v57, %v8594_v58 }
 0x142   : > { %4037 = vmatpush.bf16.msrb.mxu0 %v8229_v46  ;;  %v8322_v3 = vld [vmem:[#allocation5 + $0xdb0] sm:$0xf0]  ;;  %v10018_v4 = vld [vmem:[#allocation5 + $0xea4] sm:$0xf]  ;;  %4006 = vmatmul.bf16.vlgmr.msra.gmra.mxu1 %v11153_v23  ;;  %v8197_v10 = vor.u32 %v9954_v63, %v8194_v0  ;;  %v3786_v30 = vpop.f32.mrf.mxu0 }
 0x143   : > { %4050 = vmatpush.bf16.msrb.mxu1 %v8357_v47  ;;  %v8450_v5 = vld [vmem:[#allocation5 + $0xeb0] sm:$0xf0]  ;;  %4019 = vmatmul.bf16.vlgmr.msra.gmra.mxu2 %v11151_v22  ;;  %v10050_v6 = vld [vmem:[#allocation5 + $0xfa4] sm:$0xf]  ;;  %v8325_v11 = vor.u32 %v9986_v1, %v8322_v3  ;;  %v3787_v33 = vadd.f32 %v3786_v30, %v11188_v54 }
 0x144   : > { %4063 = vmatpush.bf16.msrb.mxu2 %v8485_v48  ;;  %v8578_v7 = vld [vmem:[#allocation5 + $0xfb0] sm:$0xf0]  ;;  %4032 = vmatmul.bf16.vlgmr.msra.gmra.mxu3 %v11155_v27  ;;  %v8453_v12 = vor.u32 %v10018_v4, %v8450_v5  ;;  %v9950_v14 = vld [vmem:[#allocation5 + $0xc84] sm:$0xf] }
 0x145   : > { %4076 = vmatpush.bf16.msrb.mxu3 %v8613_v52  ;;  %v8178_v16 = vld [vmem:[#allocation5 + $0xc90] sm:$0xf0]  ;;  %v9982_v17 = vld [vmem:[#allocation5 + $0xd84] sm:$0xf]  ;;  %v8581_v21 = vor.u32 %v10050_v6, %v8578_v7  ;;  %v3800_v62 = vadd.f32 %v3799_v36, %v3787_v33 }
 0x146   : > { %4038 = vmatpush.bf16.msrb.mxu0 %v8213_v59  ;;  %v8306_v24 = vld [vmem:[#allocation5 + $0xd90] sm:$0xf0]  ;;  %v10014_v28 = vld [vmem:[#allocation5 + $0xe84] sm:$0xf]  ;;  %v8181_v35 = vor.u32 %v9950_v14, %v8178_v16  ;;  %v3825_v0 = vpop.f32.mrf.mxu3  ;;  %v3801_v5 = vpop.f32.mrf.mxu1 }
 0x147   : > { %4051 = vmatpush.bf16.msrb.mxu1 %v8341_v60  ;;  %v8434_v29 = vld [vmem:[#allocation5 + $0xe90] sm:$0xf0]  ;;  %v10046_v31 = vld [vmem:[#allocation5 + $0xf84] sm:$0xf]  ;;  %v8309_v39 = vor.u32 %v9982_v17, %v8306_v24  ;;  %v9641_v5 = vld [vmem:[#allocation5 + $0x2d4] sm:$0xf0] }
 0x148   : > { %4064 = vmatpush.bf16.msrb.mxu2 %v8469_v61  ;;  %v8562_v32 = vld [vmem:[#allocation5 + $0xf90] sm:$0xf0]  ;;  %v8437_v41 = vor.u32 %v10014_v28, %v8434_v29  ;;  %v9946_v42 = vld [vmem:[#allocation5 + $0xc64] sm:$0xf]  ;;  %v3812_v58 = vpop.f32.mrf.mxu2 }
 0x149   : > { %4077 = vmatpush.bf16.msrb.mxu3 %v8597_v2  ;;  %v8162_v43 = vld [vmem:[#allocation5 + $0xc70] sm:$0xf0]  ;;  %v9978_v44 = vld [vmem:[#allocation5 + $0xd64] sm:$0xf]  ;;  %v8565_v45 = vor.u32 %v10046_v31, %v8562_v32  ;;  %v3813_v63 = vadd.f32 %v3812_v58, %v3800_v62 }
 0x14a   : > { %4039 = vmatpush.bf16.msrb.mxu0 %v8197_v10  ;;  %v8290_v46 = vld [vmem:[#allocation5 + $0xd70] sm:$0xf0]  ;;  %v10010_v47 = vld [vmem:[#allocation5 + $0xe64] sm:$0xf]  ;;  %v8165_v51 = vor.u32 %v9946_v42, %v8162_v43  ;;  %v3788_v3 = vpop.f32.mrf.mxu0 }
 0x14b   : > { %4052 = vmatpush.bf16.msrb.mxu1 %v8325_v11  ;;  %v8418_v48 = vld [vmem:[#allocation5 + $0xe70] sm:$0xf0]  ;;  %v10042_v49 = vld [vmem:[#allocation5 + $0xf64] sm:$0xf]  ;;  %v8293_v54 = vor.u32 %v9978_v44, %v8290_v46  ;;  %v11195_v6 = vadd.f32 %v3825_v0, %v3813_v63  ;;  %v6696_v46 = vld [vmem:[#allocation5 + $0xe8] sm:$0xf] }
 0x14c   : > { %4065 = vmatpush.bf16.msrb.mxu2 %v8453_v12  ;;  %v8546_v50 = vld [vmem:[#allocation5 + $0xf70] sm:$0xf0]  ;;  %v8421_v52 = vor.u32 %v10010_v47, %v8418_v48  ;;  %v9942_v53 = vld [vmem:[#allocation5 + $0xc44] sm:$0xf]  ;;  %v9581_v47 = vld [vmem:[#allocation5 + $0xf4] sm:$0xf0] }
 0x14d   : > { %4078 = vmatpush.bf16.msrb.mxu3 %v8581_v21  ;;  %v8146_v55 = vld [vmem:[#allocation5 + $0xc50] sm:$0xf0]  ;;  %v9974_v56 = vld [vmem:[#allocation5 + $0xd44] sm:$0xf]  ;;  %v8549_v57 = vor.u32 %v10042_v49, %v8546_v50  ;;  %v6824_v48 = vld [vmem:[#allocation5 + $0x1e8] sm:$0xf] }
 0x14e   : > { %4040 = vmatpush.bf16.msrb.mxu0 %v8181_v35  ;;  %v8274_v59 = vld [vmem:[#allocation5 + $0xd50] sm:$0xf0]  ;;  %v10006_v60 = vld [vmem:[#allocation5 + $0xe44] sm:$0xf]  ;;  %v8149_v4 = vor.u32 %v9942_v53, %v8146_v55  ;;  %v3827_v49 = vpop.f32.mrf.mxu3  ;;  %v6680_v63 = vld [vmem:[#allocation5 + $0xc8] sm:$0xf] }
 0x14f   : > { %4053 = vmatpush.bf16.msrb.mxu1 %v8309_v39  ;;  %v8402_v61 = vld [vmem:[#allocation5 + $0xe50] sm:$0xf0]  ;;  %v10038_v1 = vld [vmem:[#allocation5 + $0xf44] sm:$0xf]  ;;  %v8277_v7 = vor.u32 %v9974_v56, %v8274_v59  ;;  %v7080_v56 = vld [vmem:[#allocation5 + $0x3e8] sm:$0xf]  ;;  %v6697_v59 = vor.u32 %v9581_v47, %v6696_v46 }
 0x150   : > { %4066 = vmatpush.bf16.msrb.mxu2 %v8437_v41  ;;  %v8530_v2 = vld [vmem:[#allocation5 + $0xf50] sm:$0xf0]  ;;  %v8405_v10 = vor.u32 %v10006_v60, %v8402_v61  ;;  %v9938_v11 = vld [vmem:[#allocation5 + $0xc24] sm:$0xf]  ;;  %v3814_v62 = vpop.f32.mrf.mxu2  ;;  %v9577_v0 = vld [vmem:[#allocation5 + $0xd4] sm:$0xf0] }
 0x151   : > { %4079 = vmatpush.bf16.msrb.mxu3 %v8565_v45  ;;  %v8130_v12 = vld [vmem:[#allocation5 + $0xc30] sm:$0xf0]  ;;  %v9970_v14 = vld [vmem:[#allocation5 + $0xd24] sm:$0xf]  ;;  %v8533_v16 = vor.u32 %v10038_v1, %v8530_v2  ;;  %v6808_v1 = vld [vmem:[#allocation5 + $0x1c8] sm:$0xf] }
 0x152   : > { %4041 = vmatpush.bf16.msrb.mxu0 %v8165_v51  ;;  %v8258_v17 = vld [vmem:[#allocation5 + $0xd30] sm:$0xf0]  ;;  %v10002_v21 = vld [vmem:[#allocation5 + $0xe24] sm:$0xf]  ;;  %v8133_v30 = vor.u32 %v9938_v11, %v8130_v12  ;;  %v9613_v51 = vld [vmem:[#allocation5 + $0x1f4] sm:$0xf0]  ;;  %v6681_v11 = vor.u32 %v9577_v0, %v6680_v63 }
 0x153   : > { %4054 = vmatpush.bf16.msrb.mxu1 %v8293_v54  ;;  %v8386_v24 = vld [vmem:[#allocation5 + $0xe30] sm:$0xf0]  ;;  %v10034_v28 = vld [vmem:[#allocation5 + $0xf24] sm:$0xf]  ;;  %v8261_v33 = vor.u32 %v9970_v14, %v8258_v17  ;;  %v6952_v54 = vld [vmem:[#allocation5 + $0x2e8] sm:$0xf]  ;;  %v6825_v60 = vor.u32 %v9613_v51, %v6824_v48 }
 0x154   : > { %4067 = vmatpush.bf16.msrb.mxu2 %v8421_v52  ;;  %v8514_v29 = vld [vmem:[#allocation5 + $0xf30] sm:$0xf0]  ;;  %v9934_v31 = vld [vmem:[#allocation5 + $0xc04] sm:$0xf]  ;;  %v8389_v35 = vor.u32 %v10002_v21, %v8386_v24  ;;  %v9645_v52 = vld [vmem:[#allocation5 + $0x2f4] sm:$0xf0] }
 0x155   : > { %4080 = vmatpush.bf16.msrb.mxu3 %v8549_v57  ;;  %v8114_v32 = vld [vmem:[#allocation5 + $0xc10] sm:$0xf0]  ;;  %v9966_v36 = vld [vmem:[#allocation5 + $0xd04] sm:$0xf]  ;;  %v8517_v42 = vor.u32 %v10034_v28, %v8514_v29  ;;  %v9677_v57 = vld [vmem:[#allocation5 + $0x3f4] sm:$0xf0]  ;;  %v6953_v61 = vor.u32 %v9645_v52, %v6952_v54 }
 0x156   : > { %4042 = vmatpush.bf16.msrb.mxu0 %v8149_v4  ;;  %v8242_v39 = vld [vmem:[#allocation5 + $0xd10] sm:$0xf0]  ;;  %v9998_v41 = vld [vmem:[#allocation5 + $0xe04] sm:$0xf]  ;;  %v8117_v50 = vor.u32 %v9934_v31, %v8114_v32  ;;  %v7081_v2 = vor.u32 %v9677_v57, %v7080_v56  ;;  %v9609_v3 = vld [vmem:[#allocation5 + $0x1d4] sm:$0xf0] }
 0x157   : > { %4055 = vmatpush.bf16.msrb.mxu1 %v8277_v7  ;;  %v8370_v43 = vld [vmem:[#allocation5 + $0xe10] sm:$0xf0]  ;;  %v10030_v44 = vld [vmem:[#allocation5 + $0xf04] sm:$0xf]  ;;  %v8245_v53 = vor.u32 %v9966_v36, %v8242_v39  ;;  %v6936_v4 = vld [vmem:[#allocation5 + $0x2c8] sm:$0xf]  ;;  %v6809_v12 = vor.u32 %v9609_v3, %v6808_v1 }
 0x158   : > { %4068 = vmatpush.bf16.msrb.mxu2 %v8405_v10  ;;  %v8498_v45 = vld [vmem:[#allocation5 + $0xf10] sm:$0xf0]  ;;  %v8373_v55 = vor.u32 %v9998_v41, %v8370_v43  ;;  %v7064_v7 = vld [vmem:[#allocation5 + $0x3c8] sm:$0xf]  ;;  %v9673_v10 = vld [vmem:[#allocation5 + $0x3d4] sm:$0xf0]  ;;  %v6937_v14 = vor.u32 %v9641_v5, %v6936_v4 }
 0x159   : > { %4081 = vmatpush.bf16.msrb.mxu3 %v8533_v16  ;;  %v8501_v58 = vor.u32 %v10030_v44, %v8498_v45  ;;  %v6664_v16 = vld [vmem:[#allocation5 + $0xa8] sm:$0xf]  ;;  %v9573_v17 = vld [vmem:[#allocation5 + $0xb4] sm:$0xf0]  ;;  %v7065_v24 = vor.u32 %v9673_v10, %v7064_v7 }
 0x15a   : > { %4043 = vmatpush.bf16.msrb.mxu0 %v8133_v30  ;;  %v6792_v21 = vld [vmem:[#allocation5 + $0x1a8] sm:$0xf]  ;;  %v9605_v28 = vld [vmem:[#allocation5 + $0x1b4] sm:$0xf0] }
 0x15b   : > { %4056 = vmatpush.bf16.msrb.mxu1 %v8261_v33  ;;  %v6920_v29 = vld [vmem:[#allocation5 + $0x2a8] sm:$0xf]  ;;  %v9637_v30 = vld [vmem:[#allocation5 + $0x2b4] sm:$0xf0]  ;;  %v6665_v33 = vor.u32 %v9573_v17, %v6664_v16 }
 0x15c   : > { %4069 = vmatpush.bf16.msrb.mxu2 %v8389_v35  ;;  %v7048_v31 = vld [vmem:[#allocation5 + $0x3a8] sm:$0xf]  ;;  %v9669_v32 = vld [vmem:[#allocation5 + $0x3b4] sm:$0xf0]  ;;  %v6793_v35 = vor.u32 %v9605_v28, %v6792_v21  ;;  %v6921_v36 = vor.u32 %v9637_v30, %v6920_v29 }
 0x15d   : > { %4082 = vmatpush.bf16.msrb.mxu3 %v8517_v42  ;;  %v6648_v39 = vld [vmem:[#allocation5 + $0x88] sm:$0xf]  ;;  %v9569_v41 = vld [vmem:[#allocation5 + $0x94] sm:$0xf0]  ;;  %v7049_v43 = vor.u32 %v9669_v32, %v7048_v31 }
 0x15e   : > { %4044 = vmatpush.bf16.msrb.mxu0 %v8117_v50  ;;  %v6776_v42 = vld [vmem:[#allocation5 + $0x188] sm:$0xf]  ;;  %v9601_v44 = vld [vmem:[#allocation5 + $0x194] sm:$0xf0]  ;;  %v6649_v50 = vor.u32 %v9569_v41, %v6648_v39 }
 0x15f   : > { %4057 = vmatpush.bf16.msrb.mxu1 %v8245_v53  ;;  %v6904_v45 = vld [vmem:[#allocation5 + $0x288] sm:$0xf]  ;;  %v9633_v62 = vld [vmem:[#allocation5 + $0x294] sm:$0xf0]  ;;  %v3851_v51 = vpop.f32.mrf.mxu1  ;;  %v6777_v54 = vor.u32 %v9601_v44, %v6776_v42 }
 0x160   : > { %4070 = vmatpush.bf16.msrb.mxu2 %v8373_v55  ;;  %v3838_v46 = vpop.f32.mrf.mxu0  ;;  %v7032_v47 = vld [vmem:[#allocation5 + $0x388] sm:$0xf]  ;;  %v9665_v48 = vld [vmem:[#allocation5 + $0x394] sm:$0xf0]  ;;  %v6905_v52 = vor.u32 %v9633_v62, %v6904_v45 }
 0x161   : > { %4083 = vmatpush.bf16.msrb.mxu3 %v8501_v58  ;;  %4045 = vmatmul.bf16.vlgmr.msrb.gmra.mxu0 %v11165_v13  ;;  %v3839_v49 = vadd.f32 %v3838_v46, %v11195_v6  ;;  %v6632_v53 = vld [vmem:[#allocation5 + $0x68] sm:$0xf]  ;;  %v9565_v55 = vld [vmem:[#allocation5 + $0x74] sm:$0xf0]  ;;  %v7033_v57 = vor.u32 %v9665_v48, %v7032_v47 }
 0x162   : > { %4089 = vmatpush.bf16.msra.mxu0 %v6697_v59  ;;  %4058 = vmatmul.bf16.vlgmr.msrb.gmra.mxu1 %v11169_v20  ;;  %v6760_v56 = vld [vmem:[#allocation5 + $0x168] sm:$0xf]  ;;  %v9597_v59 = vld [vmem:[#allocation5 + $0x174] sm:$0xf0]  ;;  %v6633_v1 = vor.u32 %v9565_v55, %v6632_v53 }
 0x163   : > { %4102 = vmatpush.bf16.msra.mxu1 %v6825_v60  ;;  %4071 = vmatmul.bf16.vlgmr.msrb.gmra.mxu2 %v11167_v19  ;;  %v3852_v58 = vadd.f32 %v3851_v51, %v3839_v49  ;;  %v6888_v60 = vld [vmem:[#allocation5 + $0x268] sm:$0xf]  ;;  %v9661_v0 = vld [vmem:[#allocation5 + $0x374] sm:$0xf0]  ;;  %v6761_v6 = vor.u32 %v9597_v59, %v6760_v56 }
 0x164   : > { %4115 = vmatpush.bf16.msra.mxu2 %v6953_v61  ;;  %4084 = vmatmul.bf16.vlgmr.msrb.gmra.mxu3 %v11171_v26  ;;  %v9629_v61 = vld [vmem:[#allocation5 + $0x274] sm:$0xf0]  ;;  %v7016_v63 = vld [vmem:[#allocation5 + $0x368] sm:$0xf] }
 0x165   : > { %4128 = vmatpush.bf16.msra.mxu3 %v7081_v2  ;;  %v6889_v2 = vor.u32 %v9629_v61, %v6888_v60  ;;  %v6616_v3 = vld [vmem:[#allocation5 + $0x48] sm:$0xf]  ;;  %v9561_v4 = vld [vmem:[#allocation5 + $0x54] sm:$0xf0]  ;;  %v7017_v7 = vor.u32 %v9661_v0, %v7016_v63 }
 0x166   : > { %4090 = vmatpush.bf16.msra.mxu0 %v6681_v11  ;;  %v6744_v5 = vld [vmem:[#allocation5 + $0x148] sm:$0xf]  ;;  %v9593_v11 = vld [vmem:[#allocation5 + $0x154] sm:$0xf0]  ;;  %v6617_v29 = vor.u32 %v9561_v4, %v6616_v3 }
 0x167   : > { %4103 = vmatpush.bf16.msra.mxu1 %v6809_v12  ;;  %v6872_v12 = vld [vmem:[#allocation5 + $0x248] sm:$0xf]  ;;  %v3877_v17 = vpop.f32.mrf.mxu3  ;;  %v3853_v30 = vpop.f32.mrf.mxu1  ;;  %v6745_v32 = vor.u32 %v9593_v11, %v6744_v5  ;;  %v9589_v42 = vld [vmem:[#allocation5 + $0x134] sm:$0xf0] }
 0x168   : > { %4116 = vmatpush.bf16.msra.mxu2 %v6937_v14  ;;  %v3864_v10 = vpop.f32.mrf.mxu2  ;;  %v9625_v14 = vld [vmem:[#allocation5 + $0x254] sm:$0xf0]  ;;  %v7000_v21 = vld [vmem:[#allocation5 + $0x348] sm:$0xf]  ;;  %v3840_v28 = vpop.f32.mrf.mxu0 }
 0x169   : > { %4129 = vmatpush.bf16.msra.mxu3 %v7065_v24  ;;  %v3865_v16 = vadd.f32 %v3864_v10, %v3852_v58  ;;  %v9657_v24 = vld [vmem:[#allocation5 + $0x354] sm:$0xf0]  ;;  %v6728_v39 = vld [vmem:[#allocation5 + $0x128] sm:$0xf] }
 0x16a   : > { %4091 = vmatpush.bf16.msra.mxu0 %v6665_v33  ;;  %v6873_v33 = vor.u32 %v9625_v14, %v6872_v12  ;;  %v7001_v41 = vor.u32 %v9657_v24, %v7000_v21  ;;  %v9621_v44 = vld [vmem:[#allocation5 + $0x234] sm:$0xf0]  ;;  %v6984_v45 = vld [vmem:[#allocation5 + $0x328] sm:$0xf]  ;;  %v6729_v49 = vor.u32 %v9589_v42, %v6728_v39 }
 0x16b   : > { %4104 = vmatpush.bf16.msra.mxu1 %v6793_v35  ;;  %v11202_v31 = vadd.f32 %v3877_v17, %v3865_v16  ;;  %v6600_v35 = vld [vmem:[#allocation5 + $0x28] sm:$0xf]  ;;  %v9653_v62 = vld [vmem:[#allocation5 + $0x334] sm:$0xf0] }
 0x16c   : > { %4117 = vmatpush.bf16.msra.mxu2 %v6921_v36  ;;  %v9557_v36 = vld [vmem:[#allocation5 + $0x34] sm:$0xf0]  ;;  %v6584_v47 = vld [vmem:[#allocation5 + $0x8] sm:$0xf]  ;;  %v6985_v53 = vor.u32 %v9653_v62, %v6984_v45 }
 0x16d   : > { %4130 = vmatpush.bf16.msra.mxu3 %v7049_v43  ;;  %v6856_v43 = vld [vmem:[#allocation5 + $0x228] sm:$0xf]  ;;  %v6601_v46 = vor.u32 %v9557_v36, %v6600_v35  ;;  %v9553_v48 = vld [vmem:[#allocation5 + $0x14] sm:$0xf0] }
 0x16e   : > { %4092 = vmatpush.bf16.msra.mxu0 %v6649_v50  ;;  %v6857_v50 = vor.u32 %v9621_v44, %v6856_v43  ;;  %v6712_v51 = vld [vmem:[#allocation5 + $0x108] sm:$0xf]  ;;  %v9617_v55 = vld [vmem:[#allocation5 + $0x214] sm:$0xf0]  ;;  %v6585_v0 = vor.u32 %v9553_v48, %v6584_v47 }
 0x16f   : > { %4105 = vmatpush.bf16.msra.mxu1 %v6777_v54  ;;  %v9585_v54 = vld [vmem:[#allocation5 + $0x114] sm:$0xf0]  ;;  %v6968_v56 = vld [vmem:[#allocation5 + $0x308] sm:$0xf]  ;;  %v3879_v63 = vpop.f32.mrf.mxu3 }
 0x170   : > { %4118 = vmatpush.bf16.msra.mxu2 %v6905_v52  ;;  %v6840_v52 = vld [vmem:[#allocation5 + $0x208] sm:$0xf]  ;;  %v3866_v58 = vpop.f32.mrf.mxu2  ;;  %v9709_v60 = vld [vmem:[#allocation5 + $0x4f4] sm:$0xf0]  ;;  %v6713_v3 = vor.u32 %v9585_v54, %v6712_v51 }
 0x171   : > { %4131 = vmatpush.bf16.msra.mxu3 %v7033_v57  ;;  %v9649_v57 = vld [vmem:[#allocation5 + $0x314] sm:$0xf0]  ;;  %v7208_v59 = vld [vmem:[#allocation5 + $0x4e8] sm:$0xf]  ;;  %v6841_v4 = vor.u32 %v9617_v55, %v6840_v52  ;;  %v10438_v55 = vld [vmem:[#allocation7] sm:$0xf] }
 0x172   : > { %4093 = vmatpush.bf16.msra.mxu0 %v6633_v1  ;;  %v7336_v61 = vld [vmem:[#allocation5 + $0x5e8] sm:$0xf]  ;;  %v9741_v1 = vld [vmem:[#allocation5 + $0x5f4] sm:$0xf0]  ;;  %v6969_v10 = vor.u32 %v9649_v57, %v6968_v56  ;;  %v7209_v11 = vor.u32 %v9709_v60, %v7208_v59  ;;  %v1106_v56 = vperm.slane %v10438_v55, 1 }
 0x173   : > { %4106 = vmatpush.bf16.msra.mxu1 %v6761_v6  ;;  %v7464_v6 = vld [vmem:[#allocation5 + $0x6e8] sm:$0xf]  ;;  %v7337_v12 = vor.u32 %v9741_v1, %v7336_v61  ;;  %v9705_v17 = vld [vmem:[#allocation5 + $0x4d4] sm:$0xf0] }
 0x174   : > { %4119 = vmatpush.bf16.msra.mxu2 %v6889_v2  ;;  %v9773_v2 = vld [vmem:[#allocation5 + $0x6f4] sm:$0xf0]  ;;  %v7592_v5 = vld [vmem:[#allocation5 + $0x7e8] sm:$0xf] }
 0x175   : > { %4132 = vmatpush.bf16.msra.mxu3 %v7017_v7  ;;  %v9805_v7 = vld [vmem:[#allocation5 + $0x7f4] sm:$0xf0]  ;;  %v7465_v14 = vor.u32 %v9773_v2, %v7464_v6  ;;  %v7192_v16 = vld [vmem:[#allocation5 + $0x4c8] sm:$0xf] }
 0x176   : > { %4094 = vmatpush.bf16.msra.mxu0 %v6617_v29  ;;  %v7320_v21 = vld [vmem:[#allocation5 + $0x5c8] sm:$0xf]  ;;  %v7593_v24 = vor.u32 %v9805_v7, %v7592_v5  ;;  %v9737_v28 = vld [vmem:[#allocation5 + $0x5d4] sm:$0xf0]  ;;  %v7193_v35 = vor.u32 %v9705_v17, %v7192_v16 }
 0x177   : > { %4107 = vmatpush.bf16.msra.mxu1 %v6745_v32  ;;  %v7448_v29 = vld [vmem:[#allocation5 + $0x6c8] sm:$0xf]  ;;  %v9769_v30 = vld [vmem:[#allocation5 + $0x6d4] sm:$0xf0]  ;;  %v7321_v36 = vor.u32 %v9737_v28, %v7320_v21 }
 0x178   : > { %4120 = vmatpush.bf16.msra.mxu2 %v6873_v33  ;;  %v7576_v32 = vld [vmem:[#allocation5 + $0x7c8] sm:$0xf]  ;;  %v9801_v33 = vld [vmem:[#allocation5 + $0x7d4] sm:$0xf0]  ;;  %v7449_v39 = vor.u32 %v9769_v30, %v7448_v29 }
 0x179   : > { %4133 = vmatpush.bf16.msra.mxu3 %v7001_v41  ;;  %v7176_v41 = vld [vmem:[#allocation5 + $0x4a8] sm:$0xf]  ;;  %v9701_v42 = vld [vmem:[#allocation5 + $0x4b4] sm:$0xf0]  ;;  %v7577_v44 = vor.u32 %v9801_v33, %v7576_v32 }
 0x17a   : > { %4095 = vmatpush.bf16.msra.mxu0 %v6601_v46  ;;  %v7304_v43 = vld [vmem:[#allocation5 + $0x5a8] sm:$0xf]  ;;  %v9733_v45 = vld [vmem:[#allocation5 + $0x5b4] sm:$0xf0] }
 0x17b   : > { %4108 = vmatpush.bf16.msra.mxu1 %v6729_v49  ;;  %v7432_v62 = vld [vmem:[#allocation5 + $0x6a8] sm:$0xf]  ;;  %v9765_v46 = vld [vmem:[#allocation5 + $0x6b4] sm:$0xf0]  ;;  %v7177_v49 = vor.u32 %v9701_v42, %v7176_v41  ;;  %v7305_v51 = vor.u32 %v9733_v45, %v7304_v43 }
 0x17c   : > { %4121 = vmatpush.bf16.msra.mxu2 %v6857_v50  ;;  %v7560_v47 = vld [vmem:[#allocation5 + $0x7a8] sm:$0xf]  ;;  %v9797_v48 = vld [vmem:[#allocation5 + $0x7b4] sm:$0xf0]  ;;  %v7433_v54 = vor.u32 %v9765_v46, %v7432_v62 }
 0x17d   : > { %4134 = vmatpush.bf16.msra.mxu3 %v6985_v53  ;;  %v7160_v50 = vld [vmem:[#allocation5 + $0x488] sm:$0xf]  ;;  %v9697_v52 = vld [vmem:[#allocation5 + $0x494] sm:$0xf0]  ;;  %v7561_v57 = vor.u32 %v9797_v48, %v7560_v47 }
 0x17e   : > { %4096 = vmatpush.bf16.msra.mxu0 %v6585_v0  ;;  %v7288_v53 = vld [vmem:[#allocation5 + $0x588] sm:$0xf]  ;;  %v9729_v58 = vld [vmem:[#allocation5 + $0x594] sm:$0xf0]  ;;  %v7161_v0 = vor.u32 %v9697_v52, %v7160_v50  ;;  %v3890_v1 = vpop.f32.mrf.mxu0 }
 0x17f   : > { %4109 = vmatpush.bf16.msra.mxu1 %v6713_v3  ;;  %v7416_v59 = vld [vmem:[#allocation5 + $0x688] sm:$0xf]  ;;  %v9761_v60 = vld [vmem:[#allocation5 + $0x694] sm:$0xf0]  ;;  %v7289_v6 = vor.u32 %v9729_v58, %v7288_v53  ;;  %v3891_v7 = vadd.f32 %v3890_v1, %v1106_v56 }
 0x180   : > { %4122 = vmatpush.bf16.msra.mxu2 %v6841_v4  ;;  %v7544_v61 = vld [vmem:[#allocation5 + $0x788] sm:$0xf]  ;;  %v9793_v63 = vld [vmem:[#allocation5 + $0x794] sm:$0xf0]  ;;  %v7417_v2 = vor.u32 %v9761_v60, %v7416_v59 }
 0x181   : > { %4135 = vmatpush.bf16.msra.mxu3 %v6969_v10  ;;  %4097 = vmatmul.bf16.vlgmr.msra.gmra.mxu0 %v11117_v9  ;;  %v7144_v3 = vld [vmem:[#allocation5 + $0x468] sm:$0xf]  ;;  %v9693_v4 = vld [vmem:[#allocation5 + $0x474] sm:$0xf0]  ;;  %v3903_v10 = vpop.f32.mrf.mxu1 }
 0x182   : > { %4141 = vmatpush.bf16.msrb.mxu0 %v7209_v11  ;;  %4110 = vmatmul.bf16.vlgmr.msra.gmra.mxu1 %v11126_v25  ;;  %v7272_v5 = vld [vmem:[#allocation5 + $0x568] sm:$0xf]  ;;  %v7545_v11 = vor.u32 %v9793_v63, %v7544_v61  ;;  %v9757_v16 = vld [vmem:[#allocation5 + $0x674] sm:$0xf0]  ;;  %v7145_v28 = vor.u32 %v9693_v4, %v7144_v3 }
 0x183   : > { %4154 = vmatpush.bf16.msrb.mxu1 %v7337_v12  ;;  %4123 = vmatmul.bf16.vlgmr.msra.gmra.mxu2 %v11115_v8  ;;  %v9725_v12 = vld [vmem:[#allocation5 + $0x574] sm:$0xf0]  ;;  %v7528_v17 = vld [vmem:[#allocation5 + $0x768] sm:$0xf] }
 0x184   : > { %4167 = vmatpush.bf16.msrb.mxu2 %v7465_v14  ;;  %4136 = vmatmul.bf16.vlgmr.msra.gmra.mxu3 %v11120_v15  ;;  %v7400_v14 = vld [vmem:[#allocation5 + $0x668] sm:$0xf]  ;;  %v9789_v21 = vld [vmem:[#allocation5 + $0x774] sm:$0xf0]  ;;  %v7273_v29 = vor.u32 %v9725_v12, %v7272_v5 }
 0x185   : > { %4180 = vmatpush.bf16.msrb.mxu3 %v7593_v24  ;;  %v3904_v24 = vadd.f32 %v3903_v10, %v3891_v7  ;;  %v7401_v30 = vor.u32 %v9757_v16, %v7400_v14  ;;  %v7128_v32 = vld [vmem:[#allocation5 + $0x448] sm:$0xf]  ;;  %v9689_v33 = vld [vmem:[#allocation5 + $0x454] sm:$0xf0] }
 0x186   : > { %4142 = vmatpush.bf16.msrb.mxu0 %v7193_v35  ;;  %v7256_v35 = vld [vmem:[#allocation5 + $0x548] sm:$0xf]  ;;  %v9721_v41 = vld [vmem:[#allocation5 + $0x554] sm:$0xf0]  ;;  %v7129_v47 = vor.u32 %v9689_v33, %v7128_v32 }
 0x187   : > { %4155 = vmatpush.bf16.msrb.mxu1 %v7321_v36  ;;  %v3916_v36 = vpop.f32.mrf.mxu2  ;;  %v7384_v42 = vld [vmem:[#allocation5 + $0x648] sm:$0xf]  ;;  %v9753_v43 = vld [vmem:[#allocation5 + $0x654] sm:$0xf0]  ;;  %v3929_v45 = vpop.f32.mrf.mxu3  ;;  %v7257_v50 = vor.u32 %v9721_v41, %v7256_v35 }
 0x188   : > { %4168 = vmatpush.bf16.msrb.mxu2 %v7449_v39  ;;  %v7529_v39 = vor.u32 %v9789_v21, %v7528_v17  ;;  %v7512_v62 = vld [vmem:[#allocation5 + $0x748] sm:$0xf]  ;;  %v9785_v46 = vld [vmem:[#allocation5 + $0x754] sm:$0xf0] }
 0x189   : > { %4181 = vmatpush.bf16.msrb.mxu3 %v7577_v44  ;;  %v3917_v44 = vadd.f32 %v3916_v36, %v3904_v24  ;;  %v9685_v52 = vld [vmem:[#allocation5 + $0x434] sm:$0xf0]  ;;  %v7240_v53 = vld [vmem:[#allocation5 + $0x528] sm:$0xf]  ;;  %v3905_v55 = vpop.f32.mrf.mxu1  ;;  %v7513_v56 = vor.u32 %v9785_v46, %v7512_v62 }
 0x18a   : > { %4143 = vmatpush.bf16.msrb.mxu0 %v7177_v49  ;;  %v3892_v49 = vpop.f32.mrf.mxu0  ;;  %v7368_v58 = vld [vmem:[#allocation5 + $0x628] sm:$0xf]  ;;  %v9749_v59 = vld [vmem:[#allocation5 + $0x634] sm:$0xf0] }
 0x18b   : > { %4156 = vmatpush.bf16.msrb.mxu1 %v7305_v51  ;;  %v11208_v48 = vadd.f32 %v3929_v45, %v3917_v44  ;;  %v7385_v51 = vor.u32 %v9753_v43, %v7384_v42  ;;  %v7496_v60 = vld [vmem:[#allocation5 + $0x728] sm:$0xf]  ;;  %v9781_v61 = vld [vmem:[#allocation5 + $0x734] sm:$0xf0] }
 0x18c   : > { %4169 = vmatpush.bf16.msrb.mxu2 %v7433_v54  ;;  %v7112_v54 = vld [vmem:[#allocation5 + $0x428] sm:$0xf]  ;;  %v9681_v1 = vld [vmem:[#allocation5 + $0x414] sm:$0xf0]  ;;  %v7497_v10 = vor.u32 %v9781_v61, %v7496_v60 }
 0x18d   : > { %4182 = vmatpush.bf16.msrb.mxu3 %v7561_v57  ;;  %v9717_v57 = vld [vmem:[#allocation5 + $0x534] sm:$0xf0]  ;;  %v7113_v63 = vor.u32 %v9685_v52, %v7112_v54  ;;  %v7224_v3 = vld [vmem:[#allocation5 + $0x508] sm:$0xf] }
 0x18e   : > { %4144 = vmatpush.bf16.msrb.mxu0 %v7161_v0  ;;  %v7096_v0 = vld [vmem:[#allocation5 + $0x408] sm:$0xf]  ;;  %v9713_v4 = vld [vmem:[#allocation5 + $0x514] sm:$0xf0] }
 0x18f   : > { %4157 = vmatpush.bf16.msrb.mxu1 %v7289_v6  ;;  %v7241_v6 = vor.u32 %v9717_v57, %v7240_v53  ;;  %v7352_v5 = vld [vmem:[#allocation5 + $0x608] sm:$0xf]  ;;  %v3918_v7 = vpop.f32.mrf.mxu2  ;;  %v9777_v14 = vld [vmem:[#allocation5 + $0x714] sm:$0xf0]  ;;  %v3931_v16 = vpop.f32.mrf.mxu3  ;;  %v7225_v33 = vor.u32 %v9713_v4, %v7224_v3 }
 0x190   : > { %4170 = vmatpush.bf16.msrb.mxu2 %v7417_v2  ;;  %v7369_v2 = vor.u32 %v9749_v59, %v7368_v58  ;;  %v7480_v12 = vld [vmem:[#allocation5 + $0x708] sm:$0xf]  ;;  %v9837_v21 = vld [vmem:[#allocation5 + $0x8f4] sm:$0xf0] }
 0x191   : > { %4183 = vmatpush.bf16.msrb.mxu3 %v7545_v11  ;;  %v9745_v11 = vld [vmem:[#allocation5 + $0x614] sm:$0xf0]  ;;  %v7720_v17 = vld [vmem:[#allocation5 + $0x8e8] sm:$0xf]  ;;  %v7481_v41 = vor.u32 %v9777_v14, %v7480_v12 }
 0x192   : > { %4145 = vmatpush.bf16.msrb.mxu0 %v7145_v28  ;;  %v7848_v24 = vld [vmem:[#allocation5 + $0x9e8] sm:$0xf]  ;;  %v7097_v28 = vor.u32 %v9681_v1, %v7096_v0  ;;  %v9901_v32 = vld [vmem:[#allocation5 + $0xaf4] sm:$0xf0]  ;;  %v7353_v35 = vor.u32 %v9745_v11, %v7352_v5  ;;  %v7721_v42 = vor.u32 %v9837_v21, %v7720_v17 }
 0x193   : > { %4158 = vmatpush.bf16.msrb.mxu1 %v7273_v29  ;;  %v9869_v29 = vld [vmem:[#allocation5 + $0x9f4] sm:$0xf0]  ;;  %v8104_v36 = vld [vmem:[#allocation5 + $0xbe8] sm:$0xf] }
 0x194   : > { %4171 = vmatpush.bf16.msrb.mxu2 %v7401_v30  ;;  %v7976_v30 = vld [vmem:[#allocation5 + $0xae8] sm:$0xf]  ;;  %v7849_v43 = vor.u32 %v9869_v29, %v7848_v24  ;;  %v9833_v62 = vld [vmem:[#allocation5 + $0x8d4] sm:$0xf0] }
 0x195   : > { %4184 = vmatpush.bf16.msrb.mxu3 %v7529_v39  ;;  %v9933_v39 = vld [vmem:[#allocation5 + $0xbf4] sm:$0xf0]  ;;  %v7977_v44 = vor.u32 %v9901_v32, %v7976_v30  ;;  %v7704_v45 = vld [vmem:[#allocation5 + $0x8c8] sm:$0xf] }
 0x196   : > { %4146 = vmatpush.bf16.msrb.mxu0 %v7129_v47  ;;  %v7832_v46 = vld [vmem:[#allocation5 + $0x9c8] sm:$0xf]  ;;  %v8105_v47 = vor.u32 %v9933_v39, %v8104_v36  ;;  %v9865_v49 = vld [vmem:[#allocation5 + $0x9d4] sm:$0xf0]  ;;  %v7705_v53 = vor.u32 %v9833_v62, %v7704_v45 }
 0x197   : > { %4159 = vmatpush.bf16.msrb.mxu1 %v7257_v50  ;;  %v7960_v50 = vld [vmem:[#allocation5 + $0xac8] sm:$0xf]  ;;  %v9929_v52 = vld [vmem:[#allocation5 + $0xbd4] sm:$0xf0]  ;;  %v7833_v55 = vor.u32 %v9865_v49, %v7832_v46 }
 0x198   : > { %4172 = vmatpush.bf16.msrb.mxu2 %v7385_v51  ;;  %v9897_v51 = vld [vmem:[#allocation5 + $0xad4] sm:$0xf0]  ;;  %v8088_v54 = vld [vmem:[#allocation5 + $0xbc8] sm:$0xf] }
 0x199   : > { %4185 = vmatpush.bf16.msrb.mxu3 %v7513_v56  ;;  %v7961_v56 = vor.u32 %v9897_v51, %v7960_v50  ;;  %v7688_v57 = vld [vmem:[#allocation5 + $0x8a8] sm:$0xf]  ;;  %v9829_v58 = vld [vmem:[#allocation5 + $0x8b4] sm:$0xf0]  ;;  %v8089_v60 = vor.u32 %v9929_v52, %v8088_v54 }
 0x19a   : > { %4147 = vmatpush.bf16.msrb.mxu0 %v7113_v63  ;;  %v7816_v59 = vld [vmem:[#allocation5 + $0x9a8] sm:$0xf]  ;;  %v9861_v61 = vld [vmem:[#allocation5 + $0x9b4] sm:$0xf0] }
 0x19b   : > { %4160 = vmatpush.bf16.msrb.mxu1 %v7241_v6  ;;  %v7944_v63 = vld [vmem:[#allocation5 + $0xaa8] sm:$0xf]  ;;  %v9893_v0 = vld [vmem:[#allocation5 + $0xab4] sm:$0xf0]  ;;  %v7817_v3 = vor.u32 %v9861_v61, %v7816_v59 }
 0x19c   : > { %4173 = vmatpush.bf16.msrb.mxu2 %v7369_v2  ;;  %v8072_v1 = vld [vmem:[#allocation5 + $0xba8] sm:$0xf]  ;;  %v9925_v6 = vld [vmem:[#allocation5 + $0xbb4] sm:$0xf0]  ;;  %v7689_v2 = vor.u32 %v9829_v58, %v7688_v57  ;;  %v7945_v4 = vor.u32 %v9893_v0, %v7944_v63 }
 0x19d   : > { %4186 = vmatpush.bf16.msrb.mxu3 %v7497_v10  ;;  %v7672_v5 = vld [vmem:[#allocation5 + $0x888] sm:$0xf]  ;;  %v9825_v7 = vld [vmem:[#allocation5 + $0x894] sm:$0xf0]  ;;  %v8073_v11 = vor.u32 %v9925_v6, %v8072_v1 }
 0x19e   : > { %4148 = vmatpush.bf16.msrb.mxu0 %v7097_v28  ;;  %v7800_v10 = vld [vmem:[#allocation5 + $0x988] sm:$0xf]  ;;  %v9857_v12 = vld [vmem:[#allocation5 + $0x994] sm:$0xf0]  ;;  %v7673_v24 = vor.u32 %v9825_v7, %v7672_v5  ;;  %v3942_v28 = vpop.f32.mrf.mxu0 }
 0x19f   : > { %4161 = vmatpush.bf16.msrb.mxu1 %v7225_v33  ;;  %v7928_v14 = vld [vmem:[#allocation5 + $0xa88] sm:$0xf]  ;;  %v9889_v16 = vld [vmem:[#allocation5 + $0xa94] sm:$0xf0]  ;;  %v7801_v29 = vor.u32 %v9857_v12, %v7800_v10  ;;  %v3943_v36 = vadd.f32 %v3942_v28, %v11208_v48  ;;  %v3955_v39 = vpop.f32.mrf.mxu1 }
 0x1a0   : > { %4174 = vmatpush.bf16.msrb.mxu2 %v7353_v35  ;;  %v8056_v17 = vld [vmem:[#allocation5 + $0xb88] sm:$0xf]  ;;  %v9921_v21 = vld [vmem:[#allocation5 + $0xb94] sm:$0xf0]  ;;  %v7929_v30 = vor.u32 %v9889_v16, %v7928_v14 }
 0x1a1   : > { %4187 = vmatpush.bf16.msrb.mxu3 %v7481_v41  ;;  %4149 = vmatmul.bf16.vlgmr.msrb.gmra.mxu0 %v11135_v37  ;;  %v7656_v32 = vld [vmem:[#allocation5 + $0x868] sm:$0xf]  ;;  %v9821_v33 = vld [vmem:[#allocation5 + $0x874] sm:$0xf0]  ;;  %v8057_v41 = vor.u32 %v9921_v21, %v8056_v17  ;;  %v3956_v46 = vadd.f32 %v3955_v39, %v3943_v36 }
 0x1a2   : > { %4193 = vmatpush.bf16.msra.mxu0 %v7721_v42  ;;  %4162 = vmatmul.bf16.vlgmr.msrb.gmra.mxu1 %v11139_v40  ;;  %v7784_v35 = vld [vmem:[#allocation5 + $0x968] sm:$0xf]  ;;  %v9853_v42 = vld [vmem:[#allocation5 + $0x974] sm:$0xf0] }
 0x1a3   : > { %4206 = vmatpush.bf16.msra.mxu1 %v7849_v43  ;;  %4175 = vmatmul.bf16.vlgmr.msrb.gmra.mxu2 %v11133_v34  ;;  %v7912_v43 = vld [vmem:[#allocation5 + $0xa68] sm:$0xf]  ;;  %v9917_v62 = vld [vmem:[#allocation5 + $0xb74] sm:$0xf0]  ;;  %v7785_v49 = vor.u32 %v9853_v42, %v7784_v35 }
 0x1a4   : > { %4219 = vmatpush.bf16.msra.mxu2 %v7977_v44  ;;  %4188 = vmatmul.bf16.vlgmr.msrb.gmra.mxu3 %v11137_v38  ;;  %v9885_v44 = vld [vmem:[#allocation5 + $0xa74] sm:$0xf0]  ;;  %v8040_v45 = vld [vmem:[#allocation5 + $0xb68] sm:$0xf] }
 0x1a5   : > { %4232 = vmatpush.bf16.msra.mxu3 %v8105_v47  ;;  %v7657_v47 = vor.u32 %v9821_v33, %v7656_v32  ;;  %v7913_v50 = vor.u32 %v9885_v44, %v7912_v43  ;;  %v7640_v51 = vld [vmem:[#allocation5 + $0x848] sm:$0xf]  ;;  %v9817_v54 = vld [vmem:[#allocation5 + $0x854] sm:$0xf0]  ;;  %v8041_v48 = vor.u32 %v9917_v62, %v8040_v45 }
 0x1a6   : > { %4194 = vmatpush.bf16.msra.mxu0 %v7705_v53  ;;  %v7768_v52 = vld [vmem:[#allocation5 + $0x948] sm:$0xf]  ;;  %v3968_v53 = vpop.f32.mrf.mxu2  ;;  %v9881_v57 = vld [vmem:[#allocation5 + $0xa54] sm:$0xf0]  ;;  %v7641_v63 = vor.u32 %v9817_v54, %v7640_v51  ;;  %v3944_v1 = vpop.f32.mrf.mxu0 }
 0x1a7   : > { %4207 = vmatpush.bf16.msra.mxu1 %v7833_v55  ;;  %v9849_v55 = vld [vmem:[#allocation5 + $0x954] sm:$0xf0]  ;;  %v3969_v58 = vadd.f32 %v3968_v53, %v3956_v46  ;;  %v3981_v59 = vpop.f32.mrf.mxu3  ;;  %v7752_v5 = vld [vmem:[#allocation5 + $0x928] sm:$0xf]  ;;  %v3957_v7 = vpop.f32.mrf.mxu1 }
 0x1a8   : > { %4220 = vmatpush.bf16.msra.mxu2 %v7961_v56  ;;  %v7896_v56 = vld [vmem:[#allocation5 + $0xa48] sm:$0xf]  ;;  %v9913_v61 = vld [vmem:[#allocation5 + $0xb54] sm:$0xf0]  ;;  %v7769_v6 = vor.u32 %v9849_v55, %v7768_v52 }
 0x1a9   : > { %4233 = vmatpush.bf16.msra.mxu3 %v8089_v60  ;;  %v8024_v60 = vld [vmem:[#allocation5 + $0xb48] sm:$0xf]  ;;  %v11215_v0 = vadd.f32 %v3981_v59, %v3969_v58  ;;  %v9877_v14 = vld [vmem:[#allocation5 + $0xa34] sm:$0xf0] }
 0x1aa   : > { %4195 = vmatpush.bf16.msra.mxu0 %v7689_v2  ;;  %v7897_v2 = vor.u32 %v9881_v57, %v7896_v56  ;;  %v8025_v10 = vor.u32 %v9913_v61, %v8024_v60  ;;  %v7880_v12 = vld [vmem:[#allocation5 + $0xa28] sm:$0xf]  ;;  %v9909_v17 = vld [vmem:[#allocation5 + $0xb34] sm:$0xf0] }
 0x1ab   : > { %4208 = vmatpush.bf16.msra.mxu1 %v7817_v3  ;;  %v7624_v3 = vld [vmem:[#allocation5 + $0x828] sm:$0xf]  ;;  %v9809_v28 = vld [vmem:[#allocation5 + $0x814] sm:$0xf0] }
 0x1ac   : > { %4221 = vmatpush.bf16.msra.mxu2 %v7945_v4  ;;  %v9813_v4 = vld [vmem:[#allocation5 + $0x834] sm:$0xf0]  ;;  %v8008_v16 = vld [vmem:[#allocation5 + $0xb28] sm:$0xf] }
 0x1ad   : > { %4234 = vmatpush.bf16.msra.mxu3 %v8073_v11  ;;  %v9845_v11 = vld [vmem:[#allocation5 + $0x934] sm:$0xf0]  ;;  %v7625_v21 = vor.u32 %v9813_v4, %v7624_v3  ;;  %v7736_v32 = vld [vmem:[#allocation5 + $0x908] sm:$0xf]  ;;  %v8009_v39 = vor.u32 %v9909_v17, %v8008_v16 }
 0x1ae   : > { %4196 = vmatpush.bf16.msra.mxu0 %v7673_v24  ;;  %v7608_v24 = vld [vmem:[#allocation5 + $0x808] sm:$0xf]  ;;  %v9841_v33 = vld [vmem:[#allocation5 + $0x914] sm:$0xf0]  ;;  %v3970_v36 = vpop.f32.mrf.mxu2 }
 0x1af   : > { %4209 = vmatpush.bf16.msra.mxu1 %v7801_v29  ;;  %v7753_v29 = vor.u32 %v9845_v11, %v7752_v5  ;;  %v7864_v35 = vld [vmem:[#allocation5 + $0xa08] sm:$0xf]  ;;  %v9905_v43 = vld [vmem:[#allocation5 + $0xb14] sm:$0xf0]  ;;  %v3983_v44 = vpop.f32.mrf.mxu3  ;;  %v7737_v54 = vor.u32 %v9841_v33, %v7736_v32 }
 0x1b0   : > { %4222 = vmatpush.bf16.msra.mxu2 %v7929_v30  ;;  %v7881_v30 = vor.u32 %v9877_v14, %v7880_v12  ;;  %v7992_v42 = vld [vmem:[#allocation5 + $0xb08] sm:$0xf]  ;;  %v9965_v62 = vld [vmem:[#allocation5 + $0xcf4] sm:$0xf0] }
 0x1b1   : > { %4235 = vmatpush.bf16.msra.mxu3 %v8057_v41  ;;  %v9873_v41 = vld [vmem:[#allocation5 + $0xa14] sm:$0xf0]  ;;  %v8232_v45 = vld [vmem:[#allocation5 + $0xce8] sm:$0xf]  ;;  %v7993_v55 = vor.u32 %v9905_v43, %v7992_v42 }
 0x1b2   : > { %4197 = vmatpush.bf16.msra.mxu0 %v7657_v47  ;;  %v8360_v46 = vld [vmem:[#allocation5 + $0xde8] sm:$0xf]  ;;  %v7609_v47 = vor.u32 %v9809_v28, %v7608_v24  ;;  %v10029_v51 = vld [vmem:[#allocation5 + $0xef4] sm:$0xf0]  ;;  %v7865_v52 = vor.u32 %v9873_v41, %v7864_v35  ;;  %v8233_v56 = vor.u32 %v9965_v62, %v8232_v45 }
 0x1b3   : > { %4210 = vmatpush.bf16.msra.mxu1 %v7785_v49  ;;  %v9997_v49 = vld [vmem:[#allocation5 + $0xdf4] sm:$0xf0]  ;;  %v8616_v53 = vld [vmem:[#allocation5 + $0xfe8] sm:$0xf] }
 0x1b4   : > { %4223 = vmatpush.bf16.msra.mxu2 %v7913_v50  ;;  %v8488_v50 = vld [vmem:[#allocation5 + $0xee8] sm:$0xf]  ;;  %v8361_v57 = vor.u32 %v9997_v49, %v8360_v46  ;;  %v9961_v60 = vld [vmem:[#allocation5 + $0xcd4] sm:$0xf0] }
 0x1b5   : > { %4236 = vmatpush.bf16.msra.mxu3 %v8041_v48  ;;  %v10061_v48 = vld [vmem:[#allocation5 + $0xff4] sm:$0xf0]  ;;  %v8489_v58 = vor.u32 %v10029_v51, %v8488_v50  ;;  %v8216_v59 = vld [vmem:[#allocation5 + $0xcc8] sm:$0xf] }
 0x1b6   : > { %4198 = vmatpush.bf16.msra.mxu0 %v7641_v63  ;;  %v8344_v61 = vld [vmem:[#allocation5 + $0xdc8] sm:$0xf]  ;;  %v8617_v63 = vor.u32 %v10061_v48, %v8616_v53  ;;  %v9993_v1 = vld [vmem:[#allocation5 + $0xdd4] sm:$0xf0]  ;;  %v8217_v5 = vor.u32 %v9961_v60, %v8216_v59 }
 0x1b7   : > { %4211 = vmatpush.bf16.msra.mxu1 %v7769_v6  ;;  %v8472_v6 = vld [vmem:[#allocation5 + $0xec8] sm:$0xf]  ;;  %v10057_v4 = vld [vmem:[#allocation5 + $0xfd4] sm:$0xf0]  ;;  %v8345_v7 = vor.u32 %v9993_v1, %v8344_v61 }
 0x1b8   : > { %4224 = vmatpush.bf16.msra.mxu2 %v7897_v2  ;;  %v10025_v2 = vld [vmem:[#allocation5 + $0xed4] sm:$0xf0]  ;;  %v8600_v3 = vld [vmem:[#allocation5 + $0xfc8] sm:$0xf] }
 0x1b9   : > { %4237 = vmatpush.bf16.msra.mxu3 %v8025_v10  ;;  %v8473_v10 = vor.u32 %v10025_v2, %v8472_v6  ;;  %v8200_v11 = vld [vmem:[#allocation5 + $0xca8] sm:$0xf]  ;;  %v9957_v12 = vld [vmem:[#allocation5 + $0xcb4] sm:$0xf0]  ;;  %v8601_v16 = vor.u32 %v10057_v4, %v8600_v3 }
 0x1ba   : > { %4199 = vmatpush.bf16.msra.mxu0 %v7625_v21  ;;  %v8328_v14 = vld [vmem:[#allocation5 + $0xda8] sm:$0xf]  ;;  %v9989_v17 = vld [vmem:[#allocation5 + $0xdb4] sm:$0xf0] }
 0x1bb   : > { %4212 = vmatpush.bf16.msra.mxu1 %v7753_v29  ;;  %v8456_v21 = vld [vmem:[#allocation5 + $0xea8] sm:$0xf]  ;;  %v10021_v24 = vld [vmem:[#allocation5 + $0xeb4] sm:$0xf0]  ;;  %v8329_v32 = vor.u32 %v9989_v17, %v8328_v14 }
 0x1bc   : > { %4225 = vmatpush.bf16.msra.mxu2 %v7881_v30  ;;  %v8584_v28 = vld [vmem:[#allocation5 + $0xfa8] sm:$0xf]  ;;  %v10053_v29 = vld [vmem:[#allocation5 + $0xfb4] sm:$0xf0]  ;;  %v8201_v30 = vor.u32 %v9957_v12, %v8200_v11  ;;  %v8457_v33 = vor.u32 %v10021_v24, %v8456_v21 }
 0x1bd   : > { %4238 = vmatpush.bf16.msra.mxu3 %v8009_v39  ;;  %v8184_v35 = vld [vmem:[#allocation5 + $0xc88] sm:$0xf]  ;;  %v9953_v36 = vld [vmem:[#allocation5 + $0xc94] sm:$0xf0]  ;;  %v8585_v41 = vor.u32 %v10053_v29, %v8584_v28 }
 0x1be   : > { %4200 = vmatpush.bf16.msra.mxu0 %v7609_v47  ;;  %v8312_v39 = vld [vmem:[#allocation5 + $0xd88] sm:$0xf]  ;;  %v9985_v42 = vld [vmem:[#allocation5 + $0xd94] sm:$0xf0]  ;;  %v3994_v45 = vpop.f32.mrf.mxu0  ;;  %v8185_v49 = vor.u32 %v9953_v36, %v8184_v35 }
 0x1bf   : > { %4213 = vmatpush.bf16.msra.mxu1 %v7737_v54  ;;  %v8440_v43 = vld [vmem:[#allocation5 + $0xe88] sm:$0xf]  ;;  %v10017_v44 = vld [vmem:[#allocation5 + $0xe94] sm:$0xf0]  ;;  %v3995_v47 = vadd.f32 %v3994_v45, %v11215_v0  ;;  %v4007_v50 = vpop.f32.mrf.mxu1  ;;  %v8313_v51 = vor.u32 %v9985_v42, %v8312_v39 }
 0x1c0   : > { %4226 = vmatpush.bf16.msra.mxu2 %v7865_v52  ;;  %v8568_v62 = vld [vmem:[#allocation5 + $0xf88] sm:$0xf]  ;;  %v10049_v46 = vld [vmem:[#allocation5 + $0xf94] sm:$0xf0]  ;;  %v8441_v54 = vor.u32 %v10017_v44, %v8440_v43 }
 0x1c1   : > { %4239 = vmatpush.bf16.msra.mxu3 %v7993_v55  ;;  %4201 = vmatmul.bf16.vlgmr.msra.gmra.mxu0 %v11149_v18  ;;  %v8168_v52 = vld [vmem:[#allocation5 + $0xc68] sm:$0xf]  ;;  %v9949_v53 = vld [vmem:[#allocation5 + $0xc74] sm:$0xf0]  ;;  %v8569_v55 = vor.u32 %v10049_v46, %v8568_v62 }
 0x1c2   : > { %4245 = vmatpush.bf16.msrb.mxu0 %v8233_v56  ;;  %4214 = vmatmul.bf16.vlgmr.msra.gmra.mxu1 %v11153_v23  ;;  %v8296_v48 = vld [vmem:[#allocation5 + $0xd68] sm:$0xf]  ;;  %v4008_v56 = vadd.f32 %v4007_v50, %v3995_v47  ;;  %v10013_v59 = vld [vmem:[#allocation5 + $0xe74] sm:$0xf0] }
 0x1c3   : > { %4258 = vmatpush.bf16.msrb.mxu1 %v8361_v57  ;;  %4227 = vmatmul.bf16.vlgmr.msra.gmra.mxu2 %v11151_v22  ;;  %v9981_v57 = vld [vmem:[#allocation5 + $0xd74] sm:$0xf0]  ;;  %v8552_v60 = vld [vmem:[#allocation5 + $0xf68] sm:$0xf] }
 0x1c4   : > { %4271 = vmatpush.bf16.msrb.mxu2 %v8489_v58  ;;  %4240 = vmatmul.bf16.vlgmr.msra.gmra.mxu3 %v11155_v27  ;;  %v8424_v58 = vld [vmem:[#allocation5 + $0xe68] sm:$0xf]  ;;  %v10045_v61 = vld [vmem:[#allocation5 + $0xf74] sm:$0xf0]  ;;  %v8297_v0 = vor.u32 %v9981_v57, %v8296_v48 }
 0x1c5   : > { %4284 = vmatpush.bf16.msrb.mxu3 %v8617_v63  ;;  %v8169_v63 = vor.u32 %v9949_v53, %v8168_v52  ;;  %v8425_v1 = vor.u32 %v10013_v59, %v8424_v58  ;;  %v8152_v6 = vld [vmem:[#allocation5 + $0xc48] sm:$0xf]  ;;  %v9945_v2 = vld [vmem:[#allocation5 + $0xc54] sm:$0xf0]  ;;  %v8553_v4 = vor.u32 %v10045_v61, %v8552_v60  ;;  %v9579_v58 = vld [vmem:[#allocation5 + $0xec] sm:$0xf] }
 0x1c6   : > { %4246 = vmatpush.bf16.msrb.mxu0 %v8217_v5  ;;  %v8280_v3 = vld [vmem:[#allocation5 + $0xd48] sm:$0xf]  ;;  %v4020_v5 = vpop.f32.mrf.mxu2  ;;  %v10009_v11 = vld [vmem:[#allocation5 + $0xe54] sm:$0xf0]  ;;  %v3996_v21 = vpop.f32.mrf.mxu0  ;;  %v8153_v24 = vor.u32 %v9945_v2, %v8152_v6  ;;  %v6698_v59 = vld [vmem:[#allocation5 + $0xf8] sm:$0xf0] }
 0x1c7   : > { %4259 = vmatpush.bf16.msrb.mxu1 %v8345_v7  ;;  %v9977_v7 = vld [vmem:[#allocation5 + $0xd54] sm:$0xf0]  ;;  %v4021_v12 = vadd.f32 %v4020_v5, %v4008_v56  ;;  %v4033_v14 = vpop.f32.mrf.mxu3  ;;  %v4009_v28 = vpop.f32.mrf.mxu1  ;;  %v8264_v36 = vld [vmem:[#allocation5 + $0xd28] sm:$0xf]  ;;  %v9611_v60 = vld [vmem:[#allocation5 + $0x1ec] sm:$0xf] }
 0x1c8   : > { %4272 = vmatpush.bf16.msrb.mxu2 %v8473_v10  ;;  %v8408_v10 = vld [vmem:[#allocation5 + $0xe48] sm:$0xf]  ;;  %v10041_v17 = vld [vmem:[#allocation5 + $0xf54] sm:$0xf0]  ;;  %v6954_v6 = vld [vmem:[#allocation5 + $0x2f8] sm:$0xf0] }
 0x1c9   : > { %4285 = vmatpush.bf16.msrb.mxu3 %v8601_v16  ;;  %v8536_v16 = vld [vmem:[#allocation5 + $0xf48] sm:$0xf]  ;;  %v11222_v29 = vadd.f32 %v4033_v14, %v4021_v12  ;;  %v9941_v35 = vld [vmem:[#allocation5 + $0xc34] sm:$0xf0]  ;;  %v7082_v5 = vld [vmem:[#allocation5 + $0x3f8] sm:$0xf0] }
 0x1ca   : > { %4247 = vmatpush.bf16.msrb.mxu0 %v8201_v30  ;;  %v8281_v30 = vor.u32 %v9977_v7, %v8280_v3  ;;  %v8537_v39 = vor.u32 %v10041_v17, %v8536_v16  ;;  %v8392_v42 = vld [vmem:[#allocation5 + $0xe28] sm:$0xf]  ;;  %v10005_v43 = vld [vmem:[#allocation5 + $0xe34] sm:$0xf0]  ;;  %v9575_v14 = vld [vmem:[#allocation5 + $0xcc] sm:$0xf] }
 0x1cb   : > { %4260 = vmatpush.bf16.msrb.mxu1 %v8329_v32  ;;  %v8409_v32 = vor.u32 %v10009_v11, %v8408_v10  ;;  %v8520_v44 = vld [vmem:[#allocation5 + $0xf28] sm:$0xf]  ;;  %v10037_v45 = vld [vmem:[#allocation5 + $0xf34] sm:$0xf0]  ;;  %v8393_v50 = vor.u32 %v10005_v43, %v8392_v42  ;;  %v6701_v10 = vor.u32 %v9579_v58, %v6698_v59  ;;  %v6682_v16 = vld [vmem:[#allocation5 + $0xd8] sm:$0xf0] }
 0x1cc   : > { %4273 = vmatpush.bf16.msrb.mxu2 %v8457_v33  ;;  %v8136_v33 = vld [vmem:[#allocation5 + $0xc28] sm:$0xf]  ;;  %v9937_v47 = vld [vmem:[#allocation5 + $0xc14] sm:$0xf0]  ;;  %v8521_v53 = vor.u32 %v10037_v45, %v8520_v44  ;;  %v9607_v17 = vld [vmem:[#allocation5 + $0x1cc] sm:$0xf] }
 0x1cd   : > { %4286 = vmatpush.bf16.msrb.mxu3 %v8585_v41  ;;  %v9973_v41 = vld [vmem:[#allocation5 + $0xd34] sm:$0xf0]  ;;  %v8137_v62 = vor.u32 %v9941_v35, %v8136_v33  ;;  %v8120_v46 = vld [vmem:[#allocation5 + $0xc08] sm:$0xf]  ;;  %v9639_v28 = vld [vmem:[#allocation5 + $0x2cc] sm:$0xf]  ;;  %v6685_v35 = vor.u32 %v9575_v14, %v6682_v16 }
 0x1ce   : > { %4248 = vmatpush.bf16.msrb.mxu0 %v8185_v49  ;;  %v8265_v49 = vor.u32 %v9973_v41, %v8264_v36  ;;  %v8376_v52 = vld [vmem:[#allocation5 + $0xe08] sm:$0xf]  ;;  %v10001_v48 = vld [vmem:[#allocation5 + $0xe14] sm:$0xf0]  ;;  %v4022_v57 = vpop.f32.mrf.mxu2  ;;  %v7066_v33 = vld [vmem:[#allocation5 + $0x3d8] sm:$0xf0] }
 0x1cf   : > { %4261 = vmatpush.bf16.msrb.mxu1 %v8313_v51  ;;  %v8248_v51 = vld [vmem:[#allocation5 + $0xd08] sm:$0xf]  ;;  %v10033_v56 = vld [vmem:[#allocation5 + $0xf14] sm:$0xf0]  ;;  %v4035_v61 = vpop.f32.mrf.mxu3  ;;  %v8377_v3 = vor.u32 %v10001_v48, %v8376_v52  ;;  %v9571_v41 = vld [vmem:[#allocation5 + $0xac] sm:$0xf] }
 0x1d0   : > { %4274 = vmatpush.bf16.msrb.mxu2 %v8441_v54  ;;  %v9969_v54 = vld [vmem:[#allocation5 + $0xd14] sm:$0xf0]  ;;  %v6666_v42 = vld [vmem:[#allocation5 + $0xb8] sm:$0xf0]  ;;  %v9603_v43 = vld [vmem:[#allocation5 + $0x1ac] sm:$0xf] }
 0x1d1   : > { %4287 = vmatpush.bf16.msrb.mxu3 %v8569_v55  ;;  %v8504_v55 = vld [vmem:[#allocation5 + $0xf08] sm:$0xf]  ;;  %v8249_v2 = vor.u32 %v9969_v54, %v8248_v51  ;;  %v6794_v45 = vld [vmem:[#allocation5 + $0x1b8] sm:$0xf0]  ;;  %v9567_v52 = vld [vmem:[#allocation5 + $0x8c] sm:$0xf] }
 0x1d2   : > { %4249 = vmatpush.bf16.msrb.mxu0 %v8169_v63  ;;  %v8121_v63 = vor.u32 %v9937_v47, %v8120_v46  ;;  %v8505_v7 = vor.u32 %v10033_v56, %v8504_v55  ;;  %v6922_v46 = vld [vmem:[#allocation5 + $0x2b8] sm:$0xf0]  ;;  %v9667_v47 = vld [vmem:[#allocation5 + $0x3ac] sm:$0xf]  ;;  %v6797_v51 = vor.u32 %v9603_v43, %v6794_v45 }
 0x1d3   : > { %4262 = vmatpush.bf16.msrb.mxu1 %v8297_v0  ;;  %v6826_v0 = vld [vmem:[#allocation5 + $0x1f8] sm:$0xf0]  ;;  %v9599_v48 = vld [vmem:[#allocation5 + $0x18c] sm:$0xf] }
 0x1d4   : > { %4275 = vmatpush.bf16.msrb.mxu2 %v8425_v1  ;;  %v9643_v1 = vld [vmem:[#allocation5 + $0x2ec] sm:$0xf]  ;;  %v6829_v11 = vor.u32 %v9611_v60, %v6826_v0  ;;  %v6778_v56 = vld [vmem:[#allocation5 + $0x198] sm:$0xf0] }
 0x1d5   : > { %4288 = vmatpush.bf16.msrb.mxu3 %v8553_v4  ;;  %v9675_v4 = vld [vmem:[#allocation5 + $0x3ec] sm:$0xf]  ;;  %v6957_v12 = vor.u32 %v9643_v1, %v6954_v6  ;;  %v6906_v58 = vld [vmem:[#allocation5 + $0x298] sm:$0xf0]  ;;  %v6781_v6 = vor.u32 %v9599_v48, %v6778_v56 }
 0x1d6   : > { %4250 = vmatpush.bf16.msrb.mxu0 %v8153_v24  ;;  %v7085_v21 = vor.u32 %v9675_v4, %v7082_v5  ;;  %v6810_v24 = vld [vmem:[#allocation5 + $0x1d8] sm:$0xf0]  ;;  %v9631_v57 = vld [vmem:[#allocation5 + $0x28c] sm:$0xf] }
 0x1d7   : > { %4263 = vmatpush.bf16.msrb.mxu1 %v8281_v30  ;;  %v6938_v30 = vld [vmem:[#allocation5 + $0x2d8] sm:$0xf0]  ;;  %v6813_v36 = vor.u32 %v9607_v17, %v6810_v24  ;;  %v9663_v60 = vld [vmem:[#allocation5 + $0x38c] sm:$0xf] }
 0x1d8   : > { %4276 = vmatpush.bf16.msrb.mxu2 %v8409_v32  ;;  %v9671_v32 = vld [vmem:[#allocation5 + $0x3cc] sm:$0xf]  ;;  %v7034_v61 = vld [vmem:[#allocation5 + $0x398] sm:$0xf0] }
 0x1d9   : > { %4289 = vmatpush.bf16.msrb.mxu3 %v8537_v39  ;;  %v6941_v39 = vor.u32 %v9639_v28, %v6938_v30  ;;  %v7069_v44 = vor.u32 %v9671_v32, %v7066_v33  ;;  %v6634_v4 = vld [vmem:[#allocation5 + $0x78] sm:$0xf0]  ;;  %v9595_v5 = vld [vmem:[#allocation5 + $0x16c] sm:$0xf] }
 0x1da   : > { %4251 = vmatpush.bf16.msrb.mxu0 %v8137_v62  ;;  %v9635_v62 = vld [vmem:[#allocation5 + $0x2ac] sm:$0xf]  ;;  %v6890_v14 = vld [vmem:[#allocation5 + $0x278] sm:$0xf0] }
 0x1db   : > { %4264 = vmatpush.bf16.msrb.mxu1 %v8265_v49  ;;  %v7050_v49 = vld [vmem:[#allocation5 + $0x3b8] sm:$0xf0]  ;;  %v6925_v54 = vor.u32 %v9635_v62, %v6922_v46  ;;  %v9659_v16 = vld [vmem:[#allocation5 + $0x36c] sm:$0xf] }
 0x1dc   : > { %4277 = vmatpush.bf16.msrb.mxu2 %v8393_v50  ;;  %v6669_v50 = vor.u32 %v9571_v41, %v6666_v42  ;;  %v7053_v55 = vor.u32 %v9667_v47, %v7050_v49  ;;  %v7018_v17 = vld [vmem:[#allocation5 + $0x378] sm:$0xf0]  ;;  %v9559_v28 = vld [vmem:[#allocation5 + $0x4c] sm:$0xf] }
 0x1dd   : > { %4290 = vmatpush.bf16.msrb.mxu3 %v8521_v53  ;;  %v6650_v53 = vld [vmem:[#allocation5 + $0x98] sm:$0xf0]  ;;  %v9591_v32 = vld [vmem:[#allocation5 + $0x14c] sm:$0xf]  ;;  %v7021_v33 = vor.u32 %v9659_v16, %v7018_v17 }
 0x1de   : > { %4252 = vmatpush.bf16.msrb.mxu0 %v8121_v63  ;;  %v4046_v59 = vpop.f32.mrf.mxu0  ;;  %v6653_v0 = vor.u32 %v9567_v52, %v6650_v53  ;;  %v6618_v30 = vld [vmem:[#allocation5 + $0x58] sm:$0xf0]  ;;  %v9587_v53 = vld [vmem:[#allocation5 + $0x12c] sm:$0xf] }
 0x1df   : > { %4265 = vmatpush.bf16.msrb.mxu1 %v8249_v2  ;;  %v4047_v63 = vadd.f32 %v4046_v59, %v11222_v29  ;;  %v4059_v1 = vpop.f32.mrf.mxu1  ;;  %v6909_v2 = vor.u32 %v9631_v57, %v6906_v58  ;;  %v6874_v41 = vld [vmem:[#allocation5 + $0x258] sm:$0xf0]  ;;  %v6621_v46 = vor.u32 %v9559_v28, %v6618_v30  ;;  %v9619_v56 = vld [vmem:[#allocation5 + $0x22c] sm:$0xf] }
 0x1e0   : > { %4278 = vmatpush.bf16.msrb.mxu2 %v8377_v3  ;;  %v9563_v3 = vld [vmem:[#allocation5 + $0x6c] sm:$0xf]  ;;  %v7002_v45 = vld [vmem:[#allocation5 + $0x358] sm:$0xf0] }
 0x1e1   : > { %4291 = vmatpush.bf16.msrb.mxu3 %v8505_v7  ;;  %4253 = vmatmul.bf16.vlgmr.msrb.gmra.mxu0 %v11165_v13  ;;  %v7037_v7 = vor.u32 %v9663_v60, %v7034_v61  ;;  %v6602_v52 = vld [vmem:[#allocation5 + $0x38] sm:$0xf0]  ;;  %v9651_v58 = vld [vmem:[#allocation5 + $0x32c] sm:$0xf] }
 0x1e2   : > { %4297 = vmatpush.bf16.msra.mxu0 %v6701_v10  ;;  %4266 = vmatmul.bf16.vlgmr.msrb.gmra.mxu1 %v11169_v20  ;;  %v4060_v10 = vadd.f32 %v4059_v1, %v4047_v63  ;;  %v6858_v57 = vld [vmem:[#allocation5 + $0x238] sm:$0xf0]  ;;  %v9551_v61 = vld [vmem:[#allocation5 + $0xc] sm:$0xf] }
 0x1e3   : > { %4310 = vmatpush.bf16.msra.mxu1 %v6829_v11  ;;  %4279 = vmatmul.bf16.vlgmr.msrb.gmra.mxu2 %v11167_v19  ;;  %v6762_v11 = vld [vmem:[#allocation5 + $0x178] sm:$0xf0]  ;;  %v6861_v1 = vor.u32 %v9619_v56, %v6858_v57  ;;  %v9739_v16 = vld [vmem:[#allocation5 + $0x5ec] sm:$0xf] }
 0x1e4   : > { %4323 = vmatpush.bf16.msra.mxu2 %v6957_v12  ;;  %4292 = vmatmul.bf16.vlgmr.msrb.gmra.mxu3 %v11171_v26  ;;  %v9627_v12 = vld [vmem:[#allocation5 + $0x26c] sm:$0xf]  ;;  %v6765_v29 = vor.u32 %v9595_v5, %v6762_v11  ;;  %v6986_v59 = vld [vmem:[#allocation5 + $0x338] sm:$0xf0] }
 0x1e5   : > { %4336 = vmatpush.bf16.msra.mxu3 %v7085_v21  ;;  %v6637_v21 = vor.u32 %v9563_v3, %v6634_v4  ;;  %v6893_v24 = vor.u32 %v9627_v12, %v6890_v14  ;;  %v6586_v63 = vld [vmem:[#allocation5 + $0x18] sm:$0xf0]  ;;  %v9615_v3 = vld [vmem:[#allocation5 + $0x20c] sm:$0xf]  ;;  %v6989_v4 = vor.u32 %v9651_v58, %v6986_v59 }
 0x1e6   : > { %4298 = vmatpush.bf16.msra.mxu0 %v6685_v35  ;;  %v4072_v35 = vpop.f32.mrf.mxu2  ;;  %v4048_v62 = vpop.f32.mrf.mxu0  ;;  %v6842_v5 = vld [vmem:[#allocation5 + $0x218] sm:$0xf0]  ;;  %v9707_v12 = vld [vmem:[#allocation5 + $0x4ec] sm:$0xf] }
 0x1e7   : > { %4311 = vmatpush.bf16.msra.mxu1 %v6813_v36  ;;  %v6746_v36 = vld [vmem:[#allocation5 + $0x158] sm:$0xf0]  ;;  %v4073_v42 = vadd.f32 %v4072_v35, %v4060_v10  ;;  %v4085_v43 = vpop.f32.mrf.mxu3  ;;  %v4061_v47 = vpop.f32.mrf.mxu1  ;;  %v9731_v57 = vld [vmem:[#allocation5 + $0x5ac] sm:$0xf] }
 0x1e8   : > { %4324 = vmatpush.bf16.msra.mxu2 %v6941_v39  ;;  %v9623_v39 = vld [vmem:[#allocation5 + $0x24c] sm:$0xf]  ;;  %v6970_v10 = vld [vmem:[#allocation5 + $0x318] sm:$0xf0] }
 0x1e9   : > { %4337 = vmatpush.bf16.msra.mxu3 %v7069_v44  ;;  %v9655_v44 = vld [vmem:[#allocation5 + $0x34c] sm:$0xf]  ;;  %v11229_v49 = vadd.f32 %v4085_v43, %v4073_v42  ;;  %v7210_v14 = vld [vmem:[#allocation5 + $0x4f8] sm:$0xf0] }
 0x1ea   : > { %4299 = vmatpush.bf16.msra.mxu0 %v6669_v50  ;;  %v6749_v50 = vor.u32 %v9591_v32, %v6746_v36  ;;  %v7005_v48 = vor.u32 %v9655_v44, %v7002_v45  ;;  %v7466_v28 = vld [vmem:[#allocation5 + $0x6f8] sm:$0xf0]  ;;  %v6845_v32 = vor.u32 %v9615_v3, %v6842_v5  ;;  %v9703_v43 = vld [vmem:[#allocation5 + $0x4cc] sm:$0xf] }
 0x1eb   : > { %4312 = vmatpush.bf16.msra.mxu1 %v6797_v51  ;;  %v6877_v51 = vor.u32 %v9623_v39, %v6874_v41  ;;  %v7594_v35 = vld [vmem:[#allocation5 + $0x7f8] sm:$0xf0]  ;;  %v7213_v39 = vor.u32 %v9707_v12, %v7210_v14  ;;  %v9735_v45 = vld [vmem:[#allocation5 + $0x5cc] sm:$0xf] }
 0x1ec   : > { %4325 = vmatpush.bf16.msra.mxu2 %v6925_v54  ;;  %v9555_v54 = vld [vmem:[#allocation5 + $0x2c] sm:$0xf]  ;;  %v7194_v44 = vld [vmem:[#allocation5 + $0x4d8] sm:$0xf0] }
 0x1ed   : > { %4338 = vmatpush.bf16.msra.mxu3 %v7053_v55  ;;  %v6730_v55 = vld [vmem:[#allocation5 + $0x138] sm:$0xf0]  ;;  %v6605_v60 = vor.u32 %v9555_v54, %v6602_v52  ;;  %v9767_v47 = vld [vmem:[#allocation5 + $0x6cc] sm:$0xf]  ;;  %v7197_v52 = vor.u32 %v9703_v43, %v7194_v44 }
 0x1ee   : > { %4300 = vmatpush.bf16.msra.mxu0 %v6653_v0  ;;  %v6733_v0 = vor.u32 %v9587_v53, %v6730_v55  ;;  %v4074_v11 = vpop.f32.mrf.mxu2  ;;  %v7578_v54 = vld [vmem:[#allocation5 + $0x7d8] sm:$0xf0]  ;;  %v9699_v55 = vld [vmem:[#allocation5 + $0x4ac] sm:$0xf] }
 0x1ef   : > { %4313 = vmatpush.bf16.msra.mxu1 %v6781_v6  ;;  %v9583_v6 = vld [vmem:[#allocation5 + $0x10c] sm:$0xf]  ;;  %v4087_v17 = vpop.f32.mrf.mxu3  ;;  %v7178_v56 = vld [vmem:[#allocation5 + $0x4b8] sm:$0xf0] }
 0x1f0   : > { %4326 = vmatpush.bf16.msra.mxu2 %v6909_v2  ;;  %v6714_v2 = vld [vmem:[#allocation5 + $0x118] sm:$0xf0]  ;;  %v9727_v5 = vld [vmem:[#allocation5 + $0x58c] sm:$0xf] }
 0x1f1   : > { %4339 = vmatpush.bf16.msra.mxu3 %v7037_v7  ;;  %v9647_v7 = vld [vmem:[#allocation5 + $0x30c] sm:$0xf]  ;;  %v6717_v30 = vor.u32 %v9583_v6, %v6714_v2  ;;  %v7306_v59 = vld [vmem:[#allocation5 + $0x5b8] sm:$0xf0] }
 0x1f2   : > { %4301 = vmatpush.bf16.msra.mxu0 %v6637_v21  ;;  %v6589_v21 = vor.u32 %v9551_v61, %v6586_v63  ;;  %v6973_v36 = vor.u32 %v9647_v7, %v6970_v10  ;;  %v7434_v61 = vld [vmem:[#allocation5 + $0x6b8] sm:$0xf0]  ;;  %v9795_v63 = vld [vmem:[#allocation5 + $0x7ac] sm:$0xf]  ;;  %v7309_v2 = vor.u32 %v9731_v57, %v7306_v59  ;;  %v10439_v7 = vld [vmem:[#allocation7] sm:$0xf] }
 0x1f3   : > { %4314 = vmatpush.bf16.msra.mxu1 %v6765_v29  ;;  %v7338_v29 = vld [vmem:[#allocation5 + $0x5f8] sm:$0xf0]  ;;  %v9695_v6 = vld [vmem:[#allocation5 + $0x48c] sm:$0xf]  ;;  %v1107_v10 = vperm.slane %v10439_v7, 2 }
 0x1f4   : > { %4327 = vmatpush.bf16.msra.mxu2 %v6893_v24  ;;  %v9771_v24 = vld [vmem:[#allocation5 + $0x6ec] sm:$0xf]  ;;  %v7341_v41 = vor.u32 %v9739_v16, %v7338_v29  ;;  %v7290_v11 = vld [vmem:[#allocation5 + $0x598] sm:$0xf0] }
 0x1f5   : > { %4340 = vmatpush.bf16.msra.mxu3 %v7021_v33  ;;  %v9803_v33 = vld [vmem:[#allocation5 + $0x7ec] sm:$0xf]  ;;  %v7469_v42 = vor.u32 %v9771_v24, %v7466_v28  ;;  %v7146_v24 = vld [vmem:[#allocation5 + $0x478] sm:$0xf0] }
 0x1f6   : > { %4302 = vmatpush.bf16.msra.mxu0 %v6621_v46  ;;  %v7597_v62 = vor.u32 %v9803_v33, %v7594_v35  ;;  %v7322_v46 = vld [vmem:[#allocation5 + $0x5d8] sm:$0xf0]  ;;  %v9759_v12 = vld [vmem:[#allocation5 + $0x68c] sm:$0xf] }
 0x1f7   : > { %4315 = vmatpush.bf16.msra.mxu1 %v6749_v50  ;;  %v7450_v50 = vld [vmem:[#allocation5 + $0x6d8] sm:$0xf0]  ;;  %v7325_v53 = vor.u32 %v9735_v45, %v7322_v46  ;;  %v9791_v14 = vld [vmem:[#allocation5 + $0x78c] sm:$0xf] }
 0x1f8   : > { %4328 = vmatpush.bf16.msra.mxu2 %v6877_v51  ;;  %v9799_v51 = vld [vmem:[#allocation5 + $0x7cc] sm:$0xf]  ;;  %v7274_v35 = vld [vmem:[#allocation5 + $0x578] sm:$0xf0] }
 0x1f9   : > { %4341 = vmatpush.bf16.msra.mxu3 %v7005_v48  ;;  %v7453_v48 = vor.u32 %v9767_v47, %v7450_v50  ;;  %v7581_v58 = vor.u32 %v9799_v51, %v7578_v54  ;;  %v9691_v29 = vld [vmem:[#allocation5 + $0x46c] sm:$0xf]  ;;  %v7130_v47 = vld [vmem:[#allocation5 + $0x458] sm:$0xf0] }
 0x1fa   : > { %4303 = vmatpush.bf16.msra.mxu0 %v6605_v60  ;;  %v9763_v60 = vld [vmem:[#allocation5 + $0x6ac] sm:$0xf]  ;;  %v7149_v44 = vor.u32 %v9691_v29, %v7146_v24 }
 0x1fb   : > { %4316 = vmatpush.bf16.msra.mxu1 %v6733_v0  ;;  %v7562_v0 = vld [vmem:[#allocation5 + $0x7b8] sm:$0xf0]  ;;  %v7437_v3 = vor.u32 %v9763_v60, %v7434_v61  ;;  %v9723_v28 = vld [vmem:[#allocation5 + $0x56c] sm:$0xf] }
 0x1fc   : > { %4329 = vmatpush.bf16.msra.mxu2 %v6861_v1  ;;  %v7181_v1 = vor.u32 %v9699_v55, %v7178_v56  ;;  %v7277_v45 = vor.u32 %v9723_v28, %v7274_v35  ;;  %v9687_v46 = vld [vmem:[#allocation5 + $0x44c] sm:$0xf]  ;;  %v7354_v28 = vld [vmem:[#allocation5 + $0x618] sm:$0xf0] }
 0x1fd   : > { %4342 = vmatpush.bf16.msra.mxu3 %v6989_v4  ;;  %v7162_v4 = vld [vmem:[#allocation5 + $0x498] sm:$0xf0]  ;;  %v9719_v50 = vld [vmem:[#allocation5 + $0x54c] sm:$0xf]  ;;  %v7133_v59 = vor.u32 %v9687_v46, %v7130_v47 }
 0x1fe   : > { %4304 = vmatpush.bf16.msra.mxu0 %v6589_v21  ;;  %v7165_v16 = vor.u32 %v9695_v6, %v7162_v4  ;;  %v4098_v17 = vpop.f32.mrf.mxu0  ;;  %v9783_v57 = vld [vmem:[#allocation5 + $0x74c] sm:$0xf]  ;;  %v7114_v6 = vld [vmem:[#allocation5 + $0x438] sm:$0xf0] }
 0x1ff   : > { %4317 = vmatpush.bf16.msra.mxu1 %v6717_v30  ;;  %v4099_v30 = vadd.f32 %v4098_v17, %v1107_v10  ;;  %v9747_v7 = vld [vmem:[#allocation5 + $0x62c] sm:$0xf]  ;;  %v7370_v10 = vld [vmem:[#allocation5 + $0x638] sm:$0xf0] }
 0x200   : > { %4330 = vmatpush.bf16.msra.mxu2 %v6845_v32  ;;  %v4111_v32 = vpop.f32.mrf.mxu1  ;;  %v9711_v17 = vld [vmem:[#allocation5 + $0x50c] sm:$0xf]  ;;  %v8106_v47 = vld [vmem:[#allocation5 + $0xbf8] sm:$0xf0] }
 0x201   : > { %4343 = vmatpush.bf16.msra.mxu3 %v6973_v36  ;;  %4305 = vmatmul.bf16.vlgmr.msra.gmra.mxu0 %v11117_v9  ;;  %v7418_v9 = vld [vmem:[#allocation5 + $0x698] sm:$0xf0]  ;;  %v9755_v36 = vld [vmem:[#allocation5 + $0x66c] sm:$0xf]  ;;  %v4112_v43 = vadd.f32 %v4111_v32, %v4099_v30 }
 0x202   : > { %4349 = vmatpush.bf16.msrb.mxu0 %v7213_v39  ;;  %4318 = vmatmul.bf16.vlgmr.msra.gmra.mxu1 %v11126_v25  ;;  %v7293_v25 = vor.u32 %v9727_v5, %v7290_v11  ;;  %v7421_v21 = vor.u32 %v9759_v12, %v7418_v9  ;;  %v7402_v39 = vld [vmem:[#allocation5 + $0x678] sm:$0xf0]  ;;  %v9679_v9 = vld [vmem:[#allocation5 + $0x40c] sm:$0xf] }
 0x203   : > { %4362 = vmatpush.bf16.msrb.mxu1 %v7341_v41  ;;  %4331 = vmatmul.bf16.vlgmr.msra.gmra.mxu2 %v11115_v8  ;;  %v7565_v8 = vor.u32 %v9795_v63, %v7562_v0  ;;  %v9787_v41 = vld [vmem:[#allocation5 + $0x76c] sm:$0xf]  ;;  %v7242_v5 = vld [vmem:[#allocation5 + $0x538] sm:$0xf0] }
 0x204   : > { %4375 = vmatpush.bf16.msrb.mxu2 %v7469_v42  ;;  %4344 = vmatmul.bf16.vlgmr.msra.gmra.mxu3 %v11120_v15  ;;  %v7546_v15 = vld [vmem:[#allocation5 + $0x798] sm:$0xf0]  ;;  %v9775_v30 = vld [vmem:[#allocation5 + $0x70c] sm:$0xf] }
 0x205   : > { %4388 = vmatpush.bf16.msrb.mxu3 %v7597_v62  ;;  %v7549_v33 = vor.u32 %v9791_v14, %v7546_v15  ;;  %v7530_v42 = vld [vmem:[#allocation5 + $0x778] sm:$0xf0]  ;;  %v7405_v62 = vor.u32 %v9755_v36, %v7402_v39  ;;  %v9835_v35 = vld [vmem:[#allocation5 + $0x8ec] sm:$0xf] }
 0x206   : > { %4350 = vmatpush.bf16.msrb.mxu0 %v7197_v52  ;;  %v4124_v51 = vpop.f32.mrf.mxu2  ;;  %v7533_v54 = vor.u32 %v9787_v41, %v7530_v42  ;;  %v7258_v52 = vld [vmem:[#allocation5 + $0x558] sm:$0xf0]  ;;  %v4100_v61 = vpop.f32.mrf.mxu0  ;;  %v9867_v39 = vld [vmem:[#allocation5 + $0x9ec] sm:$0xf] }
 0x207   : > { %4363 = vmatpush.bf16.msrb.mxu1 %v7325_v53  ;;  %v9751_v53 = vld [vmem:[#allocation5 + $0x64c] sm:$0xf]  ;;  %v4125_v55 = vadd.f32 %v4124_v51, %v4112_v43  ;;  %v4137_v56 = vpop.f32.mrf.mxu3  ;;  %v7261_v63 = vor.u32 %v9719_v50, %v7258_v52  ;;  %v7498_v11 = vld [vmem:[#allocation5 + $0x738] sm:$0xf0] }
 0x208   : > { %4376 = vmatpush.bf16.msrb.mxu2 %v7453_v48  ;;  %v7386_v48 = vld [vmem:[#allocation5 + $0x658] sm:$0xf0]  ;;  %v9899_v43 = vld [vmem:[#allocation5 + $0xaec] sm:$0xf] }
 0x209   : > { %4389 = vmatpush.bf16.msrb.mxu3 %v7581_v58  ;;  %v7514_v58 = vld [vmem:[#allocation5 + $0x758] sm:$0xf0]  ;;  %v11235_v60 = vadd.f32 %v4137_v56, %v4125_v55  ;;  %v7389_v0 = vor.u32 %v9751_v53, %v7386_v48  ;;  %v9931_v46 = vld [vmem:[#allocation5 + $0xbec] sm:$0xf] }
 0x20a   : > { %4351 = vmatpush.bf16.msrb.mxu0 %v7181_v1  ;;  %v9683_v1 = vld [vmem:[#allocation5 + $0x42c] sm:$0xf]  ;;  %v7517_v4 = vor.u32 %v9783_v57, %v7514_v58  ;;  %v7098_v14 = vld [vmem:[#allocation5 + $0x418] sm:$0xf0]  ;;  %v8109_v56 = vor.u32 %v9931_v46, %v8106_v47 }
 0x20b   : > { %4364 = vmatpush.bf16.msrb.mxu1 %v7309_v2  ;;  %v9715_v2 = vld [vmem:[#allocation5 + $0x52c] sm:$0xf]  ;;  %v7117_v12 = vor.u32 %v9683_v1, %v7114_v6  ;;  %v7482_v32 = vld [vmem:[#allocation5 + $0x718] sm:$0xf0]  ;;  %v7101_v41 = vor.u32 %v9679_v9, %v7098_v14 }
 0x20c   : > { %4377 = vmatpush.bf16.msrb.mxu2 %v7437_v3  ;;  %v4113_v3 = vpop.f32.mrf.mxu1  ;;  %v7245_v15 = vor.u32 %v9715_v2, %v7242_v5  ;;  %v7722_v36 = vld [vmem:[#allocation5 + $0x8f8] sm:$0xf0]  ;;  %v7485_v50 = vor.u32 %v9775_v30, %v7482_v32  ;;  %v9831_v53 = vld [vmem:[#allocation5 + $0x8cc] sm:$0xf] }
 0x20d   : > { %4390 = vmatpush.bf16.msrb.mxu3 %v7565_v8  ;;  %v9779_v8 = vld [vmem:[#allocation5 + $0x72c] sm:$0xf]  ;;  %v7850_v42 = vld [vmem:[#allocation5 + $0x9f8] sm:$0xf0]  ;;  %v7725_v51 = vor.u32 %v9835_v35, %v7722_v36 }
 0x20e   : > { %4352 = vmatpush.bf16.msrb.mxu0 %v7165_v16  ;;  %v7373_v16 = vor.u32 %v9747_v7, %v7370_v10  ;;  %v4126_v29 = vpop.f32.mrf.mxu2  ;;  %v7501_v24 = vor.u32 %v9779_v8, %v7498_v11  ;;  %v7706_v48 = vld [vmem:[#allocation5 + $0x8d8] sm:$0xf0]  ;;  %v9863_v55 = vld [vmem:[#allocation5 + $0x9cc] sm:$0xf] }
 0x20f   : > { %4365 = vmatpush.bf16.msrb.mxu1 %v7293_v25  ;;  %v7226_v25 = vld [vmem:[#allocation5 + $0x518] sm:$0xf0]  ;;  %v9895_v58 = vld [vmem:[#allocation5 + $0xacc] sm:$0xf] }
 0x210   : > { %4378 = vmatpush.bf16.msrb.mxu2 %v7421_v21  ;;  %v9743_v21 = vld [vmem:[#allocation5 + $0x60c] sm:$0xf]  ;;  %v7834_v57 = vld [vmem:[#allocation5 + $0x9d8] sm:$0xf0] }
 0x211   : > { %4391 = vmatpush.bf16.msrb.mxu3 %v7549_v33  ;;  %v4139_v33 = vpop.f32.mrf.mxu3  ;;  %v9927_v61 = vld [vmem:[#allocation5 + $0xbcc] sm:$0xf]  ;;  %v7837_v1 = vor.u32 %v9863_v55, %v7834_v57  ;;  %v7690_v3 = vld [vmem:[#allocation5 + $0x8b8] sm:$0xf0] }
 0x212   : > { %4353 = vmatpush.bf16.msrb.mxu0 %v7149_v44  ;;  %v7978_v44 = vld [vmem:[#allocation5 + $0xaf8] sm:$0xf0]  ;;  %v9827_v2 = vld [vmem:[#allocation5 + $0x8ac] sm:$0xf] }
 0x213   : > { %4366 = vmatpush.bf16.msrb.mxu1 %v7277_v45  ;;  %v7229_v45 = vor.u32 %v9711_v17, %v7226_v25  ;;  %v7981_v52 = vor.u32 %v9899_v43, %v7978_v44  ;;  %v7818_v7 = vld [vmem:[#allocation5 + $0x9b8] sm:$0xf0]  ;;  %v9891_v10 = vld [vmem:[#allocation5 + $0xaac] sm:$0xf]  ;;  %v7693_v9 = vor.u32 %v9827_v2, %v7690_v3 }
 0x214   : > { %4379 = vmatpush.bf16.msrb.mxu2 %v7405_v62  ;;  %v7357_v62 = vor.u32 %v9743_v21, %v7354_v28  ;;  %v7946_v8 = vld [vmem:[#allocation5 + $0xab8] sm:$0xf0]  ;;  %v9923_v11 = vld [vmem:[#allocation5 + $0xbac] sm:$0xf] }
 0x215   : > { %4392 = vmatpush.bf16.msrb.mxu3 %v7533_v54  ;;  %v7853_v54 = vor.u32 %v9867_v39, %v7850_v42  ;;  %v7674_v17 = vld [vmem:[#allocation5 + $0x898] sm:$0xf0]  ;;  %v9887_v29 = vld [vmem:[#allocation5 + $0xa8c] sm:$0xf] }
 0x216   : > { %4354 = vmatpush.bf16.msrb.mxu0 %v7133_v59  ;;  %v7962_v59 = vld [vmem:[#allocation5 + $0xad8] sm:$0xf0]  ;;  %v9919_v28 = vld [vmem:[#allocation5 + $0xb8c] sm:$0xf] }
 0x217   : > { %4367 = vmatpush.bf16.msrb.mxu1 %v7261_v63  ;;  %v8090_v63 = vld [vmem:[#allocation5 + $0xbd8] sm:$0xf0]  ;;  %v7965_v6 = vor.u32 %v9895_v58, %v7962_v59  ;;  %v9819_v33 = vld [vmem:[#allocation5 + $0x86c] sm:$0xf] }
 0x218   : > { %4380 = vmatpush.bf16.msrb.mxu2 %v7389_v0  ;;  %v7709_v0 = vor.u32 %v9831_v53, %v7706_v48  ;;  %v8093_v5 = vor.u32 %v9927_v61, %v8090_v63  ;;  %v7802_v21 = vld [vmem:[#allocation5 + $0x998] sm:$0xf0]  ;;  %v9851_v36 = vld [vmem:[#allocation5 + $0x96c] sm:$0xf] }
 0x219   : > { %4393 = vmatpush.bf16.msrb.mxu3 %v7517_v4  ;;  %v9859_v4 = vld [vmem:[#allocation5 + $0x9ac] sm:$0xf]  ;;  %v7658_v35 = vld [vmem:[#allocation5 + $0x878] sm:$0xf0] }
 0x21a   : > { %4355 = vmatpush.bf16.msrb.mxu0 %v7117_v12  ;;  %v8074_v12 = vld [vmem:[#allocation5 + $0xbb8] sm:$0xf0]  ;;  %v7821_v14 = vor.u32 %v9859_v4, %v7818_v7  ;;  %v9883_v43 = vld [vmem:[#allocation5 + $0xa6c] sm:$0xf]  ;;  %v7661_v46 = vor.u32 %v9819_v33, %v7658_v35 }
 0x21b   : > { %4368 = vmatpush.bf16.msrb.mxu1 %v7245_v15  ;;  %v7949_v15 = vor.u32 %v9891_v10, %v7946_v8  ;;  %v8077_v25 = vor.u32 %v9923_v11, %v8074_v12  ;;  %v7786_v42 = vld [vmem:[#allocation5 + $0x978] sm:$0xf0]  ;;  %v9911_v59 = vld [vmem:[#allocation5 + $0xb4c] sm:$0xf] }
 0x21c   : > { %4381 = vmatpush.bf16.msrb.mxu2 %v7373_v16  ;;  %v9823_v16 = vld [vmem:[#allocation5 + $0x88c] sm:$0xf]  ;;  %v7914_v44 = vld [vmem:[#allocation5 + $0xa78] sm:$0xf0]  ;;  %v7789_v47 = vor.u32 %v9851_v36, %v7786_v42 }
 0x21d   : > { %4394 = vmatpush.bf16.msrb.mxu3 %v7501_v24  ;;  %v7930_v24 = vld [vmem:[#allocation5 + $0xa98] sm:$0xf0]  ;;  %v9811_v2 = vld [vmem:[#allocation5 + $0x82c] sm:$0xf] }
 0x21e   : > { %4356 = vmatpush.bf16.msrb.mxu0 %v7101_v41  ;;  %v11241_v30 = vpop.f32.mrf.mxu0  ;;  %v7933_v32 = vor.u32 %v9887_v29, %v7930_v24  ;;  %v7770_v55 = vld [vmem:[#allocation5 + $0x958] sm:$0xf0]  ;;  %v9843_v4 = vld [vmem:[#allocation5 + $0x92c] sm:$0xf] }
 0x21f   : > { %4369 = vmatpush.bf16.msrb.mxu1 %v7229_v45  ;;  %v11243_v39 = vpop.f32.mrf.mxu1  ;;  %v9915_v45 = vld [vmem:[#allocation5 + $0xb6c] sm:$0xf]  ;;  %v7898_v57 = vld [vmem:[#allocation5 + $0xa58] sm:$0xf0] }
 0x220   : > { %4382 = vmatpush.bf16.msrb.mxu2 %v7357_v62  ;;  %v8042_v62 = vld [vmem:[#allocation5 + $0xb78] sm:$0xf0]  ;;  %v9875_v8 = vld [vmem:[#allocation5 + $0xa2c] sm:$0xf] }
 0x221   : > { %4395 = vmatpush.bf16.msrb.mxu3 %v7485_v50  ;;  %4357 = vmatmul.bf16.vlgmr.msrb.gmra.mxu0 %v11135_v37  ;;  %v8058_v37 = vld [vmem:[#allocation5 + $0xb98] sm:$0xf0]  ;;  %v7917_v50 = vor.u32 %v9883_v43, %v7914_v44  ;;  %v8045_v48 = vor.u32 %v9915_v45, %v8042_v62  ;;  %v9907_v12 = vld [vmem:[#allocation5 + $0xb2c] sm:$0xf] }
 0x222   : > { %4401 = vmatpush.bf16.msra.mxu0 %v7725_v51  ;;  %4370 = vmatmul.bf16.vlgmr.msrb.gmra.mxu1 %v11139_v40  ;;  %v8061_v41 = vor.u32 %v9919_v28, %v8058_v37  ;;  %v9815_v51 = vld [vmem:[#allocation5 + $0x84c] sm:$0xf]  ;;  %v8026_v61 = vld [vmem:[#allocation5 + $0xb58] sm:$0xf0] }
 0x223   : > { %4414 = vmatpush.bf16.msra.mxu1 %v7853_v54  ;;  %4383 = vmatmul.bf16.vlgmr.msrb.gmra.mxu2 %v11133_v34  ;;  %v9855_v34 = vld [vmem:[#allocation5 + $0x98c] sm:$0xf]  ;;  %v7642_v54 = vld [vmem:[#allocation5 + $0x858] sm:$0xf0]  ;;  %v8029_v7 = vor.u32 %v9911_v59, %v8026_v61 }
 0x224   : > { %4427 = vmatpush.bf16.msra.mxu2 %v7981_v52  ;;  %4396 = vmatmul.bf16.vlgmr.msrb.gmra.mxu3 %v11137_v38  ;;  %v7677_v38 = vor.u32 %v9823_v16, %v7674_v17  ;;  %v7805_v40 = vor.u32 %v9855_v34, %v7802_v21  ;;  %v9847_v52 = vld [vmem:[#allocation5 + $0x94c] sm:$0xf]  ;;  %v7645_v63 = vor.u32 %v9815_v51, %v7642_v54  ;;  %v7626_v3 = vld [vmem:[#allocation5 + $0x838] sm:$0xf0] }
 0x225   : > { %4440 = vmatpush.bf16.msra.mxu3 %v8109_v56  ;;  %v9879_v56 = vld [vmem:[#allocation5 + $0xa4c] sm:$0xf]  ;;  %v7754_v10 = vld [vmem:[#allocation5 + $0x938] sm:$0xf0] }
 0x226   : > { %4402 = vmatpush.bf16.msra.mxu0 %v7709_v0  ;;  %v11245_v53 = vpop.f32.mrf.mxu2  ;;  %v4152_v0 = vpop.f32.mrf.mxu0  ;;  %v7882_v11 = vld [vmem:[#allocation5 + $0xa38] sm:$0xf0]  ;;  %v7757_v17 = vor.u32 %v9843_v4, %v7754_v10  ;;  %v9871_v29 = vld [vmem:[#allocation5 + $0xa0c] sm:$0xf] }
 0x227   : > { %4415 = vmatpush.bf16.msra.mxu1 %v7837_v1  ;;  %v11247_v58 = vpop.f32.mrf.mxu3  ;;  %v7773_v1 = vor.u32 %v9847_v52, %v7770_v55  ;;  %v7610_v16 = vld [vmem:[#allocation5 + $0x818] sm:$0xf0]  ;;  %v7885_v34 = vor.u32 %v9875_v8, %v7882_v11  ;;  %v9963_v33 = vld [vmem:[#allocation5 + $0xcec] sm:$0xf] }
 0x228   : > { %4428 = vmatpush.bf16.msra.mxu2 %v7965_v6  ;;  %v7901_v6 = vor.u32 %v9879_v56, %v7898_v57  ;;  %v7738_v21 = vld [vmem:[#allocation5 + $0x918] sm:$0xf0]  ;;  %v9995_v36 = vld [vmem:[#allocation5 + $0xdec] sm:$0xf] }
 0x229   : > { %4441 = vmatpush.bf16.msra.mxu3 %v8093_v5  ;;  %v4165_v5 = vpop.f32.mrf.mxu1  ;;  %v7866_v37 = vld [vmem:[#allocation5 + $0xa18] sm:$0xf0]  ;;  %v10027_v43 = vld [vmem:[#allocation5 + $0xeec] sm:$0xf] }
 0x22a   : > { %4403 = vmatpush.bf16.msra.mxu0 %v7693_v9  ;;  %v8010_v9 = vld [vmem:[#allocation5 + $0xb38] sm:$0xf0]  ;;  %v7869_v62 = vor.u32 %v9871_v29, %v7866_v37  ;;  %v9991_v56 = vld [vmem:[#allocation5 + $0xdcc] sm:$0xf] }
 0x22b   : > { %4416 = vmatpush.bf16.msra.mxu1 %v7821_v14  ;;  %v7629_v14 = vor.u32 %v9811_v2, %v7626_v3  ;;  %v8013_v28 = vor.u32 %v9907_v12, %v8010_v9  ;;  %v8234_v35 = vld [vmem:[#allocation5 + $0xcf8] sm:$0xf0]  ;;  %v10023_v61 = vld [vmem:[#allocation5 + $0xecc] sm:$0xf] }
 0x22c   : > { %4429 = vmatpush.bf16.msra.mxu2 %v7949_v15  ;;  %v9807_v15 = vld [vmem:[#allocation5 + $0x80c] sm:$0xf]  ;;  %v8362_v42 = vld [vmem:[#allocation5 + $0xdf8] sm:$0xf0]  ;;  %v8237_v51 = vor.u32 %v9963_v33, %v8234_v35 }
 0x22d   : > { %4442 = vmatpush.bf16.msra.mxu3 %v8077_v25  ;;  %v9839_v25 = vld [vmem:[#allocation5 + $0x90c] sm:$0xf]  ;;  %v8490_v44 = vld [vmem:[#allocation5 + $0xef8] sm:$0xf0]  ;;  %v8365_v54 = vor.u32 %v9995_v36, %v8362_v42 }
 0x22e   : > { %4404 = vmatpush.bf16.msra.mxu0 %v7677_v38  ;;  %v4178_v24 = vpop.f32.mrf.mxu2  ;;  %v9903_v38 = vld [vmem:[#allocation5 + $0xb0c] sm:$0xf]  ;;  %v7741_v45 = vor.u32 %v9839_v25, %v7738_v21  ;;  %v8493_v52 = vor.u32 %v10027_v43, %v8490_v44  ;;  %v8218_v55 = vld [vmem:[#allocation5 + $0xcd8] sm:$0xf0] }
 0x22f   : > { %4417 = vmatpush.bf16.msra.mxu1 %v7805_v40  ;;  %v7994_v40 = vld [vmem:[#allocation5 + $0xb18] sm:$0xf0]  ;;  %v10055_v0 = vld [vmem:[#allocation5 + $0xfcc] sm:$0xf] }
 0x230   : > { %4430 = vmatpush.bf16.msra.mxu2 %v7933_v32  ;;  %v4191_v32 = vpop.f32.mrf.mxu3  ;;  %v8346_v59 = vld [vmem:[#allocation5 + $0xdd8] sm:$0xf0]  ;;  %v9955_v4 = vld [vmem:[#allocation5 + $0xcac] sm:$0xf] }
 0x231   : > { %4443 = vmatpush.bf16.msra.mxu3 %v8061_v41  ;;  %v7613_v41 = vor.u32 %v9807_v15, %v7610_v16  ;;  %v8349_v2 = vor.u32 %v9991_v56, %v8346_v59  ;;  %v8202_v5 = vld [vmem:[#allocation5 + $0xcb8] sm:$0xf0]  ;;  %v10019_v11 = vld [vmem:[#allocation5 + $0xeac] sm:$0xf] }
 0x232   : > { %4405 = vmatpush.bf16.msra.mxu0 %v7661_v46  ;;  %v10059_v46 = vld [vmem:[#allocation5 + $0xfec] sm:$0xf]  ;;  %v8330_v8 = vld [vmem:[#allocation5 + $0xdb8] sm:$0xf0]  ;;  %v8205_v15 = vor.u32 %v9955_v4, %v8202_v5 }
 0x233   : > { %4418 = vmatpush.bf16.msra.mxu1 %v7789_v47  ;;  %v8618_v47 = vld [vmem:[#allocation5 + $0xff8] sm:$0xf0]  ;;  %v10051_v9 = vld [vmem:[#allocation5 + $0xfac] sm:$0xf] }
 0x234   : > { %4431 = vmatpush.bf16.msra.mxu2 %v7917_v50  ;;  %v7997_v50 = vor.u32 %v9903_v38, %v7994_v40  ;;  %v8621_v57 = vor.u32 %v10059_v46, %v8618_v47  ;;  %v8458_v12 = vld [vmem:[#allocation5 + $0xeb8] sm:$0xf0]  ;;  %v9983_v25 = vld [vmem:[#allocation5 + $0xd8c] sm:$0xf] }
 0x235   : > { %4444 = vmatpush.bf16.msra.mxu3 %v8045_v48  ;;  %v9959_v48 = vld [vmem:[#allocation5 + $0xccc] sm:$0xf]  ;;  %v8314_v29 = vld [vmem:[#allocation5 + $0xd98] sm:$0xf0] }
 0x236   : > { %4406 = vmatpush.bf16.msra.mxu0 %v7645_v63  ;;  %v8474_v63 = vld [vmem:[#allocation5 + $0xed8] sm:$0xf0]  ;;  %v10015_v24 = vld [vmem:[#allocation5 + $0xe8c] sm:$0xf]  ;;  %v8317_v40 = vor.u32 %v9983_v25, %v8314_v29 }
 0x237   : > { %4419 = vmatpush.bf16.msra.mxu1 %v7773_v1  ;;  %v8602_v1 = vld [vmem:[#allocation5 + $0xfd8] sm:$0xf0]  ;;  %v8477_v3 = vor.u32 %v10023_v61, %v8474_v63  ;;  %v9947_v33 = vld [vmem:[#allocation5 + $0xc6c] sm:$0xf] }
 0x238   : > { %4432 = vmatpush.bf16.msra.mxu2 %v7901_v6  ;;  %v8221_v6 = vor.u32 %v9959_v48, %v8218_v55  ;;  %v8605_v10 = vor.u32 %v10055_v0, %v8602_v1  ;;  %v8570_v37 = vld [vmem:[#allocation5 + $0xf98] sm:$0xf0]  ;;  %v9979_v36 = vld [vmem:[#allocation5 + $0xd6c] sm:$0xf] }
 0x239   : > { %4445 = vmatpush.bf16.msra.mxu3 %v8029_v7  ;;  %v9987_v7 = vld [vmem:[#allocation5 + $0xdac] sm:$0xf]  ;;  %v8170_v35 = vld [vmem:[#allocation5 + $0xc78] sm:$0xf0] }
 0x23a   : > { %4407 = vmatpush.bf16.msra.mxu0 %v7629_v14  ;;  %v8586_v14 = vld [vmem:[#allocation5 + $0xfb8] sm:$0xf0]  ;;  %v8333_v16 = vor.u32 %v9987_v7, %v8330_v8  ;;  %v10011_v43 = vld [vmem:[#allocation5 + $0xe6c] sm:$0xf]  ;;  %v8173_v46 = vor.u32 %v9947_v33, %v8170_v35 }
 0x23b   : > { %4420 = vmatpush.bf16.msra.mxu1 %v7757_v17  ;;  %v8461_v17 = vor.u32 %v10019_v11, %v8458_v12  ;;  %v8589_v21 = vor.u32 %v10051_v9, %v8586_v14  ;;  %v8298_v42 = vld [vmem:[#allocation5 + $0xd78] sm:$0xf0]  ;;  %v10039_v63 = vld [vmem:[#allocation5 + $0xf4c] sm:$0xf] }
 0x23c   : > { %4433 = vmatpush.bf16.msra.mxu2 %v7885_v34  ;;  %v9951_v34 = vld [vmem:[#allocation5 + $0xc8c] sm:$0xf]  ;;  %v8426_v44 = vld [vmem:[#allocation5 + $0xe78] sm:$0xf0]  ;;  %v8301_v47 = vor.u32 %v9979_v36, %v8298_v42 }
 0x23d   : > { %4446 = vmatpush.bf16.msra.mxu3 %v8013_v28  ;;  %v8282_v56 = vld [vmem:[#allocation5 + $0xd58] sm:$0xf0]  ;;  %v9939_v7 = vld [vmem:[#allocation5 + $0xc2c] sm:$0xf] }
 0x23e   : > { %4408 = vmatpush.bf16.msra.mxu0 %v7613_v41  ;;  %v11253_v28 = vpop.f32.mrf.mxu0  ;;  %v8410_v59 = vld [vmem:[#allocation5 + $0xe58] sm:$0xf0]  ;;  %v9971_v8 = vld [vmem:[#allocation5 + $0xd2c] sm:$0xf] }
 0x23f   : > { %4421 = vmatpush.bf16.msra.mxu1 %v7741_v45  ;;  %v11255_v38 = vpop.f32.mrf.mxu1  ;;  %v10043_v45 = vld [vmem:[#allocation5 + $0xf6c] sm:$0xf]  ;;  %v8538_v0 = vld [vmem:[#allocation5 + $0xf58] sm:$0xf0] }
 0x240   : > { %4434 = vmatpush.bf16.msra.mxu2 %v7869_v62  ;;  %v8554_v62 = vld [vmem:[#allocation5 + $0xf78] sm:$0xf0]  ;;  %v8541_v11 = vor.u32 %v10039_v63, %v8538_v0  ;;  %v10003_v9 = vld [vmem:[#allocation5 + $0xe2c] sm:$0xf] }
 0x241   : > { %4447 = vmatpush.bf16.msra.mxu3 %v7997_v50  ;;  %4409 = vmatmul.bf16.vlgmr.msra.gmra.mxu0 %v11149_v18  ;;  %v8186_v18 = vld [vmem:[#allocation5 + $0xc98] sm:$0xf0]  ;;  %v8429_v50 = vor.u32 %v10011_v43, %v8426_v44  ;;  %v8557_v48 = vor.u32 %v10043_v45, %v8554_v62  ;;  %v8808_v43 = vld [vmem:[#allocation8 + $0x170] sm:$0xf] }
 0x242   : > { %4453 = vmatpush.bf16.msrb.mxu0 %v8237_v51  ;;  %4422 = vmatmul.bf16.vlgmr.msra.gmra.mxu1 %v11153_v23  ;;  %v10047_v23 = vld [vmem:[#allocation5 + $0xf8c] sm:$0xf]  ;;  %v8266_v12 = vld [vmem:[#allocation5 + $0xd38] sm:$0xf0] }
 0x243   : > { %4466 = vmatpush.bf16.msrb.mxu1 %v8365_v54  ;;  %4435 = vmatmul.bf16.vlgmr.msra.gmra.mxu2 %v11151_v22  ;;  %v8442_v22 = vld [vmem:[#allocation5 + $0xe98] sm:$0xf0]  ;;  %v8573_v41 = vor.u32 %v10047_v23, %v8570_v37  ;;  %v9943_v51 = vld [vmem:[#allocation5 + $0xc4c] sm:$0xf] }
 0x244   : > { %4479 = vmatpush.bf16.msrb.mxu2 %v8493_v52  ;;  %4448 = vmatmul.bf16.vlgmr.msra.gmra.mxu3 %v11155_v27  ;;  %v8189_v27 = vor.u32 %v9951_v34, %v8186_v18  ;;  %v8445_v32 = vor.u32 %v10015_v24, %v8442_v22  ;;  %v8154_v54 = vld [vmem:[#allocation5 + $0xc58] sm:$0xf0]  ;;  %v9975_v52 = vld [vmem:[#allocation5 + $0xd4c] sm:$0xf]  ;;  %v8269_v18 = vor.u32 %v9971_v8, %v8266_v12  ;;  %v8656_v12 = vld [vmem:[#allocation8 + $0x40] sm:$0xf] }
 0x245   : > { %4492 = vmatpush.bf16.msrb.mxu3 %v8621_v57  ;;  %v10007_v57 = vld [vmem:[#allocation5 + $0xe4c] sm:$0xf]  ;;  %v8285_v4 = vor.u32 %v9975_v52, %v8282_v56  ;;  %v8394_v14 = vld [vmem:[#allocation5 + $0xe38] sm:$0xf0] }
 0x246   : > { %4454 = vmatpush.bf16.msrb.mxu0 %v8221_v6  ;;  %v11257_v55 = vpop.f32.mrf.mxu2  ;;  %v4204_v1 = vpop.f32.mrf.mxu0  ;;  %v4151_v6 = vadd.f32 %v11241_v30, %v11235_v60  ;;  %v8413_v5 = vor.u32 %v10007_v57, %v8410_v59  ;;  %v9935_v30 = vld [vmem:[#allocation5 + $0xc0c] sm:$0xf]  ;;  %v8122_v34 = vld [vmem:[#allocation5 + $0xc18] sm:$0xf0]  ;;  %v8397_v25 = vor.u32 %v10003_v9, %v8394_v14  ;;  %v8800_v57 = vld [vmem:[#allocation8 + $0x160] sm:$0xf] }
 0x247   : > { %4467 = vmatpush.bf16.msrb.mxu1 %v8349_v2  ;;  %v11259_v61 = vpop.f32.mrf.mxu3  ;;  %v8157_v2 = vor.u32 %v9943_v51, %v8154_v54  ;;  %v8250_v29 = vld [vmem:[#allocation5 + $0xd18] sm:$0xf0]  ;;  %v9999_v24 = vld [vmem:[#allocation5 + $0xe0c] sm:$0xf]  ;;  %v8672_v54 = vld [vmem:[#allocation8 + $0x60] sm:$0xf] }
 0x248   : > { %4480 = vmatpush.bf16.msrb.mxu2 %v8477_v3  ;;  %v4217_v3 = vpop.f32.mrf.mxu1  ;;  %v8378_v23 = vld [vmem:[#allocation5 + $0xe18] sm:$0xf0]  ;;  %v10031_v37 = vld [vmem:[#allocation5 + $0xf0c] sm:$0xf] }
 0x249   : > { %4493 = vmatpush.bf16.msrb.mxu3 %v8605_v10  ;;  %v8138_v10 = vld [vmem:[#allocation5 + $0xc38] sm:$0xf0]  ;;  %v8381_v62 = vor.u32 %v9999_v24, %v8378_v23  ;;  %v10075_v52 = vld [vmem:[#allocation8 + $0x64] sm:$0xf0] }
 0x24a   : > { %4455 = vmatpush.bf16.msrb.mxu0 %v8205_v15  ;;  %v10035_v15 = vld [vmem:[#allocation5 + $0xf2c] sm:$0xf]  ;;  %v8141_v60 = vor.u32 %v9939_v7, %v8138_v10  ;;  %v10077_v33 = vld [vmem:[#allocation8 + $0x74] sm:$0xf0]  ;;  %v8673_v0 = vor.u32 %v10075_v52, %v8672_v54  ;;  %v8760_v52 = vld [vmem:[#allocation8 + $0x110] sm:$0xf] }
 0x24b   : > { %4468 = vmatpush.bf16.msrb.mxu1 %v8333_v16  ;;  %v8522_v16 = vld [vmem:[#allocation5 + $0xf38] sm:$0xf0]  ;;  %v10107_v59 = vld [vmem:[#allocation8 + $0x164] sm:$0xf0] }
 0x24c   : > { %4481 = vmatpush.bf16.msrb.mxu2 %v8461_v17  ;;  %v4164_v17 = vadd.f32 %v11243_v39, %v4151_v6  ;;  %v8525_v22 = vor.u32 %v10035_v15, %v8522_v16  ;;  %v8744_v39 = vld [vmem:[#allocation8 + $0xf0] sm:$0xf]  ;;  %v10093_v42 = vld [vmem:[#allocation8 + $0xf4] sm:$0xf0]  ;;  %v8801_v6 = vor.u32 %v10107_v59, %v8800_v57  ;;  %v10071_v9 = vld [vmem:[#allocation8 + $0x44] sm:$0xf0] }
 0x24d   : > { %4494 = vmatpush.bf16.msrb.mxu3 %v8589_v21  ;;  %v9967_v21 = vld [vmem:[#allocation5 + $0xd0c] sm:$0xf]  ;;  %v10109_v44 = vld [vmem:[#allocation8 + $0x174] sm:$0xf0]  ;;  %v8784_v15 = vld [vmem:[#allocation8 + $0x140] sm:$0xf] }
 0x24e   : > { %4456 = vmatpush.bf16.msrb.mxu0 %v8189_v27  ;;  %v8506_v27 = vld [vmem:[#allocation5 + $0xf18] sm:$0xf0]  ;;  %v4177_v36 = vadd.f32 %v11245_v53, %v4164_v17  ;;  %v8253_v45 = vor.u32 %v9967_v21, %v8250_v29  ;;  %v8809_v51 = vor.u32 %v10109_v44, %v8808_v43  ;;  %v10091_v53 = vld [vmem:[#allocation8 + $0xe4] sm:$0xf0]  ;;  %v8776_v29 = vld [vmem:[#allocation8 + $0x130] sm:$0xf] }
 0x24f   : > { %4469 = vmatpush.bf16.msrb.mxu1 %v8317_v40  ;;  %v4230_v40 = vpop.f32.mrf.mxu2  ;;  %v4243_v35 = vpop.f32.mrf.mxu3  ;;  %v10073_v3 = vld [vmem:[#allocation8 + $0x54] sm:$0xf0]  ;;  %v10087_v14 = vld [vmem:[#allocation8 + $0xc4] sm:$0xf0] }
 0x250   : > { %4482 = vmatpush.bf16.msrb.mxu2 %v8445_v32  ;;  %v8680_v32 = vld [vmem:[#allocation8 + $0x70] sm:$0xf]  ;;  %v4190_v56 = vadd.f32 %v11247_v58, %v4177_v36  ;;  %v10089_v58 = vld [vmem:[#allocation8 + $0xd4] sm:$0xf0]  ;;  %v10103_v16 = vld [vmem:[#allocation8 + $0x144] sm:$0xf0] }
 0x251   : > { %4495 = vmatpush.bf16.msrb.mxu3 %v8573_v41  ;;  %v8125_v41 = vor.u32 %v9935_v30, %v8122_v34  ;;  %v10105_v7 = vld [vmem:[#allocation8 + $0x154] sm:$0xf0]  ;;  %v8648_v30 = vld [vmem:[#allocation8 + $0x30] sm:$0xf]  ;;  %v10067_v40 = vld [vmem:[#allocation8 + $0x24] sm:$0xf0] }
 0x252   : > { %4457 = vmatpush.bf16.msrb.mxu0 %v8173_v46  ;;  %v8509_v46 = vor.u32 %v10031_v37, %v8506_v27  ;;  %v4203_v63 = vadd.f32 %v11253_v28, %v4190_v56  ;;  %v10069_v34 = vld [vmem:[#allocation8 + $0x34] sm:$0xf0]  ;;  %v8640_v27 = vld [vmem:[#allocation8 + $0x20] sm:$0xf]  ;;  %v10099_v36 = vld [vmem:[#allocation8 + $0x124] sm:$0xf0] }
 0x253   : > { %4470 = vmatpush.bf16.msrb.mxu1 %v8301_v47  ;;  %v8681_v47 = vor.u32 %v10077_v33, %v8680_v32  ;;  %v10085_v21 = vld [vmem:[#allocation8 + $0xb4] sm:$0xf0]  ;;  %v8704_v32 = vld [vmem:[#allocation8 + $0xa0] sm:$0xf]  ;;  %v8641_v43 = vor.u32 %v10067_v40, %v8640_v27  ;;  %v10104_v27 = vld [vmem:[#allocation8 + $0x154] sm:$0xf] }
 0x254   : > { %4483 = vmatpush.bf16.msrb.mxu2 %v8429_v50  ;;  %v8745_v50 = vor.u32 %v10093_v42, %v8744_v39  ;;  %v4216_v28 = vadd.f32 %v11255_v38, %v4203_v63  ;;  %v10101_v24 = vld [vmem:[#allocation8 + $0x134] sm:$0xf0]  ;;  %v10083_v39 = vld [vmem:[#allocation8 + $0xa4] sm:$0xf0]  ;;  %v8768_v35 = vld [vmem:[#allocation8 + $0x120] sm:$0xf] }
 0x255   : > { %4496 = vmatpush.bf16.msrb.mxu3 %v8557_v48  ;;  %v8736_v48 = vld [vmem:[#allocation8 + $0xe0] sm:$0xf]  ;;  %v8777_v37 = vor.u32 %v10101_v24, %v8776_v29  ;;  %v10081_v54 = vld [vmem:[#allocation8 + $0x94] sm:$0xf0]  ;;  %v10063_v63 = vld [vmem:[#allocation8 + $0x4] sm:$0xf0] }
 0x256   : > { %4458 = vmatpush.bf16.msrb.mxu0 %v8157_v2  ;;  %v8737_v1 = vor.u32 %v10091_v53, %v8736_v48  ;;  %v8664_v2 = vld [vmem:[#allocation8 + $0x50] sm:$0xf]  ;;  %v10097_v48 = vld [vmem:[#allocation8 + $0x114] sm:$0xf0]  ;;  %v8624_v53 = vld [vmem:[#allocation8] sm:$0xf] }
 0x257   : > { %4471 = vmatpush.bf16.msrb.mxu1 %v8285_v4  ;;  %v8728_v4 = vld [vmem:[#allocation8 + $0xd0] sm:$0xf]  ;;  %v8665_v10 = vor.u32 %v10073_v3, %v8664_v2  ;;  %v8761_v59 = vor.u32 %v10097_v48, %v8760_v52  ;;  %v8752_v2 = vld [vmem:[#allocation8 + $0x100] sm:$0xf]  ;;  %v10095_v3 = vld [vmem:[#allocation8 + $0x104] sm:$0xf0] }
 0x258   : > { %4484 = vmatpush.bf16.msrb.mxu2 %v8413_v5  ;;  %v8792_v5 = vld [vmem:[#allocation8 + $0x150] sm:$0xf]  ;;  %v8729_v8 = vor.u32 %v10089_v58, %v8728_v4  ;;  %v10076_v4 = vld [vmem:[#allocation8 + $0x74] sm:$0xf]  ;;  %v8794_v40 = vld [vmem:[#allocation8 + $0x158] sm:$0xf0] }
 0x259   : > { %4497 = vmatpush.bf16.msrb.mxu3 %v8541_v11  ;;  %v8793_v11 = vor.u32 %v10105_v7, %v8792_v5  ;;  %v8682_v5 = vld [vmem:[#allocation8 + $0x78] sm:$0xf0]  ;;  %v10092_v7 = vld [vmem:[#allocation8 + $0xf4] sm:$0xf] }
 0x25a   : > { %4459 = vmatpush.bf16.msrb.mxu0 %v8141_v60  ;;  %v8785_v60 = vor.u32 %v10103_v16, %v8784_v15  ;;  %v8685_v16 = vor.u32 %v10076_v4, %v8682_v5  ;;  %v10072_v24 = vld [vmem:[#allocation8 + $0x54] sm:$0xf]  ;;  %v8714_v48 = vld [vmem:[#allocation8 + $0xb8] sm:$0xf0]  ;;  %v10082_v4 = vld [vmem:[#allocation8 + $0xa4] sm:$0xf] }
 0x25b   : > { %4472 = vmatpush.bf16.msrb.mxu1 %v8269_v18  ;;  %v8712_v18 = vld [vmem:[#allocation8 + $0xb0] sm:$0xf]  ;;  %v10084_v52 = vld [vmem:[#allocation8 + $0xb4] sm:$0xf] }
 0x25c   : > { %4485 = vmatpush.bf16.msrb.mxu2 %v8397_v25  ;;  %v8713_v23 = vor.u32 %v10085_v21, %v8712_v18  ;;  %v8802_v18 = vld [vmem:[#allocation8 + $0x168] sm:$0xf0] }
 0x25d   : > { %4498 = vmatpush.bf16.msrb.mxu3 %v8525_v22  ;;  %v8649_v22 = vor.u32 %v10069_v34, %v8648_v30  ;;  %v8738_v30 = vld [vmem:[#allocation8 + $0xe8] sm:$0xf0]  ;;  %v10106_v34 = vld [vmem:[#allocation8 + $0x164] sm:$0xf] }
 0x25e   : > { %4460 = vmatpush.bf16.msrb.mxu0 %v8125_v41  ;;  %v4254_v17 = vpop.f32.mrf.mxu0 }
 0x25f   : > { %4473 = vmatpush.bf16.msrb.mxu1 %v8253_v45  ;;  %v8705_v45 = vor.u32 %v10083_v39, %v8704_v32  ;;  %v10070_v39 = vld [vmem:[#allocation8 + $0x44] sm:$0xf] }
 0x260   : > { %4486 = vmatpush.bf16.msrb.mxu2 %v8381_v62  ;;  %v8769_v62 = vor.u32 %v10099_v36, %v8768_v35  ;;  %v8658_v35 = vld [vmem:[#allocation8 + $0x48] sm:$0xf0]  ;;  %v8797_v36 = vor.u32 %v10104_v27, %v8794_v40 }
 0x261   : > { %4499 = vmatpush.bf16.msrb.mxu3 %v8509_v46  ;;  %4461 = vmatmul.bf16.vlgmr.msrb.gmra.mxu0 %v11165_v13  ;;  %v8720_v13 = vld [vmem:[#allocation8 + $0xc0] sm:$0xf]  ;;  %v8632_v46 = vld [vmem:[#allocation8 + $0x10] sm:$0xf] }
 0x262   : > { %4903 = vmatpush.bf16.msra.mxu0 %v8681_v47  ;;  %4474 = vmatmul.bf16.vlgmr.msrb.gmra.mxu1 %v11169_v20  ;;  %v4229_v20 = vadd.f32 %v11257_v55, %v4216_v28  ;;  %v8721_v38 = vor.u32 %v10087_v14, %v8720_v13  ;;  %v10065_v47 = vld [vmem:[#allocation8 + $0x14] sm:$0xf0]  ;;  %v8746_v28 = vld [vmem:[#allocation8 + $0xf8] sm:$0xf0]  ;;  %v4506_v13 = vmax.f32 %v11229_v49, 0.0  ;;  %v8753_v14 = vor.u32 %v10095_v3, %v8752_v2 }
 0x263   : > { %4916 = vmatpush.bf16.msra.mxu1 %v8745_v50  ;;  %4487 = vmatmul.bf16.vlgmr.msrb.gmra.mxu2 %v11167_v19  ;;  %v8657_v19 = vor.u32 %v10071_v9, %v8656_v12  ;;  %v8696_v50 = vld [vmem:[#allocation8 + $0x90] sm:$0xf]  ;;  %v8633_v56 = vor.u32 %v10065_v47, %v8632_v46  ;;  %v8810_v12 = vld [vmem:[#allocation8 + $0x178] sm:$0xf0]  ;;  %v4505_v9 = vmax.f32 %v11202_v31, 0.0 }
 0x264   : > { %4929 = vmatpush.bf16.msra.mxu2 %v8809_v51  ;;  %4500 = vmatmul.bf16.vlgmr.msrb.gmra.mxu3 %v11171_v26  ;;  %v4267_v26 = vpop.f32.mrf.mxu1  ;;  %v4242_v25 = vadd.f32 %v11259_v61, %v4229_v20  ;;  %v8697_v57 = vor.u32 %v10081_v54, %v8696_v50  ;;  %v11278_v31 = vpack.c.bf16 %v4506_v13, %v4506_v13  ;;  %v10068_v47 = vld [vmem:[#allocation8 + $0x34] sm:$0xf]  ;;  %v8650_v54 = vld [vmem:[#allocation8 + $0x38] sm:$0xf0]  ;;  %v8642_v3 = vld [vmem:[#allocation8 + $0x28] sm:$0xf0] }
 0x266   : > { %4904 = vmatpush.bf16.msra.mxu0 %v8673_v0  ;;  %v4255_v55 = vadd.f32 %v4254_v17, %v4242_v25  ;;  %v4280_v33 = vpop.f32.mrf.mxu2  ;;  %v4256_v42 = vpop.f32.mrf.mxu0  ;;  %v8688_v0 = vld [vmem:[#allocation8 + $0x80] sm:$0xf]  ;;  %v8749_v17 = vor.u32 %v10092_v7, %v8746_v28  ;;  %v11276_v25 = vpack.c.bf16 %v4505_v9, %v4505_v9  ;;  %v10098_v7 = vld [vmem:[#allocation8 + $0x124] sm:$0xf]  ;;  %v8770_v28 = vld [vmem:[#allocation8 + $0x128] sm:$0xf0] }
 0x267   : > { %4917 = vmatpush.bf16.msra.mxu1 %v8737_v1  ;;  %v4293_v41 = vpop.f32.mrf.mxu3  ;;  %v10079_v1 = vld [vmem:[#allocation8 + $0x84] sm:$0xf0]  ;;  %v8722_v42 = vld [vmem:[#allocation8 + $0xc8] sm:$0xf0]  ;;  %v10064_v9 = vld [vmem:[#allocation8 + $0x14] sm:$0xf] }
 0x268   : > { %4930 = vmatpush.bf16.msra.mxu2 %v8801_v6  ;;  %v4268_v61 = vadd.f32 %v4267_v26, %v4255_v55  ;;  %v8689_v20 = vor.u32 %v10079_v1, %v8688_v0  ;;  %v8805_v55 = vor.u32 %v10106_v34, %v8802_v18  ;;  %v8653_v0 = vor.u32 %v10068_v47, %v8650_v54  ;;  %v10062_v34 = vld [vmem:[#allocation8 + $0x4] sm:$0xf]  ;;  %v8848_v47 = vld [vmem:[#allocation8 + $0x1c0] sm:$0xf]  ;;  %v8840_v54 = vld [vmem:[#allocation8 + $0x1b0] sm:$0xf] }
 0x269   : > { %v8717_v1 = vor.u32 %v10084_v52, %v8714_v48  ;;  %v10117_v52 = vld [vmem:[#allocation8 + $0x1b4] sm:$0xf0] }
 0x26a   : > { %4905 = vmatpush.bf16.msra.mxu0 %v8665_v10  ;;  %v4281_v51 = vadd.f32 %v4280_v33, %v4268_v61  ;;  %v10440_v61 = vld [vmem:[#allocation7] sm:$0xf]  ;;  %v8841_v48 = vor.u32 %v10117_v52, %v8840_v54 }
 0x26b   : > { %4918 = vmatpush.bf16.msra.mxu1 %v8729_v8  ;;  %v8625_v8 = vor.u32 %v10063_v63, %v8624_v53 }
 0x26c   : > { %4931 = vmatpush.bf16.msra.mxu2 %v8793_v11  ;;  %v4269_v44 = vpop.f32.mrf.mxu1  ;;  %v4294_v6 = vadd.f32 %v4293_v41, %v4281_v51  ;;  %v10108_v11 = vld [vmem:[#allocation8 + $0x174] sm:$0xf]  ;;  %v10086_v41 = vld [vmem:[#allocation8 + $0xc4] sm:$0xf] }
 0x26d   : > { %v8813_v26 = vor.u32 %v10108_v11, %v8810_v12  ;;  %v10102_v44 = vld [vmem:[#allocation8 + $0x144] sm:$0xf]  ;;  %v8725_v46 = vor.u32 %v10086_v41, %v8722_v42  ;;  %v8864_v41 = vld [vmem:[#allocation8 + $0x1e0] sm:$0xf]  ;;  %v10123_v42 = vld [vmem:[#allocation8 + $0x1e4] sm:$0xf0] }
 0x26e   : > { %4906 = vmatpush.bf16.msra.mxu0 %v8657_v19  ;;  %v4282_v58 = vpop.f32.mrf.mxu2  ;;  %v4507_v15 = vmax.f32 %v4294_v6, 0.0  ;;  %v10074_v19 = vld [vmem:[#allocation8 + $0x64] sm:$0xf] }
 0x26f   : > { %4919 = vmatpush.bf16.msra.mxu1 %v8721_v38  ;;  %v4295_v10 = vpop.f32.mrf.mxu3  ;;  %v8674_v38 = vld [vmem:[#allocation8 + $0x68] sm:$0xf0]  ;;  %v10066_v6 = vld [vmem:[#allocation8 + $0x24] sm:$0xf] }
 0x270   : > { %4932 = vmatpush.bf16.msra.mxu2 %v8785_v60  ;;  %v10090_v60 = vld [vmem:[#allocation8 + $0xe4] sm:$0xf]  ;;  %v11280_v49 = vpack.c.bf16 %v4507_v15, %v4507_v15  ;;  %v8677_v21 = vor.u32 %v10074_v19, %v8674_v38  ;;  %v8706_v58 = vld [vmem:[#allocation8 + $0xa8] sm:$0xf0]  ;;  %v8645_v11 = vor.u32 %v10066_v6, %v8642_v3  ;;  %v8634_v15 = vld [vmem:[#allocation8 + $0x18] sm:$0xf0] }
 0x271   : > { %v8741_v29 = vor.u32 %v10090_v60, %v8738_v30  ;;  %v8709_v12 = vor.u32 %v10082_v4, %v8706_v58  ;;  %v8762_v38 = vld [vmem:[#allocation8 + $0x118] sm:$0xf0]  ;;  %v8637_v60 = vor.u32 %v10064_v9, %v8634_v15  ;;  %v10111_v3 = vld [vmem:[#allocation8 + $0x184] sm:$0xf0]  ;;  %v10124_v58 = vld [vmem:[#allocation8 + $0x1f4] sm:$0xf] }
 0x272   : > { %4907 = vmatpush.bf16.msra.mxu0 %v8649_v22  ;;  %v8666_v22 = vld [vmem:[#allocation8 + $0x58] sm:$0xf0]  ;;  %v10120_v9 = vld [vmem:[#allocation8 + $0x1d4] sm:$0xf] }
 0x273   : > { %4920 = vmatpush.bf16.msra.mxu1 %v8713_v23  ;;  %v10088_v23 = vld [vmem:[#allocation8 + $0xd4] sm:$0xf]  ;;  %v8669_v32 = vor.u32 %v10072_v24, %v8666_v22  ;;  %v8690_v24 = vld [vmem:[#allocation8 + $0x88] sm:$0xf0]  ;;  %v10094_v22 = vld [vmem:[#allocation8 + $0x104] sm:$0xf] }
 0x274   : > { %4933 = vmatpush.bf16.msra.mxu2 %v8777_v37  ;;  %v8730_v37 = vld [vmem:[#allocation8 + $0xd8] sm:$0xf0] }
 0x275   : > { %v8733_v33 = vor.u32 %v10088_v23, %v8730_v37  ;;  %v8754_v23 = vld [vmem:[#allocation8 + $0x108] sm:$0xf0] }
 0x276   : > { %4908 = vmatpush.bf16.msra.mxu0 %v8641_v43  ;;  %v1108_v43 = vperm.slane %v10440_v61, 3 }
 0x277   : > { %4921 = vmatpush.bf16.msra.mxu1 %v8705_v45  ;;  %v8786_v45 = vld [vmem:[#allocation8 + $0x148] sm:$0xf0] }
 0x278   : > { %4934 = vmatpush.bf16.msra.mxu2 %v8769_v62  ;;  %v8661_v62 = vor.u32 %v10070_v39, %v8658_v35  ;;  %v8789_v51 = vor.u32 %v10102_v44, %v8786_v45  ;;  %v10125_v39 = vld [vmem:[#allocation8 + $0x1f4] sm:$0xf0]  ;;  %v8856_v45 = vld [vmem:[#allocation8 + $0x1d0] sm:$0xf] }
 0x27a   : > { %4909 = vmatpush.bf16.msra.mxu0 %v8633_v56 }
 0x27b   : > { %4922 = vmatpush.bf16.msra.mxu1 %v8697_v57  ;;  %v10100_v57 = vld [vmem:[#allocation8 + $0x134] sm:$0xf] }
 0x27c   : > { %4935 = vmatpush.bf16.msra.mxu2 %v8761_v59  ;;  %v8778_v59 = vld [vmem:[#allocation8 + $0x138] sm:$0xf0] }
 0x27d   : > { %v8781_v2 = vor.u32 %v10100_v57, %v8778_v59  ;;  %v10115_v57 = vld [vmem:[#allocation8 + $0x1a4] sm:$0xf0] }
 0x27e   : > { %4910 = vmatpush.bf16.msra.mxu0 %v8625_v8  ;;  %v4306_v50 = vpop.f32.mrf.mxu0 }
 0x27f   : > { %4923 = vmatpush.bf16.msra.mxu1 %v8689_v20  ;;  %v4307_v56 = vadd.f32 %v4306_v50, %v1108_v43  ;;  %v4319_v53 = vpop.f32.mrf.mxu1  ;;  %v8865_v43 = vor.u32 %v10123_v42, %v8864_v41 }
 0x280   : > { %4936 = vmatpush.bf16.msra.mxu2 %v8753_v14  ;;  %v8773_v14 = vor.u32 %v10098_v7, %v8770_v28 }
 0x281   : > { %4911 = vmatmul.bf16.vlgmr.msra.gmra.mxu0 %v11276_v25  ;;  %v4320_v63 = vadd.f32 %v4319_v53, %v4307_v56  ;;  %v8832_v53 = vld [vmem:[#allocation8 + $0x1a0] sm:$0xf] }
 0x282   : > { %4955 = vmatpush.bf16.msrb.mxu0 %v8685_v16  ;;  %4924 = vmatmul.bf16.vlgmr.msra.gmra.mxu1 %v11278_v31  ;;  %v10080_v16 = vld [vmem:[#allocation8 + $0x94] sm:$0xf] }
 0x283   : > { %4968 = vmatpush.bf16.msrb.mxu1 %v8749_v17  ;;  %4937 = vmatmul.bf16.vlgmr.msra.gmra.mxu2 %v11280_v49  ;;  %v8698_v17 = vld [vmem:[#allocation8 + $0x98] sm:$0xf0] }
 0x284   : > { %4981 = vmatpush.bf16.msrb.mxu2 %v8813_v26  ;;  %v10096_v26 = vld [vmem:[#allocation8 + $0x114] sm:$0xf]  ;;  %v8701_v30 = vor.u32 %v10080_v16, %v8698_v17 }
 0x285   : > { %v8765_v18 = vor.u32 %v10096_v26, %v8762_v38  ;;  %v10118_v38 = vld [vmem:[#allocation8 + $0x1c4] sm:$0xf] }
 0x286   : > { %4956 = vmatpush.bf16.msrb.mxu0 %v8677_v21  ;;  %v4332_v5 = vpop.f32.mrf.mxu2  ;;  %v4308_v20 = vpop.f32.mrf.mxu0  ;;  %v8626_v21 = vld [vmem:[#allocation8 + $0x8] sm:$0xf0] }
 0x287   : > { %4969 = vmatpush.bf16.msrb.mxu1 %v8741_v29  ;;  %v4333_v10 = vadd.f32 %v4332_v5, %v4320_v63  ;;  %v4345_v8 = vpop.f32.mrf.mxu3  ;;  %v4321_v19 = vpop.f32.mrf.mxu1  ;;  %v10078_v29 = vld [vmem:[#allocation8 + $0x84] sm:$0xf]  ;;  %v8629_v27 = vor.u32 %v10062_v34, %v8626_v21  ;;  %v8833_v63 = vor.u32 %v10115_v57, %v8832_v53  ;;  %v8874_v5 = vld [vmem:[#allocation8 + $0x1f8] sm:$0xf0]  ;;  %v11294_v53 = vld [vmem:[#allocation10] sm:$0x3] }
 0x288   : > { %4982 = vmatpush.bf16.msrb.mxu2 %v8805_v55  ;;  %v8693_v40 = vor.u32 %v10078_v29, %v8690_v24  ;;  %v8877_v7 = vor.u32 %v10124_v58, %v8874_v5  ;;  %v8858_v20 = vld [vmem:[#allocation8 + $0x1d8] sm:$0xf0]  ;;  %v4579_v57 = vperm.slane %v11294_v53, 0  ;;  %v8936_v58 = vld [vmem:[#allocation11 + $0x170] sm:$0xf] }
 0x289   : > { %v11285_v13 = vadd.f32 %v4345_v8, %v4333_v10  ;;  %v10122_v8 = vld [vmem:[#allocation8 + $0x1e4] sm:$0xf]  ;;  %v8861_v15 = vor.u32 %v10120_v9, %v8858_v20  ;;  %v8842_v21 = vld [vmem:[#allocation8 + $0x1b8] sm:$0xf0] }
 0x28a   : > { %4957 = vmatpush.bf16.msrb.mxu0 %v8669_v32  ;;  %v8757_v32 = vor.u32 %v10094_v22, %v8754_v23  ;;  %v8834_v22 = vld [vmem:[#allocation8 + $0x1a8] sm:$0xf0]  ;;  %v10173_v5 = vld [vmem:[#allocation11 + $0x174] sm:$0xf0]  ;;  %v10170_v20 = vld [vmem:[#allocation11 + $0x164] sm:$0xf] }
 0x28b   : > { %4970 = vmatpush.bf16.msrb.mxu1 %v8733_v33  ;;  %v8872_v33 = vld [vmem:[#allocation8 + $0x1f0] sm:$0xf] }
 0x28c   : > { %4983 = vmatpush.bf16.msrb.mxu2 %v8797_v36  ;;  %v8873_v35 = vor.u32 %v10125_v39, %v8872_v33 }
 0x28e   : > { %4958 = vmatpush.bf16.msrb.mxu0 %v8661_v62  ;;  %v4334_v55 = vpop.f32.mrf.mxu2  ;;  %4942 = vmatpush.bf16.msra.mxu3 %v8873_v35  ;;  %v10121_v62 = vld [vmem:[#allocation8 + $0x1d4] sm:$0xf0]  ;;  %v10110_v35 = vld [vmem:[#allocation8 + $0x184] sm:$0xf] }
 0x28f   : > { %4971 = vmatpush.bf16.msrb.mxu1 %v8725_v46  ;;  %v4347_v37 = vpop.f32.mrf.mxu3  ;;  %v10114_v55 = vld [vmem:[#allocation8 + $0x1a4] sm:$0xf] }
 0x290   : > { %4984 = vmatpush.bf16.msrb.mxu2 %v8789_v51 }
 0x292   : > { %4959 = vmatpush.bf16.msrb.mxu0 %v8653_v0  ;;  %4943 = vmatpush.bf16.msra.mxu3 %v8865_v43  ;;  %v8824_v0 = vld [vmem:[#allocation8 + $0x190] sm:$0xf] }
 0x293   : > { %4972 = vmatpush.bf16.msrb.mxu1 %v8717_v1  ;;  %v10113_v1 = vld [vmem:[#allocation8 + $0x194] sm:$0xf0] }
 0x294   : > { %4985 = vmatpush.bf16.msrb.mxu2 %v8781_v2  ;;  %v8825_v6 = vor.u32 %v10113_v1, %v8824_v0  ;;  %v8816_v2 = vld [vmem:[#allocation8 + $0x180] sm:$0xf] }
 0x295   : > { %v8817_v4 = vor.u32 %v10111_v3, %v8816_v2 }
 0x296   : > { %4960 = vmatpush.bf16.msrb.mxu0 %v8645_v11  ;;  %v8866_v11 = vld [vmem:[#allocation8 + $0x1e8] sm:$0xf0] }
 0x297   : > { %4973 = vmatpush.bf16.msrb.mxu1 %v8709_v12  ;;  %v8869_v12 = vor.u32 %v10122_v8, %v8866_v11  ;;  %v8928_v8 = vld [vmem:[#allocation11 + $0x160] sm:$0xf]  ;;  %v10171_v11 = vld [vmem:[#allocation11 + $0x164] sm:$0xf0] }
 0x298   : > { %4986 = vmatpush.bf16.msrb.mxu2 %v8773_v14 }
 0x29a   : > { %4961 = vmatpush.bf16.msrb.mxu0 %v8637_v60  ;;  %v8850_v60 = vld [vmem:[#allocation8 + $0x1c8] sm:$0xf0] }
 0x29b   : > { %4974 = vmatpush.bf16.msrb.mxu1 %v8701_v30  ;;  %v8853_v34 = vor.u32 %v10118_v38, %v8850_v60  ;;  %v8922_v38 = vld [vmem:[#allocation11 + $0x158] sm:$0xf0]  ;;  %v9000_v60 = vld [vmem:[#allocation11 + $0x1f0] sm:$0xf] }
 0x29c   : > { %4987 = vmatpush.bf16.msrb.mxu2 %v8765_v18  ;;  %v10116_v18 = vld [vmem:[#allocation8 + $0x1b4] sm:$0xf] }
 0x29d   : > { %v8845_v24 = vor.u32 %v10116_v18, %v8842_v21  ;;  %v10188_v21 = vld [vmem:[#allocation11 + $0x1f4] sm:$0xf] }
 0x29e   : > { %4962 = vmatpush.bf16.msrb.mxu0 %v8629_v27  ;;  %v4358_v36 = vpop.f32.mrf.mxu0  ;;  %v10112_v27 = vld [vmem:[#allocation8 + $0x194] sm:$0xf] }
 0x29f   : > { %4975 = vmatpush.bf16.msrb.mxu1 %v8693_v40  ;;  %v4371_v61 = vpop.f32.mrf.mxu1  ;;  %v4359_v14 = vadd.f32 %v4358_v36, %v11285_v13  ;;  %v8837_v13 = vor.u32 %v10114_v55, %v8834_v22  ;;  %v8826_v40 = vld [vmem:[#allocation8 + $0x198] sm:$0xf0]  ;;  %v8818_v36 = vld [vmem:[#allocation8 + $0x188] sm:$0xf0]  ;;  %v8912_v55 = vld [vmem:[#allocation11 + $0x140] sm:$0xf] }
 0x2a0   : > { %4988 = vmatpush.bf16.msrb.mxu2 %v8757_v32  ;;  %v8829_v39 = vor.u32 %v10112_v27, %v8826_v40  ;;  %v8821_v42 = vor.u32 %v10110_v35, %v8818_v36  ;;  %v10167_v22 = vld [vmem:[#allocation11 + $0x144] sm:$0xf0]  ;;  %v8914_v27 = vld [vmem:[#allocation11 + $0x148] sm:$0xf0] }
 0x2a1   : > { %4963 = vmatmul.bf16.vlgmr.msrb.gmra.mxu0 %v11276_v25  ;;  %v8857_v25 = vor.u32 %v10121_v62, %v8856_v45  ;;  %v4372_v30 = vadd.f32 %v4371_v61, %v4359_v14  ;;  %v8930_v14 = vld [vmem:[#allocation11 + $0x168] sm:$0xf0]  ;;  %v10187_v40 = vld [vmem:[#allocation11 + $0x1e4] sm:$0xf0]  ;;  %v8913_v35 = vor.u32 %v10167_v22, %v8912_v55 }
 0x2a2   : > { %4976 = vmatmul.bf16.vlgmr.msrb.gmra.mxu1 %v11278_v31  ;;  %v10119_v31 = vld [vmem:[#allocation8 + $0x1c4] sm:$0xf0] }
 0x2a3   : > { %4989 = vmatmul.bf16.vlgmr.msrb.gmra.mxu2 %v11280_v49  ;;  %4944 = vmatpush.bf16.msra.mxu3 %v8857_v25  ;;  %v8849_v49 = vor.u32 %v10119_v31, %v8848_v47 }
 0x2a6   : > { %v4384_v44 = vpop.f32.mrf.mxu2  ;;  %v4360_v50 = vpop.f32.mrf.mxu0 }
 0x2a7   : > { %v11290_v46 = vpop.f32.mrf.mxu3  ;;  %v4373_v51 = vpop.f32.mrf.mxu1  ;;  %4945 = vmatpush.bf16.msra.mxu3 %v8849_v49  ;;  %v4385_v29 = vadd.f32 %v4384_v44, %v4372_v30  ;;  %v10189_v30 = vld [vmem:[#allocation11 + $0x1f4] sm:$0xf0] }
 0x2a8   : > { %v9001_v18 = vor.u32 %v10189_v30, %v9000_v60  ;;  %v10178_v60 = vld [vmem:[#allocation11 + $0x1a4] sm:$0xf]  ;;  %v8962_v30 = vld [vmem:[#allocation11 + $0x1a8] sm:$0xf0] }
 0x2a9   : > { %v4398_v32 = vadd.f32 %v11290_v46, %v4385_v29  ;;  %v9002_v29 = vld [vmem:[#allocation11 + $0x1f8] sm:$0xf0] }
 0x2aa   : > { %5274 = vmatpush.bf16.msra.mxu1 %v9001_v18 }
 0x2ab   : > { %4946 = vmatpush.bf16.msra.mxu3 %v8841_v48 }
 0x2ae   : > { %v4386_v56 = vpop.f32.mrf.mxu2 }
 0x2af   : > { %v4399_v59 = vpop.f32.mrf.mxu3  ;;  %4947 = vmatpush.bf16.msra.mxu3 %v8833_v63 }
 0x2b3   : > { %4948 = vmatpush.bf16.msra.mxu3 %v8825_v6 }
 0x2b7   : > { %4949 = vmatpush.bf16.msra.mxu3 %v8817_v4 }
 0x2bb   : > { %4994 = vmatpush.bf16.msrb.mxu3 %v8877_v7  ;;  %v10172_v7 = vld [vmem:[#allocation11 + $0x174] sm:$0xf] }
 0x2be   : > { %v4410_v28 = vpop.f32.mrf.mxu0 }
 0x2bf   : > { %v4423_v10 = vpop.f32.mrf.mxu1  ;;  %4995 = vmatpush.bf16.msrb.mxu3 %v8869_v12  ;;  %v4411_v33 = vadd.f32 %v4410_v28, %v4398_v32  ;;  %v8937_v28 = vor.u32 %v10173_v5, %v8936_v58  ;;  %v8968_v58 = vld [vmem:[#allocation11 + $0x1b0] sm:$0xf]  ;;  %v10181_v5 = vld [vmem:[#allocation11 + $0x1b4] sm:$0xf0] }
 0x2c1   : > { %v4424_v41 = vadd.f32 %v4423_v10, %v4411_v33  ;;  %v8938_v10 = vld [vmem:[#allocation11 + $0x178] sm:$0xf0]  ;;  %5261 = vmatpush.bf16.msra.mxu0 %v8937_v28  ;;  %v10186_v33 = vld [vmem:[#allocation11 + $0x1e4] sm:$0xf]  ;;  %v10180_v28 = vld [vmem:[#allocation11 + $0x1b4] sm:$0xf] }
 0x2c2   : > { %v8941_v9 = vor.u32 %v10172_v7, %v8938_v10  ;;  %v8970_v10 = vld [vmem:[#allocation11 + $0x1b8] sm:$0xf0] }
 0x2c3   : > { %4996 = vmatpush.bf16.msrb.mxu3 %v8861_v15  ;;  %v8929_v15 = vor.u32 %v10171_v11, %v8928_v8 }
 0x2c4   : > { %5287 = vmatpush.bf16.msra.mxu2 %v8941_v9  ;;  %v10161_v9 = vld [vmem:[#allocation11 + $0x114] sm:$0xf0] }
 0x2c5   : > { %5262 = vmatpush.bf16.msra.mxu0 %v8929_v15  ;;  %v8969_v15 = vor.u32 %v10181_v5, %v8968_v58 }
 0x2c6   : > { %v4436_v16 = vpop.f32.mrf.mxu2  ;;  %v4412_v19 = vpop.f32.mrf.mxu0 }
 0x2c7   : > { %v4449_v17 = vpop.f32.mrf.mxu3  ;;  %v4425_v26 = vpop.f32.mrf.mxu1  ;;  %4997 = vmatpush.bf16.msrb.mxu3 %v8853_v34  ;;  %v4437_v61 = vadd.f32 %v4436_v16, %v4424_v41  ;;  %v8933_v16 = vor.u32 %v10170_v20, %v8930_v14  ;;  %v10169_v19 = vld [vmem:[#allocation11 + $0x154] sm:$0xf0]  ;;  %v8984_v41 = vld [vmem:[#allocation11 + $0x1d0] sm:$0xf]  ;;  %v10160_v20 = vld [vmem:[#allocation11 + $0x114] sm:$0xf] }
 0x2c8   : > { %v10168_v26 = vld [vmem:[#allocation11 + $0x154] sm:$0xf]  ;;  %v8890_v14 = vld [vmem:[#allocation11 + $0x118] sm:$0xf0] }
 0x2c9   : > { %v4450_v43 = vadd.f32 %v4449_v17, %v4437_v61  ;;  %v8920_v17 = vld [vmem:[#allocation11 + $0x150] sm:$0xf]  ;;  %5288 = vmatpush.bf16.msra.mxu2 %v8933_v16  ;;  %v8973_v16 = vor.u32 %v10180_v28, %v8970_v10  ;;  %v8893_v18 = vor.u32 %v10160_v20, %v8890_v14  ;;  %v9120_v28 = vld [vmem:[#allocation11 + $0xe0] sm:$0xf]  ;;  %v10155_v10 = vld [vmem:[#allocation11 + $0xe4] sm:$0xf0] }
 0x2ca   : > { %v8921_v34 = vor.u32 %v10169_v19, %v8920_v17  ;;  %v8960_v17 = vld [vmem:[#allocation11 + $0x1a0] sm:$0xf]  ;;  %v10179_v19 = vld [vmem:[#allocation11 + $0x1a4] sm:$0xf0] }
 0x2cb   : > { %4998 = vmatpush.bf16.msrb.mxu3 %v8845_v24  ;;  %v8925_v24 = vor.u32 %v10168_v26, %v8922_v38  ;;  %v8880_v38 = vld [vmem:[#allocation11 + $0x100] sm:$0xf]  ;;  %v10135_v14 = vld [vmem:[#allocation11 + $0x44] sm:$0xf0] }
 0x2cc   : > { %5263 = vmatpush.bf16.msra.mxu0 %v8921_v34  ;;  %v9040_v20 = vld [vmem:[#allocation11 + $0x40] sm:$0xf] }
 0x2cd   : > { %5289 = vmatpush.bf16.msra.mxu2 %v8925_v24  ;;  %v8882_v24 = vld [vmem:[#allocation11 + $0x108] sm:$0xf0] }
 0x2ce   : > { %v4438_v23 = vpop.f32.mrf.mxu2 }
 0x2cf   : > { %v4451_v37 = vpop.f32.mrf.mxu3  ;;  %4999 = vmatpush.bf16.msrb.mxu3 %v8837_v13  ;;  %v9005_v23 = vor.u32 %v10188_v21, %v9002_v29  ;;  %v10166_v13 = vld [vmem:[#allocation11 + $0x144] sm:$0xf]  ;;  %v10159_v21 = vld [vmem:[#allocation11 + $0x104] sm:$0xf0] }
 0x2d0   : > { %v8992_v37 = vld [vmem:[#allocation11 + $0x1e0] sm:$0xf]  ;;  %v8917_v61 = vor.u32 %v10166_v13, %v8914_v27  ;;  %5264 = vmatpush.bf16.msra.mxu0 %v8913_v35  ;;  %v10158_v29 = vld [vmem:[#allocation11 + $0x104] sm:$0xf]  ;;  %v10141_v13 = vld [vmem:[#allocation11 + $0x74] sm:$0xf0] }
 0x2d1   : > { %v8993_v32 = vor.u32 %v10187_v40, %v8992_v37  ;;  %v9064_v37 = vld [vmem:[#allocation11 + $0x70] sm:$0xf]  ;;  %v10140_v27 = vld [vmem:[#allocation11 + $0x74] sm:$0xf]  ;;  %v8961_v40 = vor.u32 %v10179_v19, %v8960_v17  ;;  %v10177_v35 = vld [vmem:[#allocation11 + $0x194] sm:$0xf0]  ;;  %v9121_v17 = vor.u32 %v10155_v10, %v9120_v28 }
 0x2d2   : > { %5290 = vmatpush.bf16.msra.mxu2 %v8917_v61  ;;  %v8885_v61 = vor.u32 %v10158_v29, %v8882_v24  ;;  %v9024_v24 = vld [vmem:[#allocation11 + $0x20] sm:$0xf]  ;;  %v9080_v28 = vld [vmem:[#allocation11 + $0x90] sm:$0xf]  ;;  %v10145_v10 = vld [vmem:[#allocation11 + $0x94] sm:$0xf0] }
 0x2d3   : > { %5000 = vmatpush.bf16.msrb.mxu3 %v8829_v39  ;;  %v8994_v39 = vld [vmem:[#allocation11 + $0x1e8] sm:$0xf0]  ;;  %5275 = vmatpush.bf16.msra.mxu1 %v8993_v32  ;;  %v9066_v32 = vld [vmem:[#allocation11 + $0x78] sm:$0xf0] }
 0x2d4   : > { %v8997_v36 = vor.u32 %v10186_v33, %v8994_v39  ;;  %v8965_v33 = vor.u32 %v10178_v60, %v8962_v30  ;;  %v8952_v39 = vld [vmem:[#allocation11 + $0x190] sm:$0xf]  ;;  %v10133_v30 = vld [vmem:[#allocation11 + $0x34] sm:$0xf0] }
 0x2d5   : > { %v9032_v60 = vld [vmem:[#allocation11 + $0x30] sm:$0xf] }
 0x2d7   : > { %5001 = vmatpush.bf16.msrb.mxu3 %v8821_v42  ;;  %v10185_v42 = vld [vmem:[#allocation11 + $0x1d4] sm:$0xf0] }
 0x2de   : > { %v4462_v44 = vpop.f32.mrf.mxu0 }
 0x2df   : > { %v4475_v45 = vpop.f32.mrf.mxu1  ;;  %v4463_v62 = vadd.f32 %v4462_v44, %v4450_v43  ;;  %v8904_v43 = vld [vmem:[#allocation11 + $0x130] sm:$0xf]  ;;  %v10165_v44 = vld [vmem:[#allocation11 + $0x134] sm:$0xf0] }
 0x2e1   : > { %v4476_v25 = vadd.f32 %v4475_v45, %v4463_v62  ;;  %v10184_v45 = vld [vmem:[#allocation11 + $0x1d4] sm:$0xf] }
 0x2e2   : > { %v10164_v62 = vld [vmem:[#allocation11 + $0x134] sm:$0xf] }
 0x2e6   : > { %v4488_v47 = vpop.f32.mrf.mxu2  ;;  %v4464_v49 = vpop.f32.mrf.mxu0 }
 0x2e7   : > { %v4501_v31 = vpop.f32.mrf.mxu3  ;;  %v4489_v50 = vadd.f32 %v4488_v47, %v4476_v25  ;;  %v4477_v46 = vpop.f32.mrf.mxu1  ;;  %v8906_v25 = vld [vmem:[#allocation11 + $0x138] sm:$0xf0]  ;;  %v8985_v47 = vor.u32 %v10185_v42, %v8984_v41  ;;  %v10176_v41 = vld [vmem:[#allocation11 + $0x194] sm:$0xf] }
 0x2e8   : > { %v8976_v46 = vld [vmem:[#allocation11 + $0x1c0] sm:$0xf]  ;;  %v8954_v42 = vld [vmem:[#allocation11 + $0x198] sm:$0xf0] }
 0x2e9   : > { %v4502_v51 = vadd.f32 %v4501_v31, %v4489_v50  ;;  %v8986_v31 = vld [vmem:[#allocation11 + $0x1d8] sm:$0xf0]  ;;  %v4580_v50 = vperm.slane %v11294_v53, 1  ;;  %5276 = vmatpush.bf16.msra.mxu1 %v8985_v47  ;;  %v9058_v47 = vld [vmem:[#allocation11 + $0x68] sm:$0xf0] }
 0x2ea   : > { %v8989_v49 = vor.u32 %v10184_v45, %v8986_v31  ;;  %v9069_v45 = vor.u32 %v10140_v27, %v9066_v32  ;;  %v8953_v31 = vor.u32 %v10177_v35, %v8952_v39  ;;  %v10129_v32 = vld [vmem:[#allocation11 + $0x14] sm:$0xf0] }
 0x2eb   : > { %v4508_v54 = vmax.f32 %v4502_v51, 0.0  ;;  %v10183_v51 = vld [vmem:[#allocation11 + $0x1c4] sm:$0xf0]  ;;  %v10153_v35 = vld [vmem:[#allocation11 + $0xd4] sm:$0xf0] }
 0x2ed   : > { %v4512_v52 = vpack.c.bf16 %v4508_v54, %v4508_v54  ;;  %v8905_v54 = vor.u32 %v10165_v44, %v8904_v43  ;;  %v9065_v43 = vor.u32 %v10141_v13, %v9064_v37  ;;  %v9056_v44 = vld [vmem:[#allocation11 + $0x60] sm:$0xf]  ;;  %v9026_v37 = vld [vmem:[#allocation11 + $0x28] sm:$0xf0] }
 0x2ee   : > { %v4490_v48 = vpop.f32.mrf.mxu2 }
 0x2ef   : > { %v4503_v56 = vpop.f32.mrf.mxu3  ;;  %4950 = vmatmul.bf16.vlgmr.msra.gmra.mxu3 %v4512_v52  ;;  %v8978_v48 = vld [vmem:[#allocation11 + $0x1c8] sm:$0xf0]  ;;  %5265 = vmatpush.bf16.msra.mxu0 %v8905_v54 }
 0x2f0   : > { %5300 = vmatpush.bf16.msra.mxu3 %v9005_v23  ;;  %v8909_v56 = vor.u32 %v10164_v62, %v8906_v25  ;;  %v10139_v62 = vld [vmem:[#allocation11 + $0x64] sm:$0xf0]  ;;  %v10138_v25 = vld [vmem:[#allocation11 + $0x64] sm:$0xf]  ;;  %v8946_v54 = vld [vmem:[#allocation11 + $0x188] sm:$0xf0] }
 0x2f2   : > { %5291 = vmatpush.bf16.msra.mxu2 %v8909_v56 }
 0x2f4   : > { %5301 = vmatpush.bf16.msra.mxu3 %v8997_v36  ;;  %v8881_v36 = vor.u32 %v10159_v21, %v8880_v38  ;;  %v9033_v21 = vor.u32 %v10133_v30, %v9032_v60  ;;  %v10204_v60 = vld [vmem:[#allocation11 + $0x274] sm:$0xf]  ;;  %v9214_v30 = vld [vmem:[#allocation11 + $0x278] sm:$0xf0] }
 0x2f8   : > { %5302 = vmatpush.bf16.msra.mxu3 %v8989_v49  ;;  %v8944_v49 = vld [vmem:[#allocation11 + $0x180] sm:$0xf] }
 0x2fe   : > { %v4912_v59 = vpop.f32.mrf.mxu0 }
 0x2ff   : > { %v4913_v63 = vadd.f32 %v4912_v59, %v4579_v57  ;;  %v4925_v0 = vpop.f32.mrf.mxu1  ;;  %5002 = vmatmul.bf16.vlgmr.msrb.gmra.mxu3 %v4512_v52  ;;  %v10182_v52 = vld [vmem:[#allocation11 + $0x1c4] sm:$0xf]  ;;  %v8896_v57 = vld [vmem:[#allocation11 + $0x120] sm:$0xf]  ;;  %v10163_v59 = vld [vmem:[#allocation11 + $0x124] sm:$0xf0] }
 0x300   : > { %v8981_v53 = vor.u32 %v10182_v52, %v8978_v48  ;;  %v8897_v7 = vor.u32 %v10163_v59, %v8896_v57  ;;  %v9128_v52 = vld [vmem:[#allocation11 + $0xf0] sm:$0xf]  ;;  %v10157_v48 = vld [vmem:[#allocation11 + $0xf4] sm:$0xf0]  ;;  %v9057_v57 = vor.u32 %v10139_v62, %v9056_v44  ;;  %v10156_v59 = vld [vmem:[#allocation11 + $0xf4] sm:$0xf] }
 0x301   : > { %v4926_v1 = vadd.f32 %v4925_v0, %v4913_v63  ;;  %v9129_v5 = vor.u32 %v10157_v48, %v9128_v52  ;;  %v9114_v44 = vld [vmem:[#allocation11 + $0xd8] sm:$0xf0]  ;;  %v9008_v62 = vld [vmem:[#allocation11] sm:$0xf]  ;;  %v10150_v52 = vld [vmem:[#allocation11 + $0xc4] sm:$0xf] }
 0x302   : > { %5303 = vmatpush.bf16.msra.mxu3 %v8981_v53  ;;  %5266 = vmatpush.bf16.msra.mxu0 %v8897_v7  ;;  %v9050_v53 = vld [vmem:[#allocation11 + $0x58] sm:$0xf0]  ;;  %v9106_v48 = vld [vmem:[#allocation11 + $0xc8] sm:$0xf0] }
 0x306   : > { %v4938_v6 = vpop.f32.mrf.mxu2  ;;  %v4914_v3 = vpop.f32.mrf.mxu0  ;;  %5304 = vmatpush.bf16.msra.mxu3 %v8973_v16  ;;  %v9042_v16 = vld [vmem:[#allocation11 + $0x48] sm:$0xf0] }
 0x307   : > { %v11297_v2 = vadd.f32 %v4938_v6, %v4926_v1  ;;  %v4927_v4 = vpop.f32.mrf.mxu1  ;;  %v10162_v1 = vld [vmem:[#allocation11 + $0x124] sm:$0xf]  ;;  %v8898_v6 = vld [vmem:[#allocation11 + $0x128] sm:$0xf0]  ;;  %v8977_v3 = vor.u32 %v10183_v51, %v8976_v46  ;;  %v10175_v46 = vld [vmem:[#allocation11 + $0x184] sm:$0xf0] }
 0x308   : > { %v8901_v11 = vor.u32 %v10162_v1, %v8898_v6  ;;  %v10174_v51 = vld [vmem:[#allocation11 + $0x184] sm:$0xf]  ;;  %v9048_v1 = vld [vmem:[#allocation11 + $0x50] sm:$0xf]  ;;  %v10137_v6 = vld [vmem:[#allocation11 + $0x54] sm:$0xf0] }
 0x309   : > { %5277 = vmatpush.bf16.msra.mxu1 %v8977_v3  ;;  %v8945_v3 = vor.u32 %v10175_v46, %v8944_v49  ;;  %v8949_v58 = vor.u32 %v10174_v51, %v8946_v54  ;;  %v10126_v49 = vld [vmem:[#allocation11 + $0x4] sm:$0xf]  ;;  %v9010_v46 = vld [vmem:[#allocation11 + $0x8] sm:$0xf0] }
 0x30a   : > { %5292 = vmatpush.bf16.msra.mxu2 %v8901_v11  ;;  %5305 = vmatpush.bf16.msra.mxu3 %v8965_v33  ;;  %v10154_v11 = vld [vmem:[#allocation11 + $0xe4] sm:$0xf]  ;;  %v9112_v33 = vld [vmem:[#allocation11 + $0xd0] sm:$0xf]  ;;  %v9013_v54 = vor.u32 %v10126_v49, %v9010_v46  ;;  %v10197_v49 = vld [vmem:[#allocation11 + $0x234] sm:$0xf0] }
 0x30b   : > { %v9276_v46 = vld [vmem:[#allocation11 + $0x2f0] sm:$0xf] }
 0x30d   : > { %5278 = vmatpush.bf16.msra.mxu1 %v8969_v15  ;;  %v10134_v15 = vld [vmem:[#allocation11 + $0x44] sm:$0xf] }
 0x30e   : > { %v4940_v12 = vpop.f32.mrf.mxu2  ;;  %5293 = vmatpush.bf16.msra.mxu2 %v8893_v18  ;;  %v9045_v38 = vor.u32 %v10134_v15, %v9042_v16  ;;  %v9034_v18 = vld [vmem:[#allocation11 + $0x38] sm:$0xf0]  ;;  %v10142_v16 = vld [vmem:[#allocation11 + $0x84] sm:$0xf] }
 0x30f   : > { %v8888_v12 = vld [vmem:[#allocation11 + $0x110] sm:$0xf] }
 0x310   : > { %v8889_v26 = vor.u32 %v10161_v9, %v8888_v12  ;;  %v9122_v12 = vld [vmem:[#allocation11 + $0xe8] sm:$0xf0] }
 0x311   : > { %5279 = vmatpush.bf16.msra.mxu1 %v8961_v40  ;;  %v9125_v19 = vor.u32 %v10154_v11, %v9122_v12  ;;  %v9016_v40 = vld [vmem:[#allocation11 + $0x10] sm:$0xf]  ;;  %v9081_v11 = vor.u32 %v10145_v10, %v9080_v28  ;;  %v9082_v12 = vld [vmem:[#allocation11 + $0x98] sm:$0xf0]  ;;  %v10219_v28 = vld [vmem:[#allocation11 + $0x2e4] sm:$0xf0] }
 0x312   : > { %5267 = vmatpush.bf16.msra.mxu0 %v8889_v26  ;;  %5294 = vmatpush.bf16.msra.mxu2 %v8885_v61  ;;  %v9041_v26 = vor.u32 %v10135_v14, %v9040_v20  ;;  %v9017_v39 = vor.u32 %v10129_v32, %v9016_v40  ;;  %v9072_v20 = vld [vmem:[#allocation11 + $0x80] sm:$0xf]  ;;  %v10143_v14 = vld [vmem:[#allocation11 + $0x84] sm:$0xf0]  ;;  %v10194_v10 = vld [vmem:[#allocation11 + $0x224] sm:$0xf] }
 0x313   : > { %v9073_v15 = vor.u32 %v10143_v14, %v9072_v20  ;;  %v9164_v14 = vld [vmem:[#allocation11 + $0x210] sm:$0xf] }
 0x315   : > { %5280 = vmatpush.bf16.msra.mxu1 %v8953_v31 }
 0x316   : > { %5268 = vmatpush.bf16.msra.mxu0 %v8881_v36  ;;  %5499 = vmatpush.bf16.msrb.mxu2 %v9069_v45  ;;  %v10128_v36 = vld [vmem:[#allocation11 + $0x14] sm:$0xf] }
 0x319   : > { %5281 = vmatpush.bf16.msra.mxu1 %v8945_v3  ;;  %v9088_v3 = vld [vmem:[#allocation11 + $0xa0] sm:$0xf] }
 0x31a   : > { %5473 = vmatpush.bf16.msrb.mxu0 %v9065_v43  ;;  %v10152_v43 = vld [vmem:[#allocation11 + $0xd4] sm:$0xf] }
 0x31b   : > { %v9117_v45 = vor.u32 %v10152_v43, %v9114_v44  ;;  %v9188_v43 = vld [vmem:[#allocation11 + $0x240] sm:$0xf]  ;;  %v10199_v44 = vld [vmem:[#allocation11 + $0x244] sm:$0xf0] }
 0x31d   : > { %5486 = vmatpush.bf16.msrb.mxu1 %v9129_v5  ;;  %v9090_v5 = vld [vmem:[#allocation11 + $0xa8] sm:$0xf0] }
 0x31e   : > { %v4964_v63 = vpop.f32.mrf.mxu0  ;;  %5474 = vmatpush.bf16.msrb.mxu0 %v9057_v57  ;;  %v9096_v57 = vld [vmem:[#allocation11 + $0xb0] sm:$0xf] }
 0x31f   : > { %v4977_v0 = vpop.f32.mrf.mxu1  ;;  %v4965_v4 = vadd.f32 %v4964_v63, %v4580_v50  ;;  %v8957_v50 = vor.u32 %v10176_v41, %v8954_v42  ;;  %v9130_v63 = vld [vmem:[#allocation11 + $0xf8] sm:$0xf0]  ;;  %v9113_v42 = vor.u32 %v10153_v35, %v9112_v33  ;;  %v9196_v33 = vld [vmem:[#allocation11 + $0x250] sm:$0xf] }
 0x320   : > { %v9133_v7 = vor.u32 %v10156_v59, %v9130_v63  ;;  %v9018_v41 = vld [vmem:[#allocation11 + $0x18] sm:$0xf0]  ;;  %v10149_v59 = vld [vmem:[#allocation11 + $0xb4] sm:$0xf0]  ;;  %v10148_v63 = vld [vmem:[#allocation11 + $0xb4] sm:$0xf] }
 0x321   : > { %v4978_v8 = vadd.f32 %v4977_v0, %v4965_v4  ;;  %v9061_v0 = vor.u32 %v10138_v25, %v9058_v47  ;;  %v10136_v4 = vld [vmem:[#allocation11 + $0x54] sm:$0xf]  ;;  %5306 = vmatpush.bf16.msra.mxu3 %v8957_v50  ;;  %5487 = vmatpush.bf16.msrb.mxu1 %v9121_v17  ;;  %v9021_v61 = vor.u32 %v10128_v36, %v9018_v41  ;;  %v10127_v25 = vld [vmem:[#allocation11 + $0x4] sm:$0xf0]  ;;  %v9104_v47 = vld [vmem:[#allocation11 + $0xc0] sm:$0xf] }
 0x322   : > { %v9053_v9 = vor.u32 %v10136_v4, %v9050_v53  ;;  %v9009_v31 = vor.u32 %v10127_v25, %v9008_v62  ;;  %v10151_v50 = vld [vmem:[#allocation11 + $0xc4] sm:$0xf0]  ;;  %v10146_v53 = vld [vmem:[#allocation11 + $0xa4] sm:$0xf]  ;;  %v9074_v17 = vld [vmem:[#allocation11 + $0x88] sm:$0xf0] }
 0x323   : > { %5500 = vmatpush.bf16.msrb.mxu2 %v9061_v0  ;;  %v9105_v51 = vor.u32 %v10151_v50, %v9104_v47  ;;  %v9097_v0 = vor.u32 %v10149_v59, %v9096_v57  ;;  %v10147_v4 = vld [vmem:[#allocation11 + $0xa4] sm:$0xf0]  ;;  %v9198_v35 = vld [vmem:[#allocation11 + $0x258] sm:$0xf0]  ;;  %v9190_v62 = vld [vmem:[#allocation11 + $0x248] sm:$0xf0]  ;;  %v9189_v47 = vor.u32 %v10199_v44, %v9188_v43 }
 0x324   : > { %v9180_v50 = vld [vmem:[#allocation11 + $0x230] sm:$0xf]  ;;  %v9182_v57 = vld [vmem:[#allocation11 + $0x238] sm:$0xf0]  ;;  %v10220_v59 = vld [vmem:[#allocation11 + $0x2f4] sm:$0xf] }
 0x325   : > { %5307 = vmatpush.bf16.msra.mxu3 %v8949_v58  ;;  %5488 = vmatpush.bf16.msrb.mxu1 %v9113_v42  ;;  %v9089_v58 = vor.u32 %v10147_v4, %v9088_v3  ;;  %v9172_v4 = vld [vmem:[#allocation11 + $0x220] sm:$0xf] }
 0x326   : > { %v4990_v34 = vpop.f32.mrf.mxu2  ;;  %v4966_v22 = vpop.f32.mrf.mxu0 }
 0x327   : > { %v11300_v55 = vadd.f32 %v4990_v34, %v4978_v8  ;;  %v4979_v23 = vpop.f32.mrf.mxu1  ;;  %v9049_v8 = vor.u32 %v10137_v6, %v9048_v1  ;;  %5501 = vmatpush.bf16.msrb.mxu2 %v9053_v9  ;;  %v10132_v34 = vld [vmem:[#allocation11 + $0x34] sm:$0xf]  ;;  %v10131_v22 = vld [vmem:[#allocation11 + $0x24] sm:$0xf0]  ;;  %v9098_v1 = vld [vmem:[#allocation11 + $0xb8] sm:$0xf0] }
 0x328   : > { %v9037_v29 = vor.u32 %v10132_v34, %v9034_v18  ;;  %v10130_v23 = vld [vmem:[#allocation11 + $0x24] sm:$0xf]  ;;  %v9025_v13 = vor.u32 %v10131_v22, %v9024_v24  ;;  %v9101_v6 = vor.u32 %v10148_v63, %v9098_v1  ;;  %v9204_v24 = vld [vmem:[#allocation11 + $0x260] sm:$0xf]  ;;  %v9278_v63 = vld [vmem:[#allocation11 + $0x2f8] sm:$0xf0] }
 0x329   : > { %5512 = vmatpush.bf16.msrb.mxu3 %v9133_v7  ;;  %5475 = vmatpush.bf16.msrb.mxu0 %v9049_v8  ;;  %v9029_v27 = vor.u32 %v10130_v23, %v9026_v37  ;;  %v9093_v7 = vor.u32 %v10146_v53, %v9090_v5  ;;  %v10144_v8 = vld [vmem:[#allocation11 + $0x94] sm:$0xf]  ;;  %v10203_v23 = vld [vmem:[#allocation11 + $0x264] sm:$0xf0]  ;;  %v10202_v37 = vld [vmem:[#allocation11 + $0x264] sm:$0xf] }
 0x32a   : > { %5489 = vmatpush.bf16.msrb.mxu1 %v9105_v51  ;;  %v9085_v9 = vor.u32 %v10144_v8, %v9082_v12  ;;  %v9205_v40 = vor.u32 %v10203_v23, %v9204_v24  ;;  %v10195_v53 = vld [vmem:[#allocation11 + $0x224] sm:$0xf0]  ;;  %v9174_v8 = vld [vmem:[#allocation11 + $0x228] sm:$0xf0]  ;;  %v10273_v1 = vld [vmem:[#allocation17 + $0x18] sm:$0xff] }
 0x32b   : > { %5502 = vmatpush.bf16.msrb.mxu2 %v9045_v38  ;;  %v10205_v38 = vld [vmem:[#allocation11 + $0x274] sm:$0xf0]  ;;  %v9270_v12 = vld [vmem:[#allocation11 + $0x2e8] sm:$0xf0]  ;;  %v10191_v23 = vld [vmem:[#allocation11 + $0x204] sm:$0xf0] }
 0x32d   : > { %5513 = vmatpush.bf16.msrb.mxu3 %v9125_v19  ;;  %5476 = vmatpush.bf16.msrb.mxu0 %v9041_v26  ;;  %v9077_v19 = vor.u32 %v10142_v16, %v9074_v17  ;;  %v9212_v26 = vld [vmem:[#allocation11 + $0x270] sm:$0xf]  ;;  %v9177_v17 = vor.u32 %v10194_v10, %v9174_v8 }
 0x32e   : > { %v4992_v56 = vpop.f32.mrf.mxu2  ;;  %5490 = vmatpush.bf16.msrb.mxu1 %v9097_v0 }
 0x32f   : > { %5503 = vmatpush.bf16.msrb.mxu2 %v9037_v29  ;;  %v9109_v56 = vor.u32 %v10150_v52, %v9106_v48  ;;  %v9217_v29 = vor.u32 %v10204_v60, %v9214_v30  ;;  %v10221_v52 = vld [vmem:[#allocation11 + $0x2f4] sm:$0xf0]  ;;  %v10196_v48 = vld [vmem:[#allocation11 + $0x234] sm:$0xf]  ;;  %v9166_v30 = vld [vmem:[#allocation11 + $0x218] sm:$0xf0] }
 0x330   : > { %v9277_v3 = vor.u32 %v10221_v52, %v9276_v46  ;;  %v9185_v5 = vor.u32 %v10196_v48, %v9182_v57  ;;  %v10192_v60 = vld [vmem:[#allocation11 + $0x214] sm:$0xf]  ;;  %v9236_v52 = vld [vmem:[#allocation11 + $0x2a0] sm:$0xf]  ;;  %v10211_v48 = vld [vmem:[#allocation11 + $0x2a4] sm:$0xf0] }
 0x331   : > { %5477 = vmatpush.bf16.msrb.mxu0 %v9033_v21  ;;  %5514 = vmatpush.bf16.msrb.mxu3 %v9117_v45  ;;  %v9213_v21 = vor.u32 %v10205_v38, %v9212_v26  ;;  %v10198_v45 = vld [vmem:[#allocation11 + $0x244] sm:$0xf]  ;;  %v9260_v26 = vld [vmem:[#allocation11 + $0x2d0] sm:$0xf]  ;;  %v10217_v38 = vld [vmem:[#allocation11 + $0x2d4] sm:$0xf0]  ;;  %v9237_v57 = vor.u32 %v10211_v48, %v9236_v52 }
 0x332   : > { %5491 = vmatpush.bf16.msrb.mxu1 %v9089_v58  ;;  %v9261_v24 = vor.u32 %v10217_v38, %v9260_v26  ;;  %v10250_v38 = vld [vmem:[#allocation14 + $0xe0] sm:$0xff]  ;;  %v10232_v48 = vld [vmem:[#allocation14 + $0x50] sm:$0xff] }
 0x333   : > { %5504 = vmatpush.bf16.msrb.mxu2 %v9029_v27  ;;  %v5007_v27 = vlaneseq }
 0x335   : > { %5478 = vmatpush.bf16.msrb.mxu0 %v9025_v13  ;;  %5515 = vmatpush.bf16.msrb.mxu3 %v9109_v56  ;;  %v9206_v13 = vld [vmem:[#allocation11 + $0x268] sm:$0xf0]  ;;  %v11308_v41 = vshrl.u32 %v5007_v27, 7 }
 0x336   : > { %5492 = vmatpush.bf16.msrb.mxu1 %v9081_v11  ;;  %v9209_v32 = vor.u32 %v10202_v37, %v9206_v13  ;;  %v10218_v11 = vld [vmem:[#allocation11 + $0x2e4] sm:$0xf]  ;;  %v9169_v37 = vor.u32 %v10192_v60, %v9166_v30  ;;  %v10228_v60 = vld [vmem:[#allocation14 + $0x30] sm:$0xff] }
 0x337   : > { %5505 = vmatpush.bf16.msrb.mxu2 %v9021_v61  ;;  %v5013_v25 = vand.u32 7, %v11308_v41  ;;  %v10210_v41 = vld [vmem:[#allocation11 + $0x2a4] sm:$0xf]  ;;  %v10240_v30 = vld [vmem:[#allocation14 + $0x90] sm:$0xff] }
 0x339   : > { %5479 = vmatpush.bf16.msrb.mxu0 %v9017_v39  ;;  %5516 = vmatpush.bf16.msrb.mxu3 %v9101_v6  ;;  %v10201_v39 = vld [vmem:[#allocation11 + $0x254] sm:$0xf0]  ;;  %vm10278_vm0 = vcmp.ne.s32.totalorder %v5013_v25, 0  ;;  %v9181_v6 = vor.u32 %v10197_v49, %v9180_v50  ;;  %vm10279_vm2 = vcmp.ne.s32.totalorder %v5013_v25, 7  ;;  %v9246_v50 = vld [vmem:[#allocation11 + $0x2b8] sm:$0xf0] }
 0x33a   : > { %5493 = vmatpush.bf16.msrb.mxu1 %v9073_v15  ;;  %v9197_v42 = vor.u32 %v10201_v39, %v9196_v33  ;;  %vm11319_vm1 = vmpackc.low %vm10278_vm0, %vm10278_vm0  ;;  %v10193_v15 = vld [vmem:[#allocation11 + $0x214] sm:$0xf0]  ;;  %v10190_v33 = vld [vmem:[#allocation11 + $0x204] sm:$0xf] }
 0x33b   : > { %5506 = vmatpush.bf16.msrb.mxu2 %v9013_v54  ;;  %v9158_v39 = vld [vmem:[#allocation11 + $0x208] sm:$0xf0]  ;;  %vm11331_vm3 = vmpackc.low %vm10279_vm2, %vm10279_vm2 }
 0x33c   : > { %v9161_v44 = vor.u32 %v10190_v33, %v9158_v39  ;;  %v9238_v25 = vld [vmem:[#allocation11 + $0x2a8] sm:$0xf0]  ;;  %v10261_v39 = vld [vmem:[#allocation14 + $0x138] sm:$0xff] }
 0x33d   : > { %5480 = vmatpush.bf16.msrb.mxu0 %v9009_v31  ;;  %5517 = vmatpush.bf16.msrb.mxu3 %v9093_v7  ;;  %v9193_v31 = vor.u32 %v10198_v45, %v9190_v62  ;;  %v9268_v7 = vld [vmem:[#allocation11 + $0x2e0] sm:$0xf]  ;;  %v9244_v62 = vld [vmem:[#allocation11 + $0x2b0] sm:$0xf] }
 0x33e   : > { %v9269_v20 = vor.u32 %v10219_v28, %v9268_v7  ;;  %v9222_v7 = vld [vmem:[#allocation11 + $0x288] sm:$0xf0] }
 0x33f   : > { %v10235_v33 = vld [vmem:[#allocation14 + $0x68] sm:$0xff] }
 0x341   : > { %5518 = vmatpush.bf16.msrb.mxu3 %v9085_v9  ;;  %v9173_v9 = vor.u32 %v10195_v53, %v9172_v4 }
 0x345   : > { %5519 = vmatpush.bf16.msrb.mxu3 %v9077_v19  ;;  %v9273_v19 = vor.u32 %v10218_v11, %v9270_v12  ;;  %v10245_v12 = vld [vmem:[#allocation14 + $0xb8] sm:$0xff] }
 0x372   : > { %v4951_v34 = vpop.f32.mrf.mxu3 }
 0x373   : > { %v11303_v18 = vadd.f32 %v4951_v34, %v11297_v2  ;;  %v10200_v2 = vld [vmem:[#allocation11 + $0x254] sm:$0xf] }
 0x374   : > { %v9201_v61 = vor.u32 %v10200_v2, %v9198_v35  ;;  %v10216_v34 = vld [vmem:[#allocation11 + $0x2d4] sm:$0xf]  ;;  %v10214_v2 = vld [vmem:[#allocation11 + $0x2c4] sm:$0xf]  ;;  %v9254_v35 = vld [vmem:[#allocation11 + $0x2c8] sm:$0xf0] }
 0x375   : > { %v5067_v22 = vpack.c.bf16 %v11303_v18, %v11303_v18  ;;  %v5023_v51 = vrot.slane %v11303_v18, 7  ;;  %v5029_v43 = vrot.slane %v11303_v18, 1  ;;  %v9257_v45 = vor.u32 %v10214_v2, %v9254_v35  ;;  %v10247_v2 = vld [vmem:[#allocation14 + $0xc8] sm:$0xff] }
 0x377   : > { %5269 = vmatmul.bf16.vlgmr.msra.gmra.mxu0 %v5067_v22  ;;  %5295 = vmatmul.bf16.vlgmr.msra.gmra.mxu2 %v5067_v22  ;;  %v9137_v58 = vpack.c.bf16 %v5023_v51, %v5023_v51  ;;  %v9156_v22 = vld [vmem:[#allocation11 + $0x200] sm:$0xf]  ;;  %v9285_v18 = vpack.c.bf16 %v5029_v43, %v5029_v43  ;;  %v10260_v43 = vld [vmem:[#allocation14 + $0x130] sm:$0xff] }
 0x378   : > { %5717 = vmatpush.bf16.msra.mxu0 %v9213_v21  ;;  %5743 = vmatpush.bf16.msra.mxu2 %v9217_v29  ;;  %v9262_v21 = vld [vmem:[#allocation11 + $0x2d8] sm:$0xf0]  ;;  %v9165_v29 = vor.u32 %v10193_v15, %v9164_v14  ;;  %v10243_v14 = vld [vmem:[#allocation14 + $0xa8] sm:$0xff]  ;;  %v10242_v15 = vld [vmem:[#allocation14 + $0xa0] sm:$0xff] }
 0x379   : > { %v9265_v13 = vor.u32 %v10216_v34, %v9262_v21  ;;  %v10237_v34 = vld [vmem:[#allocation14 + $0x78] sm:$0xff] }
 0x37a   : > { %v4953_v36 = vpop.f32.mrf.mxu3  ;;  %v10249_v21 = vld [vmem:[#allocation14 + $0xd8] sm:$0xff] }
 0x37c   : > { %5718 = vmatpush.bf16.msra.mxu0 %v9205_v40  ;;  %5744 = vmatpush.bf16.msra.mxu2 %v9209_v32  ;;  %v9252_v40 = vld [vmem:[#allocation11 + $0x2c0] sm:$0xf]  ;;  %v10215_v32 = vld [vmem:[#allocation11 + $0x2c4] sm:$0xf0] }
 0x380   : > { %5719 = vmatpush.bf16.msra.mxu0 %v9197_v42  ;;  %5745 = vmatpush.bf16.msra.mxu2 %v9201_v61  ;;  %v9157_v42 = vor.u32 %v10191_v23, %v9156_v22  ;;  %v9253_v61 = vor.u32 %v10215_v32, %v9252_v40  ;;  %v10239_v22 = vld [vmem:[#allocation14 + $0x88] sm:$0xff]  ;;  %v10226_v40 = vld [vmem:[#allocation14 + $0x20] sm:$0xff] }
 0x381   : > { %v10238_v32 = vld [vmem:[#allocation14 + $0x80] sm:$0xff] }
 0x382   : > { %v5003_v54 = vpop.f32.mrf.mxu3 }
 0x383   : > { %v11315_v56 = vadd.f32 %v5003_v54, %v11300_v55  ;;  %v9281_v55 = vor.u32 %v10220_v59, %v9278_v63  ;;  %v9241_v59 = vor.u32 %v10210_v41, %v9238_v25  ;;  %v9228_v63 = vld [vmem:[#allocation11 + $0x290] sm:$0xf]  ;;  %v10258_v41 = vld [vmem:[#allocation14 + $0x120] sm:$0xff] }
 0x384   : > { %5720 = vmatpush.bf16.msra.mxu0 %v9189_v47  ;;  %5746 = vmatpush.bf16.msra.mxu2 %v9193_v31  ;;  %v10213_v47 = vld [vmem:[#allocation11 + $0x2b4] sm:$0xf0]  ;;  %v10212_v31 = vld [vmem:[#allocation11 + $0x2b4] sm:$0xf] }
 0x385   : > { %v5068_v0 = vpack.c.bf16 %v11315_v56, %v11315_v56  ;;  %v5024_v36 = vrot.slane %v11315_v56, 7  ;;  %v9245_v51 = vor.u32 %v10213_v47, %v9244_v62  ;;  %v9249_v54 = vor.u32 %v10212_v31, %v9246_v50  ;;  %v10224_v62 = vld [vmem:[#allocation14 + $0x10] sm:$0xff]  ;;  %v10269_v47 = vld [vmem:[#allocation14 + $0x178] sm:$0xff]  ;;  %v10259_v50 = vld [vmem:[#allocation14 + $0x128] sm:$0xff] }
 0x386   : > { %v5030_v10 = vrot.slane %v11315_v56, 1  ;;  %v10252_v56 = vld [vmem:[#allocation14 + $0xf0] sm:$0xff]  ;;  %v10233_v31 = vld [vmem:[#allocation14 + $0x58] sm:$0xff] }
 0x387   : > { %5282 = vmatmul.bf16.vlgmr.msra.gmra.mxu1 %v5068_v0  ;;  %5308 = vmatmul.bf16.vlgmr.msra.gmra.mxu3 %v5068_v0  ;;  %v9142_v49 = vpack.c.bf16 %v5024_v36, %v5024_v36  ;;  %v10209_v0 = vld [vmem:[#allocation11 + $0x294] sm:$0xf0] }
 0x388   : > { %9138 = vmatmul.msk.bf16.vlgmr.msrb.gmra.mxu0 %vm11319_vm1, %v9137_v58  ;;  %9148 = vmatmul.msk.bf16.vlgmr.msrb.gmra.mxu2 %vm11319_vm1, %v9137_v58  ;;  %v9229_v4 = vor.u32 %v10209_v0, %v9228_v63  ;;  %v9220_v58 = vld [vmem:[#allocation11 + $0x280] sm:$0xf]  ;;  %v9290_v11 = vpack.c.bf16 %v5030_v10, %v5030_v10  ;;  %v10231_v63 = vld [vmem:[#allocation14 + $0x48] sm:$0xff]  ;;  %v10264_v10 = vld [vmem:[#allocation14 + $0x150] sm:$0xff] }
 0x389   : > { %5721 = vmatpush.bf16.msra.mxu0 %v9181_v6  ;;  %5730 = vmatpush.bf16.msra.mxu1 %v9277_v3  ;;  %v10208_v6 = vld [vmem:[#allocation11 + $0x294] sm:$0xf]  ;;  %v9230_v3 = vld [vmem:[#allocation11 + $0x298] sm:$0xf0] }
 0x38a   : > { %5747 = vmatpush.bf16.msra.mxu2 %v9185_v5  ;;  %5756 = vmatpush.bf16.msra.mxu3 %v9281_v55  ;;  %v5005_v16 = vpop.f32.mrf.mxu3  ;;  %v9233_v53 = vor.u32 %v10208_v6, %v9230_v3  ;;  %v10207_v5 = vld [vmem:[#allocation11 + $0x284] sm:$0xf0]  ;;  %v10206_v55 = vld [vmem:[#allocation11 + $0x284] sm:$0xf]  ;;  %v10225_v36 = vld [vmem:[#allocation14 + $0x18] sm:$0xff] }
 0x38b   : > { %v9221_v28 = vor.u32 %v10207_v5, %v9220_v58  ;;  %v9225_v8 = vor.u32 %v10206_v55, %v9222_v7  ;;  %v10251_v16 = vld [vmem:[#allocation14 + $0xe8] sm:$0xff]  ;;  %v10257_v0 = vld [vmem:[#allocation14 + $0x118] sm:$0xff]  ;;  %v10266_v3 = vld [vmem:[#allocation14 + $0x160] sm:$0xff] }
 0x38c   : > { %v10230_v58 = vld [vmem:[#allocation14 + $0x40] sm:$0xff]  ;;  %v10256_v5 = vld [vmem:[#allocation14 + $0x110] sm:$0xff]  ;;  %v10265_v7 = vld [vmem:[#allocation14 + $0x158] sm:$0xff] }
 0x38d   : > { %5722 = vmatpush.bf16.msra.mxu0 %v9173_v9  ;;  %5731 = vmatpush.bf16.msra.mxu1 %v9269_v20  ;;  %v10244_v9 = vld [vmem:[#allocation14 + $0xb0] sm:$0xff]  ;;  %v10253_v20 = vld [vmem:[#allocation14 + $0xf8] sm:$0xff] }
 0x38e   : > { %5748 = vmatpush.bf16.msra.mxu2 %v9177_v17  ;;  %5757 = vmatpush.bf16.msra.mxu3 %v9273_v19  ;;  %v10229_v17 = vld [vmem:[#allocation14 + $0x38] sm:$0xff] }
 0x38f   : > { %v10241_v19 = vld [vmem:[#allocation14 + $0x98] sm:$0xff] }
 0x391   : > { %5723 = vmatpush.bf16.msra.mxu0 %v9165_v29  ;;  %5732 = vmatpush.bf16.msra.mxu1 %v9261_v24  ;;  %v10227_v24 = vld [vmem:[#allocation14 + $0x28] sm:$0xff] }
 0x392   : > { %5749 = vmatpush.bf16.msra.mxu2 %v9169_v37  ;;  %5758 = vmatpush.bf16.msra.mxu3 %v9265_v13  ;;  %v10236_v37 = vld [vmem:[#allocation14 + $0x70] sm:$0xff] }
 0x393   : > { %v10248_v13 = vld [vmem:[#allocation14 + $0xd0] sm:$0xff] }
 0x395   : > { %5724 = vmatpush.bf16.msra.mxu0 %v9157_v42  ;;  %5733 = vmatpush.bf16.msra.mxu1 %v9253_v61  ;;  %v10234_v61 = vld [vmem:[#allocation14 + $0x60] sm:$0xff] }
 0x396   : > { %5750 = vmatpush.bf16.msra.mxu2 %v9161_v44  ;;  %5759 = vmatpush.bf16.msra.mxu3 %v9257_v45  ;;  %v10246_v45 = vld [vmem:[#allocation14 + $0xc0] sm:$0xff] }
 0x397   : > { %9143 = vmatmul.msk.bf16.vlgmr.msrb.gmra.mxu1 %vm11319_vm1, %v9142_v49  ;;  %9153 = vmatmul.msk.bf16.vlgmr.msrb.gmra.mxu3 %vm11319_vm1, %v9142_v49 }
 0x398   : > { %9286 = vmatmul.msk.bf16.vlgmr.msra.gmra.mxu0 %vm11331_vm3, %v9285_v18 }
 0x399   : > { %9296 = vmatmul.msk.bf16.vlgmr.msra.gmra.mxu2 %vm11331_vm3, %v9285_v18  ;;  %5734 = vmatpush.bf16.msra.mxu1 %v9245_v51  ;;  %v10223_v51 = vld [vmem:[#allocation14 + $0x8] sm:$0xff]  ;;  %v10268_v18 = vld [vmem:[#allocation14 + $0x170] sm:$0xff] }
 0x39a   : > { %5760 = vmatpush.bf16.msra.mxu3 %v9249_v54  ;;  %5955 = vmatpush.bf16.msrb.mxu0 %v10245_v12 }
 0x39b   : > { %6077 = vmatpush.bf16.msrb.mxu2 %v10229_v17  ;;  %v5771_v17 = vld [vmem:[#allocation13] sm:$0x3] }
 0x39d   : > { %5735 = vmatpush.bf16.msra.mxu1 %v9237_v57  ;;  %v10222_v57 = vld [vmem:[#allocation14] sm:$0xff] }
 0x39e   : > { %5761 = vmatpush.bf16.msra.mxu3 %v9241_v59  ;;  %5956 = vmatpush.bf16.msrb.mxu0 %v10244_v9  ;;  %v10267_v59 = vld [vmem:[#allocation14 + $0x168] sm:$0xff] }
 0x39f   : > { %6078 = vmatpush.bf16.msrb.mxu2 %v10228_v60 }
 0x3a1   : > { %5736 = vmatpush.bf16.msra.mxu1 %v9229_v4 }
 0x3a2   : > { %5762 = vmatpush.bf16.msra.mxu3 %v9233_v53  ;;  %5957 = vmatpush.bf16.msrb.mxu0 %v10243_v14 }
 0x3a3   : > { %6079 = vmatpush.bf16.msrb.mxu2 %v10227_v24 }
 0x3a5   : > { %5737 = vmatpush.bf16.msra.mxu1 %v9221_v28  ;;  %v10255_v28 = vld [vmem:[#allocation14 + $0x108] sm:$0xff] }
 0x3a6   : > { %5763 = vmatpush.bf16.msra.mxu3 %v9225_v8  ;;  %5958 = vmatpush.bf16.msrb.mxu0 %v10242_v15  ;;  %v10262_v15 = vld [vmem:[#allocation14 + $0x140] sm:$0xff] }
 0x3a7   : > { %6080 = vmatpush.bf16.msrb.mxu2 %v10226_v40 }
 0x3a8   : > { %9291 = vmatmul.msk.bf16.vlgmr.msra.gmra.mxu1 %vm11331_vm3, %v9290_v11 }
 0x3a9   : > { %9301 = vmatmul.msk.bf16.vlgmr.msra.gmra.mxu3 %vm11331_vm3, %v9290_v11  ;;  %5968 = vmatpush.bf16.msrb.mxu1 %v10253_v20  ;;  %v10254_v11 = vld [vmem:[#allocation14 + $0x100] sm:$0xff]  ;;  %v10263_v20 = vld [vmem:[#allocation14 + $0x148] sm:$0xff] }
 0x3aa   : > { %5959 = vmatpush.bf16.msrb.mxu0 %v10241_v19  ;;  %6090 = vmatpush.bf16.msrb.mxu3 %v10237_v34 }
 0x3ab   : > { %6081 = vmatpush.bf16.msrb.mxu2 %v10225_v36 }
 0x3ad   : > { %5969 = vmatpush.bf16.msrb.mxu1 %v10252_v56 }
 0x3ae   : > { %5960 = vmatpush.bf16.msrb.mxu0 %v10240_v30  ;;  %6091 = vmatpush.bf16.msrb.mxu3 %v10236_v37 }
 0x3af   : > { %6082 = vmatpush.bf16.msrb.mxu2 %v10224_v62 }
 0x3b1   : > { %5970 = vmatpush.bf16.msrb.mxu1 %v10251_v16 }
 0x3b2   : > { %5961 = vmatpush.bf16.msrb.mxu0 %v10239_v22  ;;  %6092 = vmatpush.bf16.msrb.mxu3 %v10235_v33  ;;  %v5774_v33 = vperm.slane %v5771_v17, 1 }
 0x3b3   : > { %6083 = vmatpush.bf16.msrb.mxu2 %v10223_v51  ;;  %v10277_v51 = vld [vmem:[#allocation17 + $0x38] sm:$0xff] }
 0x3b5   : > { %5971 = vmatpush.bf16.msrb.mxu1 %v10250_v38 }
 0x3b6   : > { %5962 = vmatpush.bf16.msrb.mxu0 %v10238_v32  ;;  %6093 = vmatpush.bf16.msrb.mxu3 %v10234_v61 }
 0x3b7   : > { %6084 = vmatpush.bf16.msrb.mxu2 %v10222_v57 }
 0x3b9   : > { %5972 = vmatpush.bf16.msrb.mxu1 %v10249_v21  ;;  %v5773_v21 = vperm.slane %v5771_v17, 0 }
 0x3ba   : > { %6231 = vmatpush.bf16.msra.mxu0 %v10261_v39  ;;  %6094 = vmatpush.bf16.msrb.mxu3 %v10233_v31 }
 0x3bb   : > { %6335 = vmatpush.bf16.msra.mxu2 %v10277_v51 }
 0x3bd   : > { %5973 = vmatpush.bf16.msrb.mxu1 %v10248_v13 }
 0x3be   : > { %6232 = vmatpush.bf16.msra.mxu0 %v10260_v43  ;;  %6095 = vmatpush.bf16.msrb.mxu3 %v10232_v48  ;;  %v10272_v48 = vld [vmem:[#allocation17 + $0x10] sm:$0xff] }
 0x3c1   : > { %5974 = vmatpush.bf16.msrb.mxu1 %v10247_v2 }
 0x3c2   : > { %6233 = vmatpush.bf16.msra.mxu0 %v10259_v50  ;;  %6096 = vmatpush.bf16.msrb.mxu3 %v10231_v63 }
 0x3c5   : > { %5975 = vmatpush.bf16.msrb.mxu1 %v10246_v45 }
 0x3c6   : > { %6234 = vmatpush.bf16.msra.mxu0 %v10258_v41  ;;  %6097 = vmatpush.bf16.msrb.mxu3 %v10230_v58 }
 0x3c9   : > { %6244 = vmatpush.bf16.msra.mxu1 %v10269_v47 }
 0x3ca   : > { %6235 = vmatpush.bf16.msra.mxu0 %v10257_v0 }
 0x3cd   : > { %6245 = vmatpush.bf16.msra.mxu1 %v10268_v18  ;;  %v10276_v18 = vld [vmem:[#allocation17 + $0x30] sm:$0xff] }
 0x3ce   : > { %6236 = vmatpush.bf16.msra.mxu0 %v10256_v5  ;;  %6336 = vmatpush.bf16.msra.mxu2 %v10276_v18 }
 0x3d1   : > { %6246 = vmatpush.bf16.msra.mxu1 %v10267_v59  ;;  %v10270_v59 = vld [vmem:[#allocation17] sm:$0xff] }
 0x3d2   : > { %6237 = vmatpush.bf16.msra.mxu0 %v10255_v28 }
 0x3d5   : > { %6247 = vmatpush.bf16.msra.mxu1 %v10266_v3 }
 0x3d6   : > { %6238 = vmatpush.bf16.msra.mxu0 %v10254_v11 }
 0x3d9   : > { %6248 = vmatpush.bf16.msra.mxu1 %v10265_v7 }
 0x3dd   : > { %6249 = vmatpush.bf16.msra.mxu1 %v10264_v10  ;;  %v10433_v10 = vld [vmem:[#allocation16] ss:$0 sm:$0xff] }
 0x3e1   : > { %6250 = vmatpush.bf16.msra.mxu1 %v10263_v20 }
 0x3e5   : > { %6251 = vmatpush.bf16.msra.mxu1 %v10262_v15 }
 0x3f4   : > { %v11348_v26 = vpop.f32.mrf.mxu0 }
 0x3fa   : > { %v11350_v29 = vpop.f32.mrf.mxu2 }
 0x3fc   : > { %v5272_v23 = vpop.f32.mrf.mxu0 }
 0x402   : > { %v5298_v35 = vpop.f32.mrf.mxu2 }
 0x404   : > { %v5283_v42 = vpop.f32.mrf.mxu1 }
 0x405   : > { %v5482_v44 = vpop.f32.mrf.mxu0  ;;  %v5284_v56 = vadd.f32 %v5283_v42, %v11348_v26 }
 0x407   : > { %v5483_v19 = vadd.f32 %v5482_v44, %v5284_v56 }
 0x40a   : > { %v5309_v49 = vpop.f32.mrf.mxu3 }
 0x40b   : > { %v5508_v54 = vpop.f32.mrf.mxu2  ;;  %v5310_v24 = vadd.f32 %v5309_v49, %v11350_v29 }
 0x40c   : > { %v5285_v52 = vpop.f32.mrf.mxu1 }
 0x40d   : > { %v5484_v25 = vpop.f32.mrf.mxu0  ;;  %v5509_v37 = vadd.f32 %v5508_v54, %v5310_v24  ;;  %v10275_v54 = vld [vmem:[#allocation17 + $0x28] sm:$0xff]  ;;  %v10274_v52 = vld [vmem:[#allocation17 + $0x20] sm:$0xff] }
 0x40e   : > { %6337 = vmatpush.bf16.msra.mxu2 %v10275_v54  ;;  %v10271_v25 = vld [vmem:[#allocation17 + $0x8] sm:$0xff] }
 0x412   : > { %v5311_v6 = vpop.f32.mrf.mxu3  ;;  %6338 = vmatpush.bf16.msra.mxu2 %v10274_v52 }
 0x413   : > { %v5510_v4 = vpop.f32.mrf.mxu2 }
 0x414   : > { %v5495_v53 = vpop.f32.mrf.mxu1 }
 0x415   : > { %v5726_v55 = vpop.f32.mrf.mxu0  ;;  %v5496_v30 = vadd.f32 %v5495_v53, %v5483_v19 }
 0x416   : > { %6339 = vmatpush.bf16.msra.mxu2 %v10273_v1 }
 0x41a   : > { %v5521_v8 = vpop.f32.mrf.mxu3  ;;  %6340 = vmatpush.bf16.msra.mxu2 %v10272_v48 }
 0x41b   : > { %v5522_v32 = vadd.f32 %v5521_v8, %v5509_v37 }
 0x41c   : > { %v5752_v12 = vpop.f32.mrf.mxu2  ;;  %v5497_v9 = vpop.f32.mrf.mxu1 }
 0x41d   : > { %v5728_v14 = vpop.f32.mrf.mxu0 }
 0x41e   : > { %6341 = vmatpush.bf16.msra.mxu2 %v10271_v25 }
 0x422   : > { %v5523_v16 = vpop.f32.mrf.mxu3  ;;  %6342 = vmatpush.bf16.msra.mxu2 %v10270_v59 }
 0x424   : > { %v5754_v38 = vpop.f32.mrf.mxu2 }
 0x425   : > { %v5739_v60 = vpop.f32.mrf.mxu1  ;;  %v6286_v38 = vld [vmem:[#allocation19] sm:$0x1] }
 0x426   : > { %v5740_v34 = vadd.f32 %v5739_v60, %v5726_v55 }
 0x428   : > { %v5769_v22 = vadd.f32 %v5740_v34, %v5496_v30 }
 0x42a   : > { %v5777_v23 = vadd.f32 %v5773_v21, %v5769_v22 }
 0x42c   : > { %v5779_v13 = vmax.f32 %v5777_v23, 0.0  ;;  %v5765_v40 = vpop.f32.mrf.mxu3 }
 0x42d   : > { %v5766_v26 = vadd.f32 %v5765_v40, %v5752_v12  ;;  %v5741_v39 = vpop.f32.mrf.mxu1  ;;  %v6349_v40 = vand.u32 127, %v5007_v27 }
 0x42e   : > { %v5781_v2 = vrot.slane %v5779_v13, 7  ;;  %v5825_v35 = vpack.c.bf16 %v5779_v13, %v5779_v13  ;;  %v5787_v47 = vrot.slane %v5779_v13, 1 }
 0x42f   : > { %v5770_v36 = vadd.f32 %v5766_v26, %v5522_v32  ;;  %vm6350_vm6 = vcmp.eq.s32.totalorder %v6349_v40, 4 }
 0x430   : > { %v9433_v42 = vpack.c.bf16 %v5781_v2, %v5781_v2  ;;  %5963 = vmatmul.bf16.vlgmr.msrb.gmra.mxu0 %v5825_v35  ;;  %v9507_v31 = vpack.c.bf16 %v5787_v47, %v5787_v47 }
 0x431   : > { %v5778_v61 = vadd.f32 %v5774_v33, %v5770_v36 }
 0x432   : > { %9434 = vmatmul.msk.bf16.vlgmr.msrb.gmra.mxu2 %vm11319_vm1, %v9433_v42 }
 0x433   : > { %v5780_v43 = vmax.f32 %v5778_v61, 0.0 }
 0x434   : > { %v5767_v29 = vpop.f32.mrf.mxu3 }
 0x435   : > { %v5782_v44 = vrot.slane %v5780_v43, 7  ;;  %v5826_v45 = vpack.c.bf16 %v5780_v43, %v5780_v43  ;;  %v5788_v50 = vrot.slane %v5780_v43, 1 }
 0x437   : > { %v9438_v62 = vpack.c.bf16 %v5782_v44, %v5782_v44  ;;  %5976 = vmatmul.bf16.vlgmr.msrb.gmra.mxu1 %v5826_v45  ;;  %v9512_v49 = vpack.c.bf16 %v5788_v50, %v5788_v50 }
 0x439   : > { %9439 = vmatmul.msk.bf16.vlgmr.msrb.gmra.mxu3 %vm11319_vm1, %v9438_v62 }
 0x440   : > { %9508 = vmatmul.msk.bf16.vlgmr.msra.gmra.mxu0 %vm11331_vm3, %v9507_v31 }
 0x447   : > { %9513 = vmatmul.msk.bf16.vlgmr.msra.gmra.mxu1 %vm11331_vm3, %v9512_v49 }
 0x4ad   : > { %v5964_v41 = vpop.f32.mrf.mxu0 }
 0x4b4   : > { %v5977_v57 = vpop.f32.mrf.mxu1 }
 0x4b5   : > { %v5966_v63 = vpop.f32.mrf.mxu0  ;;  %v6086_v46 = vpop.f32.mrf.mxu2  ;;  %v5978_v53 = vadd.f32 %v5977_v57, %v5964_v41 }
 0x4b7   : > { %v6087_v58 = vadd.f32 %v6086_v46, %v5978_v53 }
 0x4bc   : > { %v5979_v0 = vpop.f32.mrf.mxu1  ;;  %v6099_v6 = vpop.f32.mrf.mxu3 }
 0x4bd   : > { %v6088_v3 = vpop.f32.mrf.mxu2  ;;  %v6240_v4 = vpop.f32.mrf.mxu0  ;;  %v6100_v7 = vadd.f32 %v6099_v6, %v6087_v58 }
 0x4c4   : > { %v6101_v5 = vpop.f32.mrf.mxu3  ;;  %v6253_v55 = vpop.f32.mrf.mxu1 }
 0x4c5   : > { %v6254_v28 = vadd.f32 %v6253_v55, %v6240_v4  ;;  %v6242_v8 = vpop.f32.mrf.mxu0 }
 0x4c7   : > { %v6257_v11 = vadd.f32 %v6254_v28, %v6100_v7 }
 0x4c9   : > { %v6262_v12 = vadd.f32 %v10433_v10, %v6257_v11 }
 0x4cb   : > { %v6263_v9 = vrot.slane %v6262_v12, 4 }
 0x4cc   : > { %v6255_v20 = vpop.f32.mrf.mxu1 }
 0x4cd   : > { %v6264_v14 = vmax.f32 %v6262_v12, %v6263_v9 }
 0x4cf   : > { %v6265_v56 = vrot.slane %v6264_v14, 2 }
 0x4d1   : > { %v6266_v15 = vmax.f32 %v6264_v14, %v6265_v56 }
 0x4d3   : > { %v6267_v16 = vrot.slane %v6266_v15, 1 }
 0x4d5   : > { %v6268_v17 = vmax.f32 %v6266_v15, %v6267_v16 }
 0x4d7   : > { %v6269_v19 = vpack.c.bf16 %v6268_v17, %v6268_v17 }
 0x4d9   : > { %6343 = vmatmul.bf16.vlgmr.msra.gmra.mxu2 %v6269_v19 }
 0x55c   : > { %v6344_v60 = vpop.f32.mrf.mxu2 }
 0x55d   : > { %v6345_v30 = vadd.f32 %v6344_v60, %v6286_v38 }
 0x55f   : > { %v9546_v34 = vmul.f32 -1.442695, %v6345_v30 }
 0x561   : > { %10434 = vpow2.f32 %v9546_v34 }
 0x564   : > { %v6346_v21 = vpop.f32.mrf.mxu2 }
 0x567   : > { %v10435_v24 = vpop.eup %10434 }
 0x568   : > { %v6354_v22 = vadd.f32 1.0, %v10435_v24 }
 0x56a   : > { %10436 = vrcp.f32 %v6354_v22  ;;  %v6366_v32 = vand.u32 2147483648, %v6354_v22  ;;  %v6364_v33 = vand.u32 2147483647, %v6354_v22  ;;  %vm6360_vm5 = vweird.f32 %v6354_v22 }
 0x56c   : > { %v6367_v2 = vor.u32 1.1754944e-38, %v6366_v32  ;;  %vm6365_vm8 = vcmp.eq.f32.partialorder %v6364_v33, 8.507059e+37 }
 0x570   : > { %v10437_v23 = vpop.eup %10436 }
 0x571   : > { %v6356_v37 = vmul.f32 %v10437_v23, %v6354_v22  ;;  %vm6361_vm4 = vweird.f32 %v10437_v23 }
 0x572   : > { %vm6362_vm7 = vmor %vm6360_vm5, %vm6361_vm4 }
 0x573   : > { %v6357_v13 = vsub.f32 1.0, %v6356_v37 }
 0x575   : > { %v6358_v26 = vmul.f32 %v10437_v23, %v6357_v13 }
 0x577   : > { %v6359_v39 = vadd.f32 %v10437_v23, %v6358_v26 }
 0x579   : > { %v6363_v35 = vsel %vm6362_vm7, %v10437_v23, %v6359_v39 }
 0x57a   : > { %v6368_v27 = vsel %vm6365_vm8, %v6367_v2, %v6363_v35 }
 0x57b   : > { %v6370_v36 = vsel %vm6350_vm6, %v6368_v27, %v6345_v30 }
 0x57c   : > { %6371 = vst [vmem:[%s558_s26] sm:$0x1] %v6370_v36 }
 0x57d   : > { %10798 = shalt.err (!%p10795_p9)
}
 0x57e   : > { %10322 = dma.vmem_to_hbm [thread:$0]  (%p11052_p4), %s6384_s15, 16, %s6386_s28, %s6373_s24  }
 0x57f PF: > { %s6397_s25 = sand.u32 1, %s10845_s17   ;;  %p11434_p10 = scmp.ge.s32.totalorder %s10857_s20, 2 }
 0x580   : > { %s6398_s2 = scalar_lea.sflag [#allocation4], %s6397_s25 }
 0x581   : > { %p10360_p13 = pnand %p11434_p10, %p11056_p6 }
 0x583   : > { %p10361_p11 = pneg %p10360_p13 }
 0x585   : > { %10840 = dma.done.wait (%p10361_p11), %s6398_s2, 16  }
 0x586   : > { %10842 = vsyncadd (%p10361_p11), %s6398_s2, 4294967280  ;;  %p29_p0 = scmp.ge.s32.totalorder %s11026_s16, 4   ;;  %s11435_s17 = smov %s10849_s18 }
 0x587   : > { %s11436_s18 = smov %s10853_s19  ;;  %s11437_s19 = smov %s11037_s30 }
 0x588   : > { %s11438_s20 = smov %s11026_s16  ;;  %31 = sbr.rel (!%p29_p0) target bundleno = 16 (0x10), region = 149 }
 0x58d   :  { %6403 = vsyncpa [#allocation3], 1 }
 0x58e   :  { %6405 = vsyncpa [#allocation3 + $0x1], 1 }
 0x58f   :  { %6406 = vsyncpa [#allocation6], 1 }
 0x590   :  { %6407 = vsyncpa [#allocation9], 1 }
 0x591   :  { %6408 = vsyncpa [#allocation12], 1 }
 0x592   :  { %6409 = vsyncpa [#allocation15], 1 }
 0x593   :  { %6410 = vsyncpa [#allocation18], 1 }
 0x594   :  { %6411 = vsyncpa [#allocation4], 1 }
 0x595   :  { %6413 = vsyncpa [#allocation4 + $0x1], 1 }

</bundles_post_ra>
